<compile_context>
chip_gen: v7x
topology: tpu7x:2x2x1
jax: 0.10.0
libtpu: 0.0.40
codegen_flags: <defaults>
</compile_context>

<pallas_src>
import math

import jax
import jax.numpy as jnp
import numpy as np
from jax.experimental import pallas as pl
from jax.experimental.pallas import tpu as pltpu


# ----------------------------- frequency index tables (same as PyTorch) -----------------------------
def get_freq_indices(method):
    assert method in ['top1', 'top2', 'top4', 'top8', 'top16', 'top32',
                      'bot1', 'bot2', 'bot4', 'bot8', 'bot16', 'bot32',
                      'low1', 'low2', 'low4', 'low8', 'low16', 'low32']
    num_freq = int(method[3:])
    if 'top' in method:
        all_x = [0, 0, 6, 0, 0, 1, 1, 4, 5, 1, 3, 0, 0, 0, 3, 2, 4, 6, 3, 5, 5, 2, 6, 5, 5, 3, 3, 4, 2, 2, 6, 1]
        all_y = [0, 1, 0, 5, 2, 0, 2, 0, 0, 6, 0, 4, 6, 3, 5, 2, 6, 3, 3, 3, 5, 1, 1, 2, 4, 2, 1, 1, 3, 0, 5, 3]
    elif 'low' in method:
        all_x = [0, 0, 1, 1, 0, 2, 2, 1, 2, 0, 3, 4, 0, 1, 3, 0, 1, 2, 3, 4, 5, 0, 1, 2, 3, 4, 5, 6, 1, 2, 3, 4]
        all_y = [0, 1, 0, 1, 2, 0, 1, 2, 2, 3, 0, 0, 4, 3, 1, 5, 4, 3, 2, 1, 0, 6, 5, 4, 3, 2, 1, 0, 6, 5, 4, 3]
    else:  # bot
        all_x = [6, 1, 3, 3, 2, 4, 1, 2, 4, 4, 5, 1, 4, 6, 2, 5, 6, 1, 6, 2, 2, 4, 3, 3, 5, 5, 6, 2, 5, 5, 3, 6]
        all_y = [6, 4, 4, 6, 6, 3, 1, 4, 4, 5, 6, 5, 2, 2, 5, 1, 4, 3, 5, 0, 3, 1, 1, 2, 4, 2, 1, 1, 5, 3, 3, 3]
    return all_x[:num_freq], all_y[:num_freq]


def build_dct_filter(tile_x, tile_y, mapper_x, mapper_y, channel):
    """Returns the (channel, tile_x, tile_y) DCT filter (numpy f32), identical to the PyTorch buffer."""
    c_part = channel // len(mapper_x)
    pos_x = np.arange(tile_x, dtype=np.float64)
    pos_y = np.arange(tile_y, dtype=np.float64)
    parts = []
    for u_x, v_y in zip(mapper_x, mapper_y):
        fx = np.cos(np.pi * u_x * (pos_x + 0.5) / tile_x) / math.sqrt(tile_x)
        if u_x != 0:
            fx = fx * math.sqrt(2.0)
        fy = np.cos(np.pi * v_y * (pos_y + 0.5) / tile_y) / math.sqrt(tile_y)
        if v_y != 0:
            fy = fy * math.sqrt(2.0)
        f = np.outer(fx, fy).astype(np.float32)  # (tile_x, tile_y)
        parts.append(np.broadcast_to(f[None], (c_part, tile_x, tile_y)))
    return np.concatenate(parts, axis=0).astype(np.float32)


# ----------------------------- Pallas kernels -----------------------------
def _msa_fused_kernel(x_ref, dct_ref, w1t_ref, w2t_ref, out_ref):
    """Single-pass path: x block is read once, used for the (expanded) DCT-weighted
    spatial reduction, the SE MLP, and the per-channel rescale."""
    x = x_ref[...]                                                        # (B, C, HW), native dtype
    # DCT "pooling": f32 lane (spatial) reduction -> (B, C).  The expanded filter already
    # folds the average-pool divisor, so no wrapper pooling pass is needed.
    y = jnp.sum(x.astype(jnp.float32) * dct_ref[...][None], axis=2)       # (B, C)
    # Squeeze-excite MLP as one (B,C)x(C,Cr) / (B,Cr)x(Cr,C) matmul per batch block.
    h = jnp.maximum(
        jnp.dot(y, w1t_ref[...], preferred_element_type=jnp.float32), 0.0)   # (B, Cr)
    s = jax.nn.sigmoid(
        jnp.dot(h, w2t_ref[...], preferred_element_type=jnp.float32))        # (B, C)
    # Rescale at the native dtype (no materialized f32 copy of the block for bf16 inputs).
    out_ref[...] = x * s[:, :, None].astype(out_ref.dtype)


def _msa_rescale_kernel(x_ref, s_ref, out_ref):
    """Fallback path: pure elementwise per-channel rescale (s computed in the wrapper)."""
    out_ref[...] = x_ref[...] * s_ref[...].astype(out_ref.dtype)


# ----------------------------- sizing helpers -----------------------------
def _physical_vmem_bytes():
    try:
        return int(pltpu.get_tpu_info().vmem_capacity_bytes)
    except Exception:
        return 64 << 20  # conservative default: assume v7x (64 MiB VMEM)


def _usable_vmem_bytes():
    # 48 MiB on v7x (64 MiB physical), 96 MiB on v5e/v6e (128 MiB physical).
    return int(_physical_vmem_bytes() * 3 // 4)


def _clamp_vmem_limit(need, usable):
    return int(min(max(int(need), 16 << 20), usable))


def _largest_divisor_leq(n, cap):
    cap = max(1, min(n, int(cap)))
    for d in range(cap, 0, -1):
        if n % d == 0:
            return d
    return 1


def _spatial_tile(hw, c, itemsize, target_bytes=8 << 20):
    """Largest lane-aligned spatial tile up to ~8 MiB; trailing partial tile is masked
    by Pallas (safe: the fallback kernel is pure elementwise)."""
    max_lanes = max(128, (target_bytes // (itemsize * c)) // 128 * 128)
    if hw <= max_lanes:
        return hw
    return int(max_lanes)


# ----------------------------- Module wrapper -----------------------------
class MultiSpectralAttentionPallas:
    def __init__(self, channel, reduction=16, freq_sel_method='top16', *, key):
        c2wh = {96: 56, 192: 28, 384: 14, 768: 7}
        assert channel in c2wh, "channel must be one of {96, 192, 384, 768}"
        self.channel = channel
        self.reduction = reduction
        self.dct_h = self.dct_w = c2wh[channel]
        mx, my = get_freq_indices(freq_sel_method)
        scale = c2wh[channel] // 7
        mx = [v * scale for v in mx]
        my = [v * scale for v in my]
        assert channel % len(mx) == 0

        self._dct_np = build_dct_filter(self.dct_h, self.dct_w, mx, my, channel)  # (C, Hd, Wd) np f32
        self.dct_chw = jnp.asarray(self._dct_np)                                   # (C, Hd, Wd)
        self.dct = self.dct_chw.reshape(channel, -1)                               # (C, Hd*Wd)
        self._dct_exp_cache = {}

        cr = channel // reduction
        k1, k2 = jax.random.split(key)
        # Deterministic init (uniform, roughly kaiming scale).  Not identical to PyTorch's
        # default kaiming_uniform; load weights explicitly to match a checkpoint.
        self.w1 = (jax.random.uniform(k1, (cr, channel), jnp.float32, -1.0, 1.0)
                   / math.sqrt(channel))                                            # fc1.weight (Cr, C)
        self.w2 = (jax.random.uniform(k2, (channel, cr), jnp.float32, -1.0, 1.0)
                   / math.sqrt(cr))                                                 # fc2.weight (C, Cr)
        # Pre-transposed copies so kernels/wrapper do row-vector matmuls (no in-kernel .T).
        self.w1_t = self.w1.T   # (C, Cr)
        self.w2_t = self.w2.T   # (Cr, C)

    # ---- expanded DCT filter: folds adaptive-average-pool into the DCT reduction ----
    def _expanded_dct(self, h, w):
        key = (h, w)
        if key not in self._dct_exp_cache:
            ph, pw = h // self.dct_h, w // self.dct_w
            exp = np.repeat(np.repeat(self._dct_np, ph, axis=1), pw, axis=2)
            exp = (exp / float(ph * pw)).reshape(self.channel, h * w).astype(np.float32)
            self._dct_exp_cache[key] = jnp.asarray(exp)
        return self._dct_exp_cache[key]

    def _pool_nchw(self, x_nchw):
        """Average pooling to (dct_h, dct_w); exact when divisible."""
        n, c, h, w = x_nchw.shape
        # TODO(synk): general (non-divisible) adaptive_avg_pool2d is not implemented here.
        assert h % self.dct_h == 0 and w % self.dct_w == 0
        return x_nchw.reshape(n, c, self.dct_h, h // self.dct_h,
                              self.dct_w, w // self.dct_w).mean(axis=(3, 5))

    def __call__(self, x_nchw, *, force_path=None):
        n, c, h, w = x_nchw.shape
        assert c == self.channel
        assert h % self.dct_h == 0 and w % self.dct_w == 0
        hw = h * w
        cr = self.w1_t.shape[1]
        itemsize = jnp.dtype(x_nchw.dtype).itemsize
        x = x_nchw.reshape(n, c, hw)                       # free reshape, stays NCHW-native

        usable = _usable_vmem_bytes()
        block_b = c * hw * itemsize                        # one-batch (C, HW) x block
        dct_bytes = c * hw * 4                             # expanded f32 DCT filter
        weights_bytes = 2 * c * cr * 4
        # Conservative per-block-batch cost: double-buffered x in + out, plus the f32
        # product temporary used by the DCT reduction.
        per_b = 4 * block_b + c * hw * 4
        fixed = 2 * dct_bytes + 2 * weights_bytes + (4 << 20)

        use_fused = (fixed + per_b) <= usable
        if force_path == "fused":
            use_fused = True
        elif force_path == "tiled":
            use_fused = False

        if use_fused:
            # ---- single-pass fused path: 1 HBM read + 1 HBM write of x ----
            b_cap_vmem = max(1, (usable - fixed) // per_b)
            b_target = max(1, -(-(4 << 20) // block_b))    # fold small-HW batches to ~4 MiB blocks
            b_cap = min(b_cap_vmem, b_target)
            if n >= 2:
                b_cap = min(b_cap, max(1, n // 2))         # keep >=2 grid steps for pipelining
            b_blk = _largest_divisor_leq(n, b_cap)
            dct_exp = self._expanded_dct(h, w)             # == self.dct when h == dct_h
            vmem_limit = _clamp_vmem_limit(fixed + b_blk * per_b, usable)
            out = pl.pallas_call(
                _msa_fused_kernel,
                out_shape=jax.ShapeDtypeStruct((n, c, hw), x.dtype),
                grid_spec=pltpu.PrefetchScalarGridSpec(
                    num_scalar_prefetch=0,
                    grid=(n // b_blk,),
                    in_specs=[
                        pl.BlockSpec((b_blk, c, hw), lambda i: (i, 0, 0)),   # x (read once)
                        pl.BlockSpec((c, hw), lambda i: (0, 0)),             # expanded DCT filter
                        pl.BlockSpec((c, cr), lambda i: (0, 0)),             # fc1 weight^T
                        pl.BlockSpec((cr, c), lambda i: (0, 0)),             # fc2 weight^T
                    ],
                    out_specs=pl.BlockSpec((b_blk, c, hw), lambda i: (i, 0, 0)),
                ),
                compiler_params=pltpu.CompilerParams(
                    dimension_semantics=("parallel",),
                    vmem_limit_bytes=vmem_limit,
                ),
            )(x, dct_exp, self.w1_t, self.w2_t)
        else:
            # ---- fallback path: pool + DCT reduce + SE MLP hoisted to the wrapper (tiny),
            #      Pallas kernel is a pure elementwise rescale, both grid axes parallel ----
            xp = self._pool_nchw(x_nchw).reshape(n, c, -1)                    # (N, C, Hd*Wd)
            y = jnp.einsum('ncs,cs->nc', xp.astype(jnp.float32), self.dct)    # (N, C)
            hmid = jnp.maximum(jnp.dot(y, self.w1_t), 0.0)                    # (N, Cr)
            s = jax.nn.sigmoid(jnp.dot(hmid, self.w2_t)).reshape(n, c, 1)     # (N, C, 1) f32

            ts = _spatial_tile(hw, c, itemsize)
            t = pl.cdiv(hw, ts)
            vmem_limit = _clamp_vmem_limit(
                4 * c * ts * itemsize + 4 * c * 4 + (2 << 20), usable)
            out = pl.pallas_call(
                _msa_rescale_kernel,
                out_shape=jax.ShapeDtypeStruct((n, c, hw), x.dtype),
                grid_spec=pltpu.PrefetchScalarGridSpec(
                    num_scalar_prefetch=0,
                    grid=(n, t),
                    in_specs=[
                        pl.BlockSpec((1, c, ts), lambda i, j: (i, 0, j)),     # x spatial tile
                        pl.BlockSpec((1, c, 1), lambda i, j: (i, 0, 0)),      # per-channel scale
                    ],
                    out_specs=pl.BlockSpec((1, c, ts), lambda i, j: (i, 0, j)),
                ),
                compiler_params=pltpu.CompilerParams(
                    dimension_semantics=("parallel", "parallel"),
                    vmem_limit_bytes=vmem_limit,
                ),
            )(x, s)

        return out.reshape(n, c, h, w)

    # Pure-JAX reference (mirrors the PyTorch forward) for correctness checking.
    def reference(self, x_nchw):
        n, c, h, w = x_nchw.shape
        xp = x_nchw if (h, w) == (self.dct_h, self.dct_w) else self._pool_nchw(x_nchw)
        y = jnp.sum(xp.astype(jnp.float32) * self.dct_chw[None], axis=(2, 3))   # (N, C)
        hdn = jnp.maximum(y @ self.w1.T, 0.0)                                    # (N, Cr)
        s = jax.nn.sigmoid(hdn @ self.w2.T)                                      # (N, C)
        return x_nchw * s[:, :, None, None].astype(x_nchw.dtype)


# ----------------------------- demo -----------------------------
if __name__ == "__main__":
    key = jax.random.PRNGKey(0)
    kx1, kx2, kp1, kp2 = jax.random.split(key, 4)

    # Case 1: unpooled (h == dct_h == 56) -> fused single-pass kernel, grid over batch.
    layer1 = MultiSpectralAttentionPallas(96, reduction=16, freq_sel_method='top16', key=kp1)
    x1 = jax.random.normal(kx1, (2, 96, 56, 56), dtype=jnp.float32)
    out1 = jax.block_until_ready(layer1(x1))
    np.testing.assert_allclose(np.asarray(out1), np.asarray(layer1.reference(x1)),
                               rtol=2e-3, atol=2e-3)

    # Case 2: pooled (112x112 -> 56x56), still single-pass: the expanded DCT filter folds
    # the average pool into the kernel, so x is read from HBM exactly once.
    layer2 = MultiSpectralAttentionPallas(96, reduction=16, freq_sel_method='top16', key=kp2)
    x2 = jax.random.normal(kx2, (2, 96, 112, 112), dtype=jnp.float32)
    out2 = jax.block_until_ready(layer2(x2))
    ref2 = np.asarray(layer2.reference(x2))
    np.testing.assert_allclose(np.asarray(out2), ref2, rtol=2e-3, atol=2e-3)

    # Case 3: force the tiled fallback path (wrapper pool + hoisted SE MLP + pure rescale).
    out3 = jax.block_until_ready(layer2(x2, force_path="tiled"))
    np.testing.assert_allclose(np.asarray(out3), ref2, rtol=2e-3, atol=2e-3)

    print("KERNEL_OK")
</pallas_src>

<mosaic_0001>
module attributes {stable_mosaic.version = 11 : i64} {
  func.func @_msa_fused_kernel(%arg0: i32, %arg1: memref<1x96x3136xf32, #tpu.memory_space<vmem>>, %arg2: memref<96x3136xf32, #tpu.memory_space<vmem>>, %arg3: memref<96x6xf32, #tpu.memory_space<vmem>>, %arg4: memref<6x96xf32, #tpu.memory_space<vmem>>, %arg5: memref<1x96x3136xf32, #tpu.memory_space<vmem>>) attributes {dimension_semantics = [#tpu.dimension_semantics<parallel>], iteration_bounds = array<i64: 2>, scalar_prefetch = 0 : i64, scratch_operands = 0 : i64, tpu.core_type = #tpu.core_type<tc>, window_params = [{transform_indices = @transform_0, window_bounds = array<i64: 1, 96, 3136>}, {pipeline_mode = #tpu.pipeline_mode<synchronous>, transform_indices = @transform_1, window_bounds = array<i64: 96, 3136>}, {pipeline_mode = #tpu.pipeline_mode<synchronous>, transform_indices = @transform_2, window_bounds = array<i64: 96, 6>}, {pipeline_mode = #tpu.pipeline_mode<synchronous>, transform_indices = @transform_3, window_bounds = array<i64: 6, 96>}, {transform_indices = @transform_4, window_bounds = array<i64: 1, 96, 3136>}]} {
    %c0 = arith.constant 0 : index
    %c0_0 = arith.constant 0 : index
    %c0_1 = arith.constant 0 : index
    %0 = vector.load %arg1[%c0, %c0_0, %c0_1] : memref<1x96x3136xf32, #tpu.memory_space<vmem>>, vector<1x96x3136xf32>
    %c0_2 = arith.constant 0 : index
    %c0_3 = arith.constant 0 : index
    %1 = vector.load %arg2[%c0_2, %c0_3] : memref<96x3136xf32, #tpu.memory_space<vmem>>, vector<96x3136xf32>
    %2 = vector.shape_cast %1 : vector<96x3136xf32> to vector<1x96x3136xf32>
    %3 = arith.mulf %0, %2 : vector<1x96x3136xf32>
    %cst = arith.constant dense<0.000000e+00> : vector<1x96xf32>
    %4 = vector.multi_reduction <add>, %3, %cst [2] : vector<1x96x3136xf32> to vector<1x96xf32>
    %c0_4 = arith.constant 0 : index
    %c0_5 = arith.constant 0 : index
    %5 = vector.load %arg3[%c0_4, %c0_5] : memref<96x6xf32, #tpu.memory_space<vmem>>, vector<96x6xf32>
    %cst_6 = arith.constant dense<0.000000e+00> : vector<1x6xf32>
    %6 = tpu.matmul %4, %5, %cst_6 {dimension_numbers = #tpu.dot_dimension_numbers<[1], [0], [0], [1], [0, 0, 1, 1], [], []>} : vector<1x96xf32>, vector<96x6xf32>, vector<1x6xf32> -> vector<1x6xf32>
    %cst_7 = arith.constant 0.000000e+00 : f32
    %7 = vector.broadcast %cst_7 : f32 to vector<1x6xf32>
    %8 = arith.maximumf %6, %7 : vector<1x6xf32>
    %c0_8 = arith.constant 0 : index
    %c0_9 = arith.constant 0 : index
    %9 = vector.load %arg4[%c0_8, %c0_9] : memref<6x96xf32, #tpu.memory_space<vmem>>, vector<6x96xf32>
    %cst_10 = arith.constant dense<0.000000e+00> : vector<1x96xf32>
    %10 = tpu.matmul %8, %9, %cst_10 {dimension_numbers = #tpu.dot_dimension_numbers<[1], [0], [0], [1], [0, 0, 1, 1], [], []>} : vector<1x6xf32>, vector<6x96xf32>, vector<1x96xf32> -> vector<1x96xf32>
    %11 = arith.negf %10 : vector<1x96xf32>
    %12 = math.exp %11 : vector<1x96xf32>
    %cst_11 = arith.constant 1.000000e+00 : f32
    %13 = vector.broadcast %cst_11 : f32 to vector<1x96xf32>
    %14 = arith.addf %13, %12 : vector<1x96xf32>
    %15 = arith.divf %13, %14 : vector<1x96xf32>
    %16 = vector.shape_cast %15 : vector<1x96xf32> to vector<1x96x1xf32>
    %17 = vector.broadcast %16 : vector<1x96x1xf32> to vector<1x96x3136xf32>
    %18 = arith.mulf %0, %17 : vector<1x96x3136xf32>
    %c0_12 = arith.constant 0 : index
    %c0_13 = arith.constant 0 : index
    %c0_14 = arith.constant 0 : index
    %19 = vector.load %arg5[%c0_12, %c0_13, %c0_14] : memref<1x96x3136xf32, #tpu.memory_space<vmem>>, vector<1x96x3136xf32>
    tpu.vector_store %arg5[%c0_12, %c0_13, %c0_14], %18 {strides = array<i32>} : memref<1x96x3136xf32, #tpu.memory_space<vmem>>, vector<1x96x3136xf32>,
    return
  }
  func.func @transform_0(%arg0: i32) -> (i32, i32, i32) {
    %c0_i32 = arith.constant 0 : i32
    %c0_i32_0 = arith.constant 0 : i32
    %c0_i32_1 = arith.constant 0 : i32
    return %arg0, %c0_i32, %c0_i32_0 : i32, i32, i32
  }
  func.func @transform_1(%arg0: i32) -> (i32, i32) {
    %c0_i32 = arith.constant 0 : i32
    %c0_i32_0 = arith.constant 0 : i32
    %c0_i32_1 = arith.constant 0 : i32
    return %c0_i32, %c0_i32_0 : i32, i32
  }
  func.func @transform_2(%arg0: i32) -> (i32, i32) {
    %c0_i32 = arith.constant 0 : i32
    %c0_i32_0 = arith.constant 0 : i32
    %c0_i32_1 = arith.constant 0 : i32
    return %c0_i32, %c0_i32_0 : i32, i32
  }
  func.func @transform_3(%arg0: i32) -> (i32, i32) {
    %c0_i32 = arith.constant 0 : i32
    %c0_i32_0 = arith.constant 0 : i32
    %c0_i32_1 = arith.constant 0 : i32
    return %c0_i32, %c0_i32_0 : i32, i32
  }
  func.func @transform_4(%arg0: i32) -> (i32, i32, i32) {
    %c0_i32 = arith.constant 0 : i32
    %c0_i32_0 = arith.constant 0 : i32
    %c0_i32_1 = arith.constant 0 : i32
    return %arg0, %c0_i32, %c0_i32_0 : i32, i32, i32
  }
}

</mosaic_0001>

<bundles_post_ra>
// kernel: tpu_custom_call.1
= control target key start
LH: loop header
LB: loop body
LE: loop exit
PB: predicated region body
PF: predicated region fallthrough
CT: control target
= control target key end

     0   :  { %9 = vsyncpa [#allocation3], 0  ;;  %s4706_s0 = inlined_call_operand.hbm [shape: f32[2,96,3136], index: 0, kind: input, shape index: {}]   ;;  %s4707_s1 = inlined_call_operand.hbm [shape: f32[96,3136], index: 1, kind: input, shape index: {}]   ;;  %s4708_s2 = inlined_call_operand.vmem [shape: f32[96,6], index: 2, kind: input, shape index: {}]   ;;  %s4709_s3 = inlined_call_operand.hbm [shape: f32[6,96], index: 3, kind: input, shape index: {}]   ;;  %s4710_s4 = inlined_call_operand.hbm [shape: f32[2,96,3136], index: 4, kind: output, shape index: {}]  }
   0x1   :  { %11 = vsyncpa [#allocation3 + $0x1], 0 }
   0x2   :  { %12 = vsyncpa [#allocation6], 0 }
   0x3   :  { %13 = vsyncpa [#allocation4], 0 }
   0x4   :  { %15 = vsyncpa [#allocation4 + $0x1], 0  ;;  %s3148_s15 = smov 0   ;;  %s3150_s16 = smov 0  }
   0x5   :  { %s3152_s17 = smov 0   ;;  %s3154_s18 = smov 0  }
   0x6 LB: > { %s3169_s19 = sadd.s32 4294967295, %s3110_s18   ;;  %s2491_s20 = sadd.s32 4294967294, %s3110_s18   ;;  %s3110_s18 = sphi %s3154_s18, %s4730_s18   ;;  %s3106_s17 = sphi %s3152_s17, %s4729_s17   ;;  %s3102_s16 = sphi %s3150_s16, %s4728_s16   ;;  %s3098_s15 = sphi %s3148_s15, %s4727_s15  }
   0x7   : > { %p41_p0 = scmp.ne.s32.totalorder %s3102_s16, %s3098_s15  ;;  %p4711_p1 = scmp.eq.s32.totalorder %s3169_s19, 0 }
   0x8   : > { %p134_p3 = scmp.eq.s32.totalorder %s2491_s20, 1  ;;  %p2492_p5 = scmp.ge.s32.totalorder %s3110_s18, 1 }
   0x9   : > { %p3178_p4 = por %p4711_p1, %p41_p0  ;;  %p141_p7 = scmp.lt.s32.totalorder %s3110_s18, 3 }
   0xa   : > { %p3183_p6 = por %p134_p3, %p41_p0  ;;  %s3112_s24 = smov [#allocation5]  }
   0xb   : > { %s4714_s21 = scalar_select %p3178_p4, 1, 0 }
   0xc   : > { %s4715_s22 = scalar_select %p3183_p6, 1, 0 }
   0xd   : > { %p3188_p8 = pnand %p2492_p5, %p141_p7  ;;  %s153_s25 = sshll.u32 %s3112_s24, 4  ;;  %s3192_s25 = int_to_ptr.vmem [resolvable:$true] %s153_s25 }
   0xe   : > { %s3113_s27 = smov [#allocation7]   ;;  %s2954_s5 = scalar_lea.hbm %s4707_s1, 38400 }
   0xf   : > { %p2588_p9 = pneg %p3188_p8  ;;  %s170_s28 = sshll.u32 %s3113_s27, 4  ;;  %s3203_s28 = int_to_ptr.vmem [resolvable:$true] %s170_s28 }
  0x10   : > { %p2955_p12 = scmp.ne.s32.totalorder %s4707_s1, %s2954_s5  ;;  %p2961_p5 = scmp.lt.u32.totalorder %s2954_s5, %s4707_s1 }
  0x11   : > { %p3199_p11 = pnand %p2588_p9, %p4711_p1 }
  0x13   : > { %p2956_p13 = pneg %p3199_p11 }
  0x15   : > { %p2957_p0 = pnand %p2956_p13, %p2955_p12 }
  0x17   : > { %p2958_p3 = pneg %p2957_p0 }
  0x19   : > { %p2963_p7 = pnand %p2961_p5, %p2958_p3 }
  0x1b   : > { %2966 = shalt.err (!%p2963_p7)
}
  0x1c   : > { %s2967_s10 = scalar_lea.vmem %s3192_s25, 38400  ;;  %p2975_p2 = scmp.lt.s32.totalorder %s3192_s25, %s3192_s25 }
  0x1d   : > { %p2968_p9 = scmp.ne.s32.totalorder %s3192_s25, %s2967_s10  ;;  %p2976_p12 = scmp.lt.s32.totalorder %s2967_s10, %s2967_s10 }
  0x1f   : > { %p2970_p10 = pnand %p2968_p9, %p2956_p13  ;;  %p2977_p0 = por %p2976_p12, %p2975_p2 }
  0x21   : > { %p2971_p1 = pneg %p2970_p10 }
  0x23   : > { %p2978_p6 = pnand %p2977_p0, %p2971_p1 }
  0x25   : > { %2981 = shalt.err (!%p2978_p6)
}
  0x26   : > { %s3114_s11 = smov 3200   ;;  %s3115_s12 = smov 200  }
  0x27   : > { %2591 = dma.hbm_to_vmem [thread:$0]  (!%p3199_p11), %s4707_s1, 38400, %s3192_s25, [#allocation6], %s3114_s11, %s3114_s11, %s3115_s12  }
  0x28   : > { %s2982_s27 = scalar_lea.hbm %s4709_s3, 128 }
  0x29   : > { %p2983_p1 = scmp.ne.s32.totalorder %s4709_s3, %s2982_s27  ;;  %p2989_p10 = scmp.lt.u32.totalorder %s2982_s27, %s4709_s3 }
  0x2b   : > { %p2985_p2 = pnand %p2983_p1, %p2956_p13 }
  0x2d   : > { %p2986_p6 = pneg %p2985_p2 }
  0x2f   : > { %p2991_p3 = pnand %p2989_p10, %p2986_p6 }
  0x31   : > { %2994 = shalt.err (!%p2991_p3)
}
  0x32   : > { %s2995_s25 = scalar_lea.vmem %s3203_s28, 128  ;;  %p3003_p12 = scmp.lt.s32.totalorder %s3203_s28, %s3203_s28 }
  0x33   : > { %p2996_p5 = scmp.ne.s32.totalorder %s3203_s28, %s2995_s25  ;;  %p3004_p0 = scmp.lt.s32.totalorder %s2995_s25, %s2995_s25 }
  0x35   : > { %p2998_p7 = pnand %p2996_p5, %p2956_p13  ;;  %p3005_p1 = por %p3004_p0, %p3003_p12 }
  0x37   : > { %p2999_p9 = pneg %p2998_p7 }
  0x39   : > { %p3006_p2 = pnand %p3005_p1, %p2999_p9 }
  0x3b   : > { %3009 = shalt.err (!%p3006_p2)
}
  0x3c   : > { %2594 = dma.hbm_to_vmem [thread:$0]  (!%p3199_p11), %s4709_s3, 128, %s3203_s28, [#allocation6]  }
  0x3d   : > { %s3261_s9 = sadd.s32 1, %s3110_s18   ;;  %s28_s26 = sadd.s32 1, %s3106_s17 }
  0x3e   : > { %s25_s10 = ssub.s32 %s3110_s18, %s3261_s9  ;;  %p35_p13 = scmp.ne.s32.totalorder %s3106_s17, %s3102_s16 }
  0x3f   : > { %p26_p6 = scmp.eq.s32.totalorder %s25_s10, 0  ;;  %p36_p10 = scmp.eq.s32.totalorder %s3110_s18, 0 }
  0x40   : > { %p4718_p3 = scmp.eq.s32.totalorder %s3169_s19, 1  ;;  %p2605_p7 = scmp.lt.s32.totalorder %s3110_s18, 2 }
  0x41   : > { %s3277_s14 = scalar_select %p26_p6, %s3106_s17, %s28_s26  }
  0x42   : > { %p3271_p5 = por %p4718_p3, %p35_p13  ;;  %p37_p9 = por %p36_p10, %p35_p13 }
  0x43   : > { %s181_s20 = sand.u32 1, %s3106_s17   ;;  %s2573_s28 = smul.u32 38400, %s3110_s18 }
  0x44   : > { %s4719_s13 = scalar_select %p3271_p5, 1, 0 }
  0x45   : > { %s2572_s24 = smul.u32 2400, %s181_s20  ;;  %p3281_p11 = pnand %p2605_p7, %p37_p9 }
  0x46   : > { %s3288_s5 = scalar_lea.hbm %s4706_s0, %s2573_s28  ;;  %s3292_s7 = scalar_lea.sflag [#allocation3], %s181_s20 }
  0x47   : > { %s185_s6 = scalar_lea.vmem [#allocation2], %s2572_s24  ;;  %s3010_s8 = scalar_lea.hbm %s3288_s5, 38400 }
  0x48   : > { %s192_s25 = sshll.u32 %s185_s6, 4  ;;  %p3011_p12 = scmp.ne.s32.totalorder %s3288_s5, %s3010_s8  ;;  %s3290_s25 = int_to_ptr.vmem [resolvable:$true] %s192_s25 }
  0x49   : > { %p3012_p0 = pneg %p3281_p11  ;;  %s3015_s28 = scalar_lea.hbm %s4706_s0, 76800 }
  0x4a   : > { %p3016_p13 = scmp.lt.u32.totalorder %s3288_s5, %s4706_s0  ;;  %p3017_p6 = scmp.lt.u32.totalorder %s3015_s28, %s3010_s8 }
  0x4b   : > { %p3013_p1 = pnand %p3012_p0, %p3011_p12  ;;  %p3019_p3 = scmp.lt.u32.totalorder %s3010_s8, %s3288_s5 }
  0x4c   : > { %p3018_p10 = por %p3017_p6, %p3016_p13 }
  0x4d   : > { %p3014_p2 = pneg %p3013_p1 }
  0x4e   : > { %p3020_p7 = por %p3019_p3, %p3018_p10 }
  0x50   : > { %p3021_p9 = pnand %p3020_p7, %p3014_p2 }
  0x52   : > { %3024 = shalt.err (!%p3021_p9)
}
  0x53   : > { %s3025_s20 = scalar_lea.vmem %s3290_s25, 38400  ;;  %s3116_s24 = smov [#allocation2]  }
  0x54   : > { %p3026_p12 = scmp.ne.s32.totalorder %s3290_s25, %s3025_s20  ;;  %s3030_s6 = sshll.u32 %s3116_s24, 4  ;;  %s3031_s6 = int_to_ptr.vmem [resolvable:$false] %s3030_s6 }
  0x55   : > { %s3032_s26 = scalar_lea.vmem %s3031_s6, 76800  ;;  %p3033_p4 = scmp.lt.s32.totalorder %s3290_s25, %s3031_s6 }
  0x56   : > { %p3028_p1 = pnand %p3026_p12, %p3012_p0  ;;  %p3034_p13 = scmp.lt.s32.totalorder %s3032_s26, %s3025_s20 }
  0x58   : > { %p3029_p5 = pneg %p3028_p1  ;;  %p3035_p6 = por %p3034_p13, %p3033_p4 }
  0x5a   : > { %p3036_p10 = pnand %p3035_p6, %p3029_p5 }
  0x5c   : > { %3039 = shalt.err (!%p3036_p10)
}
  0x5d   : > { %2598 = dma.hbm_to_vmem [thread:$0]  (!%p3281_p11), %s3288_s5, 38400, %s3290_s25, %s3292_s7, %s3114_s11, %s3114_s11, %s3115_s12  }
  0x5e   : > { %204 = sbr.rel (%p3188_p8) target bundleno = 1211 (0x4bb), region = 36  ;;  %s3326_s8 = sand.u32 (!%p3188_p8), 1, %s3102_s16  }
  0x5f   : > { %s2574_s10 = smul.u32 (!%p3188_p8), 2400, %s3326_s8  ;;  %s207_s28 = scalar_lea.sflag (!%p3188_p8), [#allocation3], %s3326_s8 }
  0x60   : > { %p4721_p4 = scmp.ne.s32.totalorder (!%p3188_p8), %s4714_s21, 0 }
  0x61   : > { %s3332_s27 = scalar_lea.vmem (!%p3188_p8), [#allocation2], %s2574_s10 }
  0x65   : > { %3085 = dma.done.wait (%p4721_p4), %s207_s28, 38400  }
  0x66   : > { %3087 = vsyncadd (%p4721_p4), %s207_s28, 4294928896  ;;  %p4722_p5 = scmp.eq.s32.totalorder %s3169_s19, 0 }
  0x68   : > { %3089 = dma.done.wait (%p4722_p5), [#allocation6], 38528   ;;  %p4723_p8 = pmov %p4722_p5 }
  0x69   : > { %v243_v0 = vld [vmem:[%s3332_s27] sm:$0xff]  ;;  %v244_v1 = vld [vmem:[%s3332_s27 + $0x8] sm:$0xff]  ;;  %v245_v2 = vld [vmem:[%s3332_s27 + $0x10] sm:$0xff]  ;;  %vm1166_vm0 = vcmask 523264   ;;  %vm3118_vm1 = vmmov 0   ;;  %vm1503_vm2 = vcmask 130112  }
  0x6a   : > { %3091 = vsyncadd (%p4723_p8), [#allocation6], 4294928768  ;;  %v246_v3 = vld [vmem:[%s3332_s27 + $0x18] sm:$0xff]  ;;  %v543_v4 = vld [vmem:[#allocation5] sm:$0xff]  ;;  %vm1510_vm3 = vcmask 195712   ;;  %vm1517_vm4 = vcmask 261312  }
  0x6b   : > { %v544_v5 = vld [vmem:[#allocation5 + $0x8] sm:$0xff]  ;;  %v545_v6 = vld [vmem:[#allocation5 + $0x10] sm:$0xff]  ;;  %v546_v7 = vld [vmem:[#allocation5 + $0x18] sm:$0xff]  ;;  %v843_v8 = vmul.f32 %v543_v4, %v243_v0  ;;  %vm1524_vm5 = vcmask 326912   ;;  %vm1531_vm6 = vcmask 392512   ;;  %vm1538_vm7 = vcmask 458112  }
  0x6c   : > { %v844_v9 = vmul.f32 %v544_v5, %v244_v1  ;;  %v247_v10 = vld [vmem:[%s3332_s27 + $0x20] sm:$0xff]  ;;  %v845_v12 = vmul.f32 %v545_v6, %v245_v2  ;;  %v846_v13 = vmul.f32 %v546_v7, %v246_v3  ;;  %v248_v15 = vld [vmem:[%s3332_s27 + $0x28] sm:$0xff]  ;;  %v249_v19 = vld [vmem:[%s3332_s27 + $0x30] sm:$0xff]  ;;  %vm1545_vm8 = vcmask 523712   ;;  %s3739_s24 = scalar_lea.vmem [#allocation8], %s2574_s10  ;;  %s2575_s10 = smul.u32 38400, %s3169_s19 }
  0x6d   : > { %v547_v11 = vld [vmem:[#allocation5 + $0x20] sm:$0xff]  ;;  %v548_v16 = vld [vmem:[#allocation5 + $0x28] sm:$0xff]  ;;  %v549_v20 = vld [vmem:[#allocation5 + $0x30] sm:$0xff]  ;;  %vm1552_vm9 = vcmask 589312   ;;  %vm1559_vm10 = vcmask 654912   ;;  %vm1566_vm11 = vcmask 720512  }
  0x6e   : > { %v1143_v14 = vadd.f32 %v844_v9, %v843_v8  ;;  %v847_v17 = vmul.f32 %v547_v11, %v247_v10  ;;  %v848_v21 = vmul.f32 %v548_v16, %v248_v15  ;;  %v250_v23 = vld [vmem:[%s3332_s27 + $0x38] sm:$0xff]  ;;  %v849_v25 = vmul.f32 %v549_v20, %v249_v19  ;;  %v251_v27 = vld [vmem:[%s3332_s27 + $0x40] sm:$0xff]  ;;  %v252_v31 = vld [vmem:[%s3332_s27 + $0x48] sm:$0xff]  ;;  %s2399_s6 = sshll.u32 %s3739_s24, 4  ;;  %s4637_s21 = scalar_lea.hbm %s4710_s4, %s2575_s10  ;;  %s4641_s6 = int_to_ptr.vmem [resolvable:$true] %s2399_s6 }
  0x6f   : > { %v550_v24 = vld [vmem:[#allocation5 + $0x38] sm:$0xff]  ;;  %v551_v28 = vld [vmem:[#allocation5 + $0x40] sm:$0xff]  ;;  %v552_v32 = vld [vmem:[#allocation5 + $0x48] sm:$0xff]  ;;  %vm1573_vm12 = vcmask 786112   ;;  %vm1575_vm13 = vcmask 785408   ;;  %vm1654_vm14 = vcmask 1045504  }
  0x70   : > { %v1144_v18 = vadd.f32 %v1143_v14, %v845_v12  ;;  %v850_v29 = vmul.f32 %v550_v24, %v250_v23  ;;  %v851_v33 = vmul.f32 %v551_v28, %v251_v27  ;;  %v253_v35 = vld [vmem:[%s3332_s27 + $0x50] sm:$0xff]  ;;  %v852_v37 = vmul.f32 %v552_v32, %v252_v31  ;;  %v294_v40 = vld [vmem:[%s3332_s27 + $0x198] sm:$0xff]  ;;  %v295_v41 = vld [vmem:[%s3332_s27 + $0x1a0] sm:$0xff]  ;;  %s2386_s19 = scalar_lea.sflag [#allocation4], %s3326_s8  ;;  %p4724_p0 = scmp.ne.s32.totalorder %s4719_s13, 0 }
  0x71   : > { %v553_v36 = vld [vmem:[#allocation5 + $0x50] sm:$0xff]  ;;  %v254_v42 = vld [vmem:[%s3332_s27 + $0x58] sm:$0xff]  ;;  %v296_v44 = vld [vmem:[%s3332_s27 + $0x1a8] sm:$0xff]  ;;  %vm1650_vm15 = vcmask 48128   ;;  %s3120_s23 = smov [#allocation8]  }
  0x72   : > { %v1145_v22 = vadd.f32 %v1144_v18, %v846_v13  ;;  %v293_v39 = vld [vmem:[%s3332_s27 + $0x190] sm:$0xff]  ;;  %v554_v43 = vld [vmem:[#allocation5 + $0x58] sm:$0xff]  ;;  %v853_v45 = vmul.f32 %v553_v36, %v253_v35  ;;  %v595_v49 = vld [vmem:[#allocation5 + $0x1a0] sm:$0xff]  ;;  %s3044_s11 = sshll.u32 %s3120_s23, 4  ;;  %s3045_s11 = int_to_ptr.vmem [resolvable:$false] %s3044_s11 }
  0x73   : > { %v593_v47 = vld [vmem:[#allocation5 + $0x190] sm:$0xff]  ;;  %v594_v48 = vld [vmem:[#allocation5 + $0x198] sm:$0xff]  ;;  %v255_v50 = vld [vmem:[%s3332_s27 + $0x60] sm:$0xff]  ;;  %v895_v55 = vmul.f32 %v595_v49, %v295_v41  ;;  %v854_v56 = vmul.f32 %v554_v43, %v254_v42  ;;  %s3046_s12 = scalar_lea.vmem %s3045_s11, 76800  ;;  %p3047_p7 = scmp.lt.s32.totalorder %s4641_s6, %s3045_s11 }
  0x74   : > { %v1146_v26 = vadd.f32 %v1145_v22, %v847_v17  ;;  %v555_v51 = vld [vmem:[#allocation5 + $0x60] sm:$0xff]  ;;  %v596_v52 = vld [vmem:[#allocation5 + $0x1a8] sm:$0xff]  ;;  %v893_v53 = vmul.f32 %v593_v47, %v293_v39  ;;  %v894_v54 = vmul.f32 %v594_v48, %v294_v40  ;;  %v297_v58 = vld [vmem:[%s3332_s27 + $0x1b0] sm:$0xff] }
  0x75   : > { %v597_v59 = vld [vmem:[#allocation5 + $0x1b0] sm:$0xff]  ;;  %v256_v60 = vld [vmem:[%s3332_s27 + $0x68] sm:$0xff]  ;;  %v896_v62 = vmul.f32 %v596_v52, %v296_v44  ;;  %v855_v0 = vmul.f32 %v555_v51, %v255_v50  ;;  %v298_v2 = vld [vmem:[%s3332_s27 + $0x1b8] sm:$0xff] }
  0x76   : > { %v1147_v30 = vadd.f32 %v1146_v26, %v848_v21  ;;  %v556_v61 = vld [vmem:[#allocation5 + $0x68] sm:$0xff]  ;;  %v1198_v63 = vadd.f32 %v894_v54, %v893_v53  ;;  %v598_v3 = vld [vmem:[#allocation5 + $0x1b8] sm:$0xff]  ;;  %v257_v4 = vld [vmem:[%s3332_s27 + $0x70] sm:$0xff]  ;;  %v897_v6 = vmul.f32 %v597_v59, %v297_v58 }
  0x77   : > { %v557_v5 = vld [vmem:[#allocation5 + $0x70] sm:$0xff]  ;;  %v856_v8 = vmul.f32 %v556_v61, %v256_v60  ;;  %v299_v10 = vld [vmem:[%s3332_s27 + $0x1c0] sm:$0xff]  ;;  %v258_v12 = vld [vmem:[%s3332_s27 + $0x78] sm:$0xff]  ;;  %v898_v14 = vmul.f32 %v598_v3, %v298_v2 }
  0x78   : > { %v1148_v34 = vadd.f32 %v1147_v30, %v849_v25  ;;  %v1199_v7 = vadd.f32 %v1198_v63, %v895_v55  ;;  %v599_v11 = vld [vmem:[#allocation5 + $0x1c0] sm:$0xff]  ;;  %v558_v13 = vld [vmem:[#allocation5 + $0x78] sm:$0xff]  ;;  %v857_v16 = vmul.f32 %v557_v5, %v257_v4  ;;  %v300_v18 = vld [vmem:[%s3332_s27 + $0x1c8] sm:$0xff] }
  0x79   : > { %v600_v19 = vld [vmem:[#allocation5 + $0x1c8] sm:$0xff]  ;;  %v259_v20 = vld [vmem:[%s3332_s27 + $0x80] sm:$0xff]  ;;  %v899_v22 = vmul.f32 %v599_v11, %v299_v10  ;;  %v858_v24 = vmul.f32 %v558_v13, %v258_v12  ;;  %v301_v26 = vld [vmem:[%s3332_s27 + $0x1d0] sm:$0xff] }
  0x7a   : > { %v1149_v38 = vadd.f32 %v1148_v34, %v850_v29  ;;  %v1200_v15 = vadd.f32 %v1199_v7, %v896_v62  ;;  %v559_v21 = vld [vmem:[#allocation5 + $0x80] sm:$0xff]  ;;  %v601_v27 = vld [vmem:[#allocation5 + $0x1d0] sm:$0xff]  ;;  %v260_v28 = vld [vmem:[%s3332_s27 + $0x88] sm:$0xff]  ;;  %v900_v30 = vmul.f32 %v600_v19, %v300_v18 }
  0x7b   : > { %v560_v29 = vld [vmem:[#allocation5 + $0x88] sm:$0xff]  ;;  %v859_v32 = vmul.f32 %v559_v21, %v259_v20  ;;  %v302_v34 = vld [vmem:[%s3332_s27 + $0x1d8] sm:$0xff]  ;;  %v261_v36 = vld [vmem:[%s3332_s27 + $0x90] sm:$0xff] }
  0x7c   : > { %v1150_v46 = vadd.f32 %v1149_v38, %v851_v33  ;;  %v1201_v23 = vadd.f32 %v1200_v15, %v897_v6  ;;  %v602_v35 = vld [vmem:[#allocation5 + $0x1d8] sm:$0xff]  ;;  %v901_v38 = vmul.f32 %v601_v27, %v301_v26  ;;  %v860_v40 = vmul.f32 %v560_v29, %v260_v28  ;;  %v303_v42 = vld [vmem:[%s3332_s27 + $0x1e0] sm:$0xff]  ;;  %v304_v51 = vld [vmem:[%s3332_s27 + $0x1e8] sm:$0xff] }
  0x7d   : > { %v603_v43 = vld [vmem:[#allocation5 + $0x1e0] sm:$0xff]  ;;  %v262_v44 = vld [vmem:[%s3332_s27 + $0x98] sm:$0xff]  ;;  %v604_v52 = vld [vmem:[#allocation5 + $0x1e8] sm:$0xff] }
  0x7e   : > { %v1151_v57 = vadd.f32 %v1150_v46, %v852_v37  ;;  %v1202_v31 = vadd.f32 %v1201_v23, %v898_v14  ;;  %v561_v37 = vld [vmem:[#allocation5 + $0x90] sm:$0xff]  ;;  %v902_v46 = vmul.f32 %v602_v35, %v302_v34  ;;  %v263_v48 = vld [vmem:[%s3332_s27 + $0xa0] sm:$0xff]  ;;  %v264_v53 = vld [vmem:[%s3332_s27 + $0xa8] sm:$0xff] }
  0x7f   : > { %v861_v49 = vmul.f32 %v561_v37, %v261_v36  ;;  %v563_v54 = vld [vmem:[#allocation5 + $0xa0] sm:$0xff]  ;;  %v564_v55 = vld [vmem:[#allocation5 + $0xa8] sm:$0xff]  ;;  %v305_v60 = vld [vmem:[%s3332_s27 + $0x1f0] sm:$0xff] }
  0x80   : > { %v1152_v1 = vadd.f32 %v1151_v57, %v853_v45  ;;  %v1203_v39 = vadd.f32 %v1202_v31, %v899_v22  ;;  %v562_v45 = vld [vmem:[#allocation5 + $0x98] sm:$0xff]  ;;  %v605_v61 = vld [vmem:[#allocation5 + $0x1f0] sm:$0xff]  ;;  %v268_v62 = vld [vmem:[%s3332_s27 + $0xc8] sm:$0xff]  ;;  %v863_v6 = vmul.f32 %v563_v54, %v263_v48 }
  0x81   : > { %v862_v58 = vmul.f32 %v562_v45, %v262_v44  ;;  %v265_v63 = vld [vmem:[%s3332_s27 + $0xb0] sm:$0xff]  ;;  %v568_v3 = vld [vmem:[#allocation5 + $0xc8] sm:$0xff]  ;;  %v267_v5 = vld [vmem:[%s3332_s27 + $0xc0] sm:$0xff]  ;;  %v905_v12 = vmul.f32 %v605_v61, %v305_v60 }
  0x82   : > { %v1153_v9 = vadd.f32 %v1152_v1, %v854_v56  ;;  %v1204_v47 = vadd.f32 %v1203_v39, %v900_v30  ;;  %v903_v56 = vmul.f32 %v603_v43, %v303_v42  ;;  %v269_v2 = vld [vmem:[%s3332_s27 + $0xd0] sm:$0xff]  ;;  %v266_v10 = vld [vmem:[%s3332_s27 + $0xb8] sm:$0xff]  ;;  %v307_v19 = vld [vmem:[%s3332_s27 + $0x200] sm:$0xff]  ;;  %v868_v21 = vmul.f32 %v568_v3, %v268_v62 }
  0x83   : > { %v569_v4 = vld [vmem:[#allocation5 + $0xd0] sm:$0xff]  ;;  %v270_v14 = vld [vmem:[%s3332_s27 + $0xd8] sm:$0xff]  ;;  %v607_v20 = vld [vmem:[#allocation5 + $0x200] sm:$0xff] }
  0x84   : > { %v1154_v17 = vadd.f32 %v1153_v9, %v855_v0  ;;  %v1205_v57 = vadd.f32 %v1204_v47, %v901_v38  ;;  %v904_v0 = vmul.f32 %v604_v52, %v304_v51  ;;  %v606_v9 = vld [vmem:[#allocation5 + $0x1f8] sm:$0xff]  ;;  %v565_v11 = vld [vmem:[#allocation5 + $0xb0] sm:$0xff]  ;;  %v869_v22 = vmul.f32 %v569_v4, %v269_v2  ;;  %v271_v26 = vld [vmem:[%s3332_s27 + $0xe0] sm:$0xff] }
  0x85   : > { %v570_v15 = vld [vmem:[#allocation5 + $0xd8] sm:$0xff]  ;;  %v571_v27 = vld [vmem:[#allocation5 + $0xe0] sm:$0xff]  ;;  %v865_v28 = vmul.f32 %v565_v11, %v265_v63  ;;  %v308_v30 = vld [vmem:[%s3332_s27 + $0x208] sm:$0xff]  ;;  %v907_v34 = vmul.f32 %v607_v20, %v307_v19 }
  0x86   : > { %v1155_v25 = vadd.f32 %v1154_v17, %v856_v8  ;;  %v1206_v1 = vadd.f32 %v1205_v57, %v902_v46  ;;  %v306_v8 = vld [vmem:[%s3332_s27 + $0x1f8] sm:$0xff]  ;;  %v864_v17 = vmul.f32 %v564_v55, %v264_v53  ;;  %v608_v31 = vld [vmem:[#allocation5 + $0x208] sm:$0xff]  ;;  %v871_v42 = vmul.f32 %v571_v27, %v271_v26  ;;  %v273_v46 = vld [vmem:[%s3332_s27 + $0xf0] sm:$0xff] }
  0x87   : > { %v566_v23 = vld [vmem:[#allocation5 + $0xb8] sm:$0xff]  ;;  %v272_v36 = vld [vmem:[%s3332_s27 + $0xe8] sm:$0xff]  ;;  %v1171_v43 = vadd.f32 %v869_v22, %v868_v21  ;;  %v908_v44 = vmul.f32 %v608_v31, %v308_v30  ;;  %v573_v47 = vld [vmem:[#allocation5 + $0xf0] sm:$0xff] }
  0x88   : > { %v1156_v33 = vadd.f32 %v1155_v25, %v857_v16  ;;  %v1207_v13 = vadd.f32 %v1206_v1, %v903_v56  ;;  %v567_v16 = vld [vmem:[#allocation5 + $0xc0] sm:$0xff]  ;;  %v572_v37 = vld [vmem:[#allocation5 + $0xe8] sm:$0xff]  ;;  %v866_v38 = vmul.f32 %v566_v23, %v266_v10  ;;  %v274_v56 = vld [vmem:[%s3332_s27 + $0xf8] sm:$0xff]  ;;  %v873_v61 = vmul.f32 %v573_v47, %v273_v46 }
  0x89   : > { %v872_v51 = vmul.f32 %v572_v37, %v272_v36  ;;  %v574_v57 = vld [vmem:[#allocation5 + $0xf8] sm:$0xff]  ;;  %v611_v60 = vld [vmem:[#allocation5 + $0x220] sm:$0xff]  ;;  %v312_v4 = vld [vmem:[%s3332_s27 + $0x228] sm:$0xff] }
  0x8a   : > { %v1157_v41 = vadd.f32 %v1156_v33, %v858_v24  ;;  %v906_v24 = vmul.f32 %v606_v9, %v306_v8  ;;  %v1208_v25 = vadd.f32 %v1207_v13, %v904_v0  ;;  %v867_v33 = vmul.f32 %v567_v16, %v267_v5  ;;  %v275_v1 = vld [vmem:[%s3332_s27 + $0x100] sm:$0xff]  ;;  %v313_v5 = vld [vmem:[%s3332_s27 + $0x230] sm:$0xff]  ;;  %v576_v13 = vld [vmem:[#allocation5 + $0x108] sm:$0xff] }
  0x8b   : > { %v575_v2 = vld [vmem:[#allocation5 + $0x100] sm:$0xff]  ;;  %v613_v9 = vld [vmem:[#allocation5 + $0x230] sm:$0xff]  ;;  %v318_v19 = vld [vmem:[%s3332_s27 + $0x258] sm:$0xff] }
  0x8c   : > { %v1158_v50 = vadd.f32 %v1157_v41, %v859_v32  ;;  %v870_v32 = vmul.f32 %v570_v15, %v270_v14  ;;  %v1209_v35 = vadd.f32 %v1208_v25, %v905_v12  ;;  %v609_v41 = vld [vmem:[#allocation5 + $0x210] sm:$0xff]  ;;  %v1167_v53 = vsel %vm1166_vm0, %v867_v33, 0.0  ;;  %v276_v12 = vld [vmem:[%s3332_s27 + $0x108] sm:$0xff]  ;;  %v314_v14 = vld [vmem:[%s3332_s27 + $0x238] sm:$0xff] }
  0x8d   : > { %v277_v15 = vld [vmem:[%s3332_s27 + $0x110] sm:$0xff]  ;;  %v319_v22 = vld [vmem:[%s3332_s27 + $0x260] sm:$0xff]  ;;  %v618_v23 = vld [vmem:[#allocation5 + $0x258] sm:$0xff]  ;;  %v913_v31 = vmul.f32 %v613_v9, %v313_v5 }
  0x8e   : > { %v1159_v59 = vadd.f32 %v1158_v50, %v860_v40  ;;  %v309_v40 = vld [vmem:[%s3332_s27 + $0x210] sm:$0xff]  ;;  %v1210_v45 = vadd.f32 %v1209_v35, %v906_v24  ;;  %v610_v50 = vld [vmem:[#allocation5 + $0x218] sm:$0xff]  ;;  %v1172_v52 = vadd.f32 %v1171_v43, %v870_v32  ;;  %v619_v24 = vld [vmem:[#allocation5 + $0x260] sm:$0xff] }
  0x8f   : > { %v909_v54 = vmul.f32 %v609_v41, %v309_v40  ;;  %v577_v16 = vld [vmem:[#allocation5 + $0x110] sm:$0xff]  ;;  %v315_v25 = vld [vmem:[%s3332_s27 + $0x240] sm:$0xff]  ;;  %v614_v27 = vld [vmem:[#allocation5 + $0x238] sm:$0xff]  ;;  %v918_v41 = vmul.f32 %v618_v23, %v318_v19 }
  0x90   : > { %v1160_v7 = vadd.f32 %v1159_v59, %v861_v49  ;;  %v310_v49 = vld [vmem:[%s3332_s27 + $0x218] sm:$0xff]  ;;  %v1211_v55 = vadd.f32 %v1210_v45, %v907_v34  ;;  %v311_v59 = vld [vmem:[%s3332_s27 + $0x220] sm:$0xff]  ;;  %v1173_v62 = vadd.f32 %v1172_v52, %v871_v42  ;;  %v317_v26 = vld [vmem:[%s3332_s27 + $0x250] sm:$0xff]  ;;  %v919_v42 = vmul.f32 %v619_v24, %v319_v22 }
  0x91   : > { %v910_v63 = vmul.f32 %v610_v50, %v310_v49  ;;  %v911_v10 = vmul.f32 %v611_v60, %v311_v59  ;;  %v578_v33 = vld [vmem:[#allocation5 + $0x118] sm:$0xff]  ;;  %v320_v34 = vld [vmem:[%s3332_s27 + $0x268] sm:$0xff]  ;;  %v615_v36 = vld [vmem:[#allocation5 + $0x240] sm:$0xff]  ;;  %v914_v43 = vmul.f32 %v614_v27, %v314_v14 }
  0x92   : > { %v1161_v18 = vadd.f32 %v1160_v7, %v862_v58  ;;  %v1212_v0 = vadd.f32 %v1211_v55, %v908_v44  ;;  %v874_v7 = vmul.f32 %v574_v57, %v274_v56  ;;  %v1174_v8 = vadd.f32 %v1173_v62, %v872_v51  ;;  %v620_v35 = vld [vmem:[#allocation5 + $0x268] sm:$0xff]  ;;  %v617_v37 = vld [vmem:[#allocation5 + $0x250] sm:$0xff]  ;;  %v579_v45 = vld [vmem:[#allocation5 + $0x120] sm:$0xff] }
  0x93   : > { %v321_v46 = vld [vmem:[%s3332_s27 + $0x270] sm:$0xff]  ;;  %v616_v49 = vld [vmem:[#allocation5 + $0x248] sm:$0xff]  ;;  %v917_v55 = vmul.f32 %v617_v37, %v317_v26  ;;  %v622_v59 = vld [vmem:[#allocation5 + $0x278] sm:$0xff] }
  0x94   : > { %v1162_v29 = vadd.f32 %v1161_v18, %v863_v6  ;;  %v612_v6 = vld [vmem:[#allocation5 + $0x228] sm:$0xff]  ;;  %v1213_v11 = vadd.f32 %v1212_v0, %v909_v54  ;;  %v1175_v18 = vadd.f32 %v1174_v8, %v873_v61  ;;  %v621_v47 = vld [vmem:[#allocation5 + $0x270] sm:$0xff]  ;;  %v915_v54 = vmul.f32 %v615_v36, %v315_v25  ;;  %v623_v5 = vld [vmem:[#allocation5 + $0x280] sm:$0xff] }
  0x95   : > { %v912_v20 = vmul.f32 %v612_v6, %v312_v4  ;;  %v280_v50 = vld [vmem:[%s3332_s27 + $0x128] sm:$0xff]  ;;  %v281_v60 = vld [vmem:[%s3332_s27 + $0x130] sm:$0xff]  ;;  %v1225_v0 = vadd.f32 %v919_v42, %v918_v41  ;;  %v323_v4 = vld [vmem:[%s3332_s27 + $0x280] sm:$0xff] }
  0x96   : > { %v1163_v39 = vadd.f32 %v1162_v29, %v864_v17  ;;  %v875_v17 = vmul.f32 %v575_v2, %v275_v1  ;;  %v1214_v21 = vadd.f32 %v1213_v11, %v910_v63  ;;  %v876_v29 = vmul.f32 %v576_v13, %v276_v12  ;;  %v580_v57 = vld [vmem:[#allocation5 + $0x128] sm:$0xff]  ;;  %v282_v6 = vld [vmem:[%s3332_s27 + $0x138] sm:$0xff]  ;;  %v583_v22 = vld [vmem:[#allocation5 + $0x140] sm:$0xff] }
  0x97   : > { %v1176_v30 = vadd.f32 %v1175_v18, %v874_v7  ;;  %v921_v63 = vmul.f32 %v621_v47, %v321_v46  ;;  %v880_v7 = vmul.f32 %v580_v57, %v280_v50  ;;  %v1221_v12 = vsel %vm1166_vm0, %v917_v55, 0.0  ;;  %v582_v13 = vld [vmem:[#allocation5 + $0x138] sm:$0xff]  ;;  %v324_v14 = vld [vmem:[%s3332_s27 + $0x288] sm:$0xff]  ;;  %v325_v23 = vld [vmem:[%s3332_s27 + $0x290] sm:$0xff] }
  0x98   : > { %v1164_v48 = vadd.f32 %v1163_v39, %v865_v28  ;;  %v278_v28 = vld [vmem:[%s3332_s27 + $0x118] sm:$0xff]  ;;  %v1215_v32 = vadd.f32 %v1214_v21, %v911_v10  ;;  %v877_v39 = vmul.f32 %v577_v16, %v277_v15  ;;  %v624_v15 = vld [vmem:[#allocation5 + $0x288] sm:$0xff]  ;;  %v283_v16 = vld [vmem:[%s3332_s27 + $0x140] sm:$0xff]  ;;  %v923_v19 = vmul.f32 %v623_v5, %v323_v4 }
  0x99   : > { %v1177_v40 = vadd.f32 %v1176_v30, %v875_v17  ;;  %v878_v51 = vmul.f32 %v578_v33, %v278_v28  ;;  %v625_v24 = vld [vmem:[#allocation5 + $0x290] sm:$0xff]  ;;  %v284_v25 = vld [vmem:[%s3332_s27 + $0x148] sm:$0xff]  ;;  %v882_v26 = vmul.f32 %v582_v13, %v282_v6  ;;  %v924_v28 = vmul.f32 %v624_v15, %v324_v14  ;;  %v626_v33 = vld [vmem:[#allocation5 + $0x298] sm:$0xff] }
  0x9a   : > { %v1165_v58 = vadd.f32 %v1164_v48, %v866_v38  ;;  %v279_v38 = vld [vmem:[%s3332_s27 + $0x120] sm:$0xff]  ;;  %v1216_v44 = vadd.f32 %v1215_v32, %v912_v20  ;;  %v316_v48 = vld [vmem:[%s3332_s27 + $0x248] sm:$0xff]  ;;  %v326_v32 = vld [vmem:[%s3332_s27 + $0x298] sm:$0xff]  ;;  %v883_v36 = vmul.f32 %v583_v22, %v283_v16 }
  0x9b   : > { %v1178_v52 = vadd.f32 %v1177_v40, %v876_v29  ;;  %v879_v61 = vmul.f32 %v579_v45, %v279_v38  ;;  %v916_v1 = vmul.f32 %v616_v49, %v316_v48  ;;  %v925_v38 = vmul.f32 %v625_v24, %v325_v23  ;;  %v286_v40 = vld [vmem:[%s3332_s27 + $0x158] sm:$0xff]  ;;  %v327_v41 = vld [vmem:[%s3332_s27 + $0x2a0] sm:$0xff]  ;;  %v344_v48 = vld [vmem:[%s3332_s27 + $0x328] sm:$0xff] }
  0x9c   : > { %v1168_v3 = vadd.f32 %v1167_v53, %v1165_v58  ;;  %v920_v53 = vmul.f32 %v620_v35, %v320_v34  ;;  %v1217_v56 = vadd.f32 %v1216_v44, %v913_v31  ;;  %v322_v58 = vld [vmem:[%s3332_s27 + $0x278] sm:$0xff]  ;;  %v584_v31 = vld [vmem:[#allocation5 + $0x148] sm:$0xff]  ;;  %v285_v34 = vld [vmem:[%s3332_s27 + $0x150] sm:$0xff]  ;;  %v926_v46 = vmul.f32 %v626_v33, %v326_v32 }
  0x9d   : > { %v1179_v62 = vadd.f32 %v1178_v52, %v877_v39  ;;  %v922_v9 = vmul.f32 %v622_v59, %v322_v58  ;;  %v585_v35 = vld [vmem:[#allocation5 + $0x150] sm:$0xff]  ;;  %v627_v42 = vld [vmem:[#allocation5 + $0x2a0] sm:$0xff]  ;;  %v884_v44 = vmul.f32 %v584_v31, %v284_v25  ;;  %v644_v50 = vld [vmem:[#allocation5 + $0x328] sm:$0xff] }
  0x9e   : > { %1169 = vadd.xlane.f32.xlu0 %v1168_v3  ;;  %v1218_v2 = vadd.f32 %v1217_v56, %v914_v43  ;;  %v581_v3 = vld [vmem:[#allocation5 + $0x130] sm:$0xff]  ;;  %v1226_v10 = vadd.f32 %v1225_v0, %v920_v53  ;;  %v343_v43 = vld [vmem:[%s3332_s27 + $0x320] sm:$0xff]  ;;  %v328_v52 = vld [vmem:[%s3332_s27 + $0x2a8] sm:$0xff]  ;;  %v885_v55 = vmul.f32 %v585_v35, %v285_v34  ;;  %v927_v57 = vmul.f32 %v627_v42, %v327_v41 }
  0x9f   : > { %v1180_v8 = vadd.f32 %v1179_v62, %v878_v51  ;;  %v881_v17 = vmul.f32 %v581_v3, %v281_v60  ;;  %v643_v49 = vld [vmem:[#allocation5 + $0x320] sm:$0xff]  ;;  %v586_v51 = vld [vmem:[#allocation5 + $0x158] sm:$0xff]  ;;  %v628_v53 = vld [vmem:[#allocation5 + $0x2a8] sm:$0xff] }
  0xa0   : > { %v1219_v11 = vadd.f32 %v1218_v2, %v915_v54  ;;  %v1227_v20 = vadd.f32 %v1226_v10, %v921_v63  ;;  %v287_v54 = vld [vmem:[%s3332_s27 + $0x160] sm:$0xff]  ;;  %v345_v59 = vld [vmem:[%s3332_s27 + $0x330] sm:$0xff]  ;;  %v943_v0 = vmul.f32 %v643_v49, %v343_v43  ;;  %v288_v2 = vld [vmem:[%s3332_s27 + $0x168] sm:$0xff]  ;;  %v886_v3 = vmul.f32 %v586_v51, %v286_v40 }
  0xa1   : > { %v1181_v18 = vadd.f32 %v1180_v8, %v879_v61  ;;  %v645_v60 = vld [vmem:[#allocation5 + $0x330] sm:$0xff]  ;;  %v587_v61 = vld [vmem:[#allocation5 + $0x160] sm:$0xff]  ;;  %v928_v5 = vmul.f32 %v628_v53, %v328_v52  ;;  %v646_v8 = vld [vmem:[#allocation5 + $0x338] sm:$0xff] }
  0xa2   : > { %v1220_v21 = vadd.f32 %v1219_v11, %v916_v1  ;;  %v1228_v29 = vadd.f32 %v1227_v20, %v922_v9  ;;  %v329_v62 = vld [vmem:[%s3332_s27 + $0x2b0] sm:$0xff]  ;;  %v944_v1 = vmul.f32 %v644_v50, %v344_v48  ;;  %v588_v9 = vld [vmem:[#allocation5 + $0x168] sm:$0xff]  ;;  %v330_v10 = vld [vmem:[%s3332_s27 + $0x2b8] sm:$0xff]  ;;  %v887_v14 = vmul.f32 %v587_v61, %v287_v54 }
  0xa3   : > { %v1182_v27 = vadd.f32 %v1181_v18, %v880_v7  ;;  %v629_v63 = vld [vmem:[#allocation5 + $0x2b0] sm:$0xff]  ;;  %v346_v7 = vld [vmem:[%s3332_s27 + $0x338] sm:$0xff]  ;;  %v347_v18 = vld [vmem:[%s3332_s27 + $0x340] sm:$0xff] }
  0xa4   : > { %v1222_v30 = vadd.f32 %v1221_v12, %v1220_v21  ;;  %v1229_v39 = vadd.f32 %v1228_v29, %v923_v19  ;;  %v630_v11 = vld [vmem:[#allocation5 + $0x2b8] sm:$0xff]  ;;  %v945_v12 = vmul.f32 %v645_v60, %v345_v59  ;;  %v289_v13 = vld [vmem:[%s3332_s27 + $0x170] sm:$0xff]  ;;  %v929_v16 = vmul.f32 %v629_v63, %v329_v62  ;;  %v647_v19 = vld [vmem:[#allocation5 + $0x340] sm:$0xff] }
  0xa5   : > { %v1183_v37 = vadd.f32 %v1182_v27, %v881_v17  ;;  %v290_v20 = vld [vmem:[%s3332_s27 + $0x178] sm:$0xff]  ;;  %v589_v21 = vld [vmem:[#allocation5 + $0x170] sm:$0xff]  ;;  %v331_v22 = vld [vmem:[%s3332_s27 + $0x2c0] sm:$0xff]  ;;  %v946_v24 = vmul.f32 %v646_v8, %v346_v7  ;;  %v1252_v25 = vadd.f32 %v944_v1, %v943_v0  ;;  %v888_v27 = vmul.f32 %v588_v9, %v288_v2 }
  0xa6   : > { %1223 = vadd.xlane.f32.xlu1 %v1222_v30  ;;  %v1230_v47 = vadd.f32 %v1229_v39, %v924_v28  ;;  %v631_v23 = vld [vmem:[#allocation5 + $0x2c0] sm:$0xff]  ;;  %v930_v29 = vmul.f32 %v630_v11, %v330_v10  ;;  %v348_v31 = vld [vmem:[%s3332_s27 + $0x348] sm:$0xff]  ;;  %v590_v34 = vld [vmem:[#allocation5 + $0x178] sm:$0xff]  ;;  %v889_v40 = vmul.f32 %v589_v21, %v289_v13 }
  0xa7   : > { %v1184_v45 = vadd.f32 %v1183_v37, %v882_v26  ;;  %v292_v26 = vld [vmem:[%s3332_s27 + $0x188] sm:$0xff]  ;;  %v291_v33 = vld [vmem:[%s3332_s27 + $0x180] sm:$0xff]  ;;  %v947_v37 = vmul.f32 %v647_v19, %v347_v18  ;;  %v931_v42 = vmul.f32 %v631_v23, %v331_v22  ;;  %v633_v48 = vld [vmem:[#allocation5 + $0x2d0] sm:$0xff]  ;;  %v890_v51 = vmul.f32 %v590_v34, %v290_v20 }
  0xa8   : > { %v1231_v58 = vadd.f32 %v1230_v47, %v925_v38  ;;  %v648_v32 = vld [vmem:[#allocation5 + $0x348] sm:$0xff]  ;;  %v1253_v38 = vadd.f32 %v1252_v25, %v945_v12  ;;  %v333_v47 = vld [vmem:[%s3332_s27 + $0x2d0] sm:$0xff]  ;;  %v634_v59 = vld [vmem:[#allocation5 + $0x2d8] sm:$0xff] }
  0xa9   : > { %v1185_v56 = vadd.f32 %v1184_v45, %v883_v36  ;;  %v332_v35 = vld [vmem:[%s3332_s27 + $0x2c8] sm:$0xff]  ;;  %v649_v45 = vld [vmem:[#allocation5 + $0x350] sm:$0xff]  ;;  %v948_v49 = vmul.f32 %v648_v32, %v348_v31  ;;  %v933_v0 = vmul.f32 %v633_v48, %v333_v47  ;;  %v351_v2 = vld [vmem:[%s3332_s27 + $0x360] sm:$0xff] }
  0xaa   : > { %v1232_v6 = vadd.f32 %v1231_v58, %v926_v46  ;;  %v632_v36 = vld [vmem:[#allocation5 + $0x2c8] sm:$0xff]  ;;  %v591_v46 = vld [vmem:[#allocation5 + $0x180] sm:$0xff]  ;;  %v1254_v50 = vadd.f32 %v1253_v38, %v946_v24  ;;  %v334_v58 = vld [vmem:[%s3332_s27 + $0x2d8] sm:$0xff] }
  0xab   : > { %v1186_v4 = vadd.f32 %v1185_v56, %v884_v44  ;;  %v592_v39 = vld [vmem:[#allocation5 + $0x188] sm:$0xff]  ;;  %v349_v44 = vld [vmem:[%s3332_s27 + $0x350] sm:$0xff]  ;;  %v932_v53 = vmul.f32 %v632_v36, %v332_v35  ;;  %v650_v56 = vld [vmem:[#allocation5 + $0x358] sm:$0xff]  ;;  %v891_v62 = vmul.f32 %v591_v46, %v291_v33  ;;  %v934_v11 = vmul.f32 %v634_v59, %v334_v58 }
  0xac   : > { %v1233_v17 = vadd.f32 %v1232_v6, %v927_v57  ;;  %v892_v57 = vmul.f32 %v592_v39, %v292_v26  ;;  %v949_v60 = vmul.f32 %v649_v45, %v349_v44  ;;  %v1255_v61 = vadd.f32 %v1254_v50, %v947_v37  ;;  %v635_v6 = vld [vmem:[#allocation5 + $0x2e0] sm:$0xff]  ;;  %v636_v10 = vld [vmem:[#allocation5 + $0x2e8] sm:$0xff]  ;;  %v653_v18 = vld [vmem:[#allocation5 + $0x370] sm:$0xff] }
  0xad   : > { %v1187_v15 = vadd.f32 %v1186_v4, %v885_v55  ;;  %v350_v55 = vld [vmem:[%s3332_s27 + $0x358] sm:$0xff]  ;;  %v335_v4 = vld [vmem:[%s3332_s27 + $0x2e0] sm:$0xff]  ;;  %v352_v13 = vld [vmem:[%s3332_s27 + $0x368] sm:$0xff] }
  0xae   : > { %v1234_v30 = vadd.f32 %v1233_v17, %v928_v5  ;;  %v336_v5 = vld [vmem:[%s3332_s27 + $0x2e8] sm:$0xff]  ;;  %v950_v7 = vmul.f32 %v650_v56, %v350_v55  ;;  %v1256_v8 = vadd.f32 %v1255_v61, %v948_v49  ;;  %v353_v17 = vld [vmem:[%s3332_s27 + $0x370] sm:$0xff]  ;;  %v935_v23 = vmul.f32 %v635_v6, %v335_v4  ;;  %v654_v36 = vld [vmem:[#allocation5 + $0x378] sm:$0xff] }
  0xaf   : > { %v1188_v28 = vadd.f32 %v1187_v15, %v886_v3  ;;  %v651_v3 = vld [vmem:[#allocation5 + $0x360] sm:$0xff]  ;;  %v1194_v15 = vsel %vm1166_vm0, %v892_v57, 0.0  ;;  %v368_v21 = vld [vmem:[%s3332_s27 + $0x3e8] sm:$0xff]  ;;  %v369_v25 = vld [vmem:[%s3332_s27 + $0x3f0] sm:$0xff]  ;;  %v936_v34 = vmul.f32 %v636_v10, %v336_v5 }
  0xb0   : > { %v1235_v43 = vadd.f32 %v1234_v30, %v929_v16  ;;  %v337_v16 = vld [vmem:[%s3332_s27 + $0x2f0] sm:$0xff]  ;;  %v951_v19 = vmul.f32 %v651_v3, %v351_v2  ;;  %v1257_v20 = vadd.f32 %v1256_v8, %v949_v60  ;;  %v668_v26 = vld [vmem:[#allocation5 + $0x3e8] sm:$0xff]  ;;  %v354_v30 = vld [vmem:[%s3332_s27 + $0x378] sm:$0xff] }
  0xb1   : > { %v1189_v41 = vadd.f32 %v1188_v28, %v887_v14  ;;  %v652_v14 = vld [vmem:[#allocation5 + $0x368] sm:$0xff]  ;;  %v338_v28 = vld [vmem:[%s3332_s27 + $0x2f8] sm:$0xff]  ;;  %v339_v39 = vld [vmem:[%s3332_s27 + $0x300] sm:$0xff]  ;;  %v968_v44 = vmul.f32 %v668_v26, %v368_v21  ;;  %v954_v55 = vmul.f32 %v654_v36, %v354_v30 }
  0xb2   : > { %v1236_v54 = vadd.f32 %v1235_v43, %v930_v29  ;;  %v637_v29 = vld [vmem:[#allocation5 + $0x2f0] sm:$0xff]  ;;  %v952_v31 = vmul.f32 %v652_v14, %v352_v13  ;;  %v1258_v32 = vadd.f32 %v1257_v20, %v950_v7  ;;  %v370_v37 = vld [vmem:[%s3332_s27 + $0x3f8] sm:$0xff]  ;;  %v655_v48 = vld [vmem:[#allocation5 + $0x380] sm:$0xff] }
  0xb3   : > { %v1190_v52 = vadd.f32 %v1189_v41, %v888_v27  ;;  %v669_v27 = vld [vmem:[#allocation5 + $0x3f0] sm:$0xff]  ;;  %v670_v38 = vld [vmem:[#allocation5 + $0x3f8] sm:$0xff]  ;;  %v355_v41 = vld [vmem:[%s3332_s27 + $0x380] sm:$0xff]  ;;  %v937_v46 = vmul.f32 %v637_v29, %v337_v16 }
  0xb4   : > { %v1237_v1 = vadd.f32 %v1236_v54, %v931_v42  ;;  %v953_v42 = vmul.f32 %v653_v18, %v353_v17  ;;  %v1259_v43 = vadd.f32 %v1258_v32, %v951_v19  ;;  %v969_v45 = vmul.f32 %v669_v27, %v369_v25  ;;  %v371_v49 = vld [vmem:[%s3332_s27 + $0x400] sm:$0xff]  ;;  %v356_v54 = vld [vmem:[%s3332_s27 + $0x388] sm:$0xff]  ;;  %v657_v8 = vld [vmem:[#allocation5 + $0x390] sm:$0xff] }
  0xb5   : > { %v1191_v63 = vadd.f32 %v1190_v52, %v889_v40  ;;  %v638_v40 = vld [vmem:[#allocation5 + $0x2f8] sm:$0xff]  ;;  %v671_v50 = vld [vmem:[#allocation5 + $0x400] sm:$0xff]  ;;  %v970_v57 = vmul.f32 %v670_v38, %v370_v37  ;;  %v656_v60 = vld [vmem:[#allocation5 + $0x388] sm:$0xff]  ;;  %v955_v2 = vmul.f32 %v655_v48, %v355_v41 }
  0xb6   : > { %v1238_v12 = vadd.f32 %v1237_v1, %v932_v53  ;;  %v342_v52 = vld [vmem:[%s3332_s27 + $0x318] sm:$0xff]  ;;  %v639_v53 = vld [vmem:[#allocation5 + $0x300] sm:$0xff]  ;;  %v1260_v56 = vadd.f32 %v1259_v43, %v952_v31  ;;  %v938_v58 = vmul.f32 %v638_v40, %v338_v28  ;;  %v372_v61 = vld [vmem:[%s3332_s27 + $0x408] sm:$0xff]  ;;  %v971_v4 = vmul.f32 %v671_v50, %v371_v49 }
  0xb7   : > { %v1192_v9 = vadd.f32 %v1191_v63, %v890_v51  ;;  %v340_v51 = vld [vmem:[%s3332_s27 + $0x308] sm:$0xff]  ;;  %v357_v1 = vld [vmem:[%s3332_s27 + $0x390] sm:$0xff]  ;;  %v1279_v5 = vadd.f32 %v969_v45, %v968_v44  ;;  %v939_v6 = vmul.f32 %v639_v53, %v339_v39  ;;  %v358_v13 = vld [vmem:[%s3332_s27 + $0x398] sm:$0xff]  ;;  %v956_v14 = vmul.f32 %v656_v60, %v356_v54 }
  0xb8   : > { %v1239_v24 = vadd.f32 %v1238_v12, %v933_v0  ;;  %v640_v63 = vld [vmem:[#allocation5 + $0x308] sm:$0xff]  ;;  %v642_v0 = vld [vmem:[#allocation5 + $0x318] sm:$0xff]  ;;  %v1261_v3 = vadd.f32 %v1260_v56, %v953_v42  ;;  %v673_v10 = vld [vmem:[#allocation5 + $0x410] sm:$0xff]  ;;  %v957_v25 = vmul.f32 %v657_v8, %v357_v1 }
  0xb9   : > { %v1193_v22 = vadd.f32 %v1192_v9, %v891_v62  ;;  %v672_v62 = vld [vmem:[#allocation5 + $0x408] sm:$0xff]  ;;  %v373_v9 = vld [vmem:[%s3332_s27 + $0x410] sm:$0xff]  ;;  %v1280_v17 = vadd.f32 %v1279_v5, %v970_v57  ;;  %v940_v18 = vmul.f32 %v640_v63, %v340_v51  ;;  %v942_v19 = vmul.f32 %v642_v0, %v342_v52  ;;  %v658_v21 = vld [vmem:[#allocation5 + $0x398] sm:$0xff] }
  0xba   : > { %v1240_v35 = vadd.f32 %v1239_v24, %v934_v11  ;;  %v341_v11 = vld [vmem:[%s3332_s27 + $0x310] sm:$0xff]  ;;  %v972_v16 = vmul.f32 %v672_v62, %v372_v61  ;;  %v359_v24 = vld [vmem:[%s3332_s27 + $0x3a0] sm:$0xff]  ;;  %v973_v27 = vmul.f32 %v673_v10, %v373_v9  ;;  %v660_v36 = vld [vmem:[#allocation5 + $0x3a8] sm:$0xff]  ;;  %v958_v37 = vmul.f32 %v658_v21, %v358_v13 }
  0xbb   : > { %v1195_v33 = vadd.f32 %v1194_v15, %v1193_v22  ;;  %v641_v12 = vld [vmem:[#allocation5 + $0x310] sm:$0xff]  ;;  %v1262_v15 = vadd.f32 %v1261_v3, %v954_v55  ;;  %v374_v22 = vld [vmem:[%s3332_s27 + $0x418] sm:$0xff]  ;;  %v1281_v28 = vadd.f32 %v1280_v17, %v971_v4  ;;  %v659_v31 = vld [vmem:[#allocation5 + $0x3a0] sm:$0xff]  ;;  %v1248_v42 = vsel %vm1166_vm0, %v942_v19, 0.0 }
  0xbc   : > { %v1241_v47 = vadd.f32 %v1240_v35, %v935_v23  ;;  %v674_v23 = vld [vmem:[#allocation5 + $0x418] sm:$0xff]  ;;  %v941_v29 = vmul.f32 %v641_v12, %v341_v11  ;;  %v375_v32 = vld [vmem:[%s3332_s27 + $0x420] sm:$0xff]  ;;  %v361_v35 = vld [vmem:[%s3332_s27 + $0x3b0] sm:$0xff] }
  0xbd   : > { %1196 = vadd.xlane.f32.xlu0 %v1195_v33  ;;  %v1263_v26 = vadd.f32 %v1262_v15, %v955_v2  ;;  %v675_v33 = vld [vmem:[#allocation5 + $0x420] sm:$0xff]  ;;  %v974_v39 = vmul.f32 %v674_v23, %v374_v22  ;;  %v1282_v40 = vadd.f32 %v1281_v28, %v972_v16  ;;  %v661_v43 = vld [vmem:[#allocation5 + $0x3b0] sm:$0xff]  ;;  %v376_v44 = vld [vmem:[%s3332_s27 + $0x428] sm:$0xff] }
  0xbe   : > { %v1242_v59 = vadd.f32 %v1241_v47, %v936_v34  ;;  %v360_v34 = vld [vmem:[%s3332_s27 + $0x3a8] sm:$0xff]  ;;  %v959_v47 = vmul.f32 %v659_v31, %v359_v24  ;;  %v377_v49 = vld [vmem:[%s3332_s27 + $0x430] sm:$0xff]  ;;  %v975_v51 = vmul.f32 %v675_v33, %v375_v32  ;;  %v394_v55 = vld [vmem:[%s3332_s27 + $0x4b8] sm:$0xff]  ;;  %v961_v2 = vmul.f32 %v661_v43, %v361_v35 }
  0xbf   : > { %v1264_v38 = vadd.f32 %v1263_v26, %v956_v14  ;;  %v676_v45 = vld [vmem:[#allocation5 + $0x428] sm:$0xff]  ;;  %v677_v50 = vld [vmem:[#allocation5 + $0x430] sm:$0xff]  ;;  %v1283_v52 = vadd.f32 %v1282_v40, %v973_v27  ;;  %v694_v57 = vld [vmem:[#allocation5 + $0x4b8] sm:$0xff]  ;;  %v960_v60 = vmul.f32 %v660_v36, %v360_v34 }
  0xc0   : > { %v1243_v7 = vadd.f32 %v1242_v59, %v937_v46  ;;  %v362_v46 = vld [vmem:[%s3332_s27 + $0x3b8] sm:$0xff]  ;;  %v393_v53 = vld [vmem:[%s3332_s27 + $0x4b0] sm:$0xff]  ;;  %v976_v63 = vmul.f32 %v676_v45, %v376_v44  ;;  %v977_v4 = vmul.f32 %v677_v50, %v377_v49  ;;  %v395_v5 = vld [vmem:[%s3332_s27 + $0x4c0] sm:$0xff]  ;;  %v994_v13 = vmul.f32 %v694_v57, %v394_v55 }
  0xc1   : > { %v1265_v48 = vadd.f32 %v1264_v38, %v957_v25  ;;  %v693_v56 = vld [vmem:[#allocation5 + $0x4b0] sm:$0xff]  ;;  %v662_v59 = vld [vmem:[#allocation5 + $0x3b8] sm:$0xff]  ;;  %v1284_v0 = vadd.f32 %v1283_v52, %v974_v39  ;;  %v379_v9 = vld [vmem:[%s3332_s27 + $0x440] sm:$0xff] }
  0xc2   : > { %v1244_v20 = vadd.f32 %v1243_v7, %v938_v58  ;;  %v363_v58 = vld [vmem:[%s3332_s27 + $0x3c0] sm:$0xff]  ;;  %v378_v62 = vld [vmem:[%s3332_s27 + $0x438] sm:$0xff]  ;;  %v993_v12 = vmul.f32 %v693_v56, %v393_v53  ;;  %v364_v14 = vld [vmem:[%s3332_s27 + $0x3c8] sm:$0xff]  ;;  %v962_v15 = vmul.f32 %v662_v59, %v362_v46 }
  0xc3   : > { %v1266_v61 = vadd.f32 %v1265_v48, %v958_v37  ;;  %v678_v3 = vld [vmem:[#allocation5 + $0x438] sm:$0xff]  ;;  %v663_v7 = vld [vmem:[#allocation5 + $0x3c0] sm:$0xff]  ;;  %v1285_v11 = vadd.f32 %v1284_v0, %v975_v51  ;;  %v396_v16 = vld [vmem:[%s3332_s27 + $0x4c8] sm:$0xff] }
  0xc4   : > { %v1245_v30 = vadd.f32 %v1244_v20, %v939_v6  ;;  %v695_v6 = vld [vmem:[#allocation5 + $0x4c0] sm:$0xff]  ;;  %v696_v17 = vld [vmem:[#allocation5 + $0x4c8] sm:$0xff]  ;;  %v978_v22 = vmul.f32 %v678_v3, %v378_v62  ;;  %v365_v25 = vld [vmem:[%s3332_s27 + $0x3d0] sm:$0xff]  ;;  %v963_v26 = vmul.f32 %v663_v7, %v363_v58  ;;  %v1306_v38 = vadd.f32 %v994_v13, %v993_v12 }
  0xc5   : > { %v1267_v8 = vadd.f32 %v1266_v61, %v959_v47  ;;  %v679_v10 = vld [vmem:[#allocation5 + $0x440] sm:$0xff]  ;;  %v380_v20 = vld [vmem:[%s3332_s27 + $0x448] sm:$0xff]  ;;  %v1286_v23 = vadd.f32 %v1285_v11, %v976_v63  ;;  %v995_v24 = vmul.f32 %v695_v6, %v395_v5  ;;  %v397_v28 = vld [vmem:[%s3332_s27 + $0x4d0] sm:$0xff]  ;;  %v996_v37 = vmul.f32 %v696_v17, %v396_v16 }
  0xc6   : > { %v1246_v41 = vadd.f32 %v1245_v30, %v940_v18  ;;  %v664_v18 = vld [vmem:[#allocation5 + $0x3c8] sm:$0xff]  ;;  %v979_v27 = vmul.f32 %v679_v10, %v379_v9  ;;  %v366_v30 = vld [vmem:[%s3332_s27 + $0x3d8] sm:$0xff]  ;;  %v367_v31 = vld [vmem:[%s3332_s27 + $0x3e0] sm:$0xff] }
  0xc7   : > { %v1268_v19 = vadd.f32 %v1267_v8, %v960_v60  ;;  %v680_v21 = vld [vmem:[#allocation5 + $0x448] sm:$0xff]  ;;  %v665_v32 = vld [vmem:[#allocation5 + $0x3d0] sm:$0xff]  ;;  %v1287_v36 = vadd.f32 %v1286_v23, %v977_v4  ;;  %v666_v39 = vld [vmem:[#allocation5 + $0x3d8] sm:$0xff]  ;;  %v964_v40 = vmul.f32 %v664_v18, %v364_v14  ;;  %v1307_v50 = vadd.f32 %v1306_v38, %v995_v24 }
  0xc8   : > { %v1247_v54 = vadd.f32 %v1246_v41, %v941_v29  ;;  %v697_v29 = vld [vmem:[#allocation5 + $0x4d0] sm:$0xff]  ;;  %v980_v41 = vmul.f32 %v680_v21, %v380_v20  ;;  %v698_v43 = vld [vmem:[#allocation5 + $0x4d8] sm:$0xff]  ;;  %v667_v44 = vld [vmem:[#allocation5 + $0x3e0] sm:$0xff]  ;;  %v965_v51 = vmul.f32 %v665_v32, %v365_v25  ;;  %v966_v61 = vmul.f32 %v666_v39, %v366_v30 }
  0xc9   : > { %v1269_v33 = vadd.f32 %v1268_v19, %v961_v2  ;;  %v381_v34 = vld [vmem:[%s3332_s27 + $0x450] sm:$0xff]  ;;  %v382_v46 = vld [vmem:[%s3332_s27 + $0x458] sm:$0xff]  ;;  %v1288_v48 = vadd.f32 %v1287_v36, %v978_v22  ;;  %v997_v49 = vmul.f32 %v697_v29, %v397_v28  ;;  %v399_v53 = vld [vmem:[%s3332_s27 + $0x4e0] sm:$0xff]  ;;  %v1308_v60 = vadd.f32 %v1307_v50, %v996_v37 }
  0xca   : > { %v1249_v1 = vadd.f32 %v1248_v42, %v1247_v54  ;;  %v681_v35 = vld [vmem:[#allocation5 + $0x450] sm:$0xff]  ;;  %v398_v42 = vld [vmem:[%s3332_s27 + $0x4d8] sm:$0xff]  ;;  %v699_v54 = vld [vmem:[#allocation5 + $0x4e0] sm:$0xff]  ;;  %v967_v62 = vmul.f32 %v667_v44, %v367_v31  ;;  %v3117_v8 = vmov 0.0|0.0  }
  0xcb   : > { %v1270_v45 = vadd.f32 %v1269_v33, %v962_v15  ;;  %v682_v47 = vld [vmem:[#allocation5 + $0x458] sm:$0xff]  ;;  %v981_v52 = vmul.f32 %v681_v35, %v381_v34  ;;  %v383_v56 = vld [vmem:[%s3332_s27 + $0x460] sm:$0xff]  ;;  %v1289_v58 = vadd.f32 %v1288_v48, %v979_v27  ;;  %v998_v59 = vmul.f32 %v698_v43, %v398_v42  ;;  %v400_v0 = vld [vmem:[%s3332_s27 + $0x4e8] sm:$0xff]  ;;  %2554 = vmatprep.subr.bf16.mxu0 %v3117_v8 }
  0xcc   : > { %1250 = vadd.xlane.f32.xlu1 %v1249_v1  ;;  %v683_v57 = vld [vmem:[#allocation5 + $0x460] sm:$0xff]  ;;  %v982_v63 = vmul.f32 %v682_v47, %v382_v46  ;;  %v700_v1 = vld [vmem:[#allocation5 + $0x4e8] sm:$0xff]  ;;  %v999_v6 = vmul.f32 %v699_v54, %v399_v53  ;;  %v1309_v7 = vadd.f32 %v1308_v60, %v997_v49  ;;  %v401_v10 = vld [vmem:[%s3332_s27 + $0x4f0] sm:$0xff]  ;;  %v1275_v18 = vsel %vm1166_vm0, %v967_v62, 0.0 }
  0xcd   : > { %v1271_v55 = vadd.f32 %v1270_v45, %v963_v26  ;;  %v384_v3 = vld [vmem:[%s3332_s27 + $0x468] sm:$0xff]  ;;  %v1290_v5 = vadd.f32 %v1289_v58, %v980_v41  ;;  %v983_v9 = vmul.f32 %v683_v57, %v383_v56  ;;  %v701_v11 = vld [vmem:[#allocation5 + $0x4f0] sm:$0xff]  ;;  %v1000_v16 = vmul.f32 %v700_v1, %v400_v0  ;;  %v386_v19 = vld [vmem:[%s3332_s27 + $0x478] sm:$0xff] }
  0xce   : > { %v684_v4 = vld [vmem:[#allocation5 + $0x468] sm:$0xff]  ;;  %v385_v13 = vld [vmem:[%s3332_s27 + $0x470] sm:$0xff]  ;;  %v1310_v17 = vadd.f32 %v1309_v7, %v998_v59  ;;  %v402_v21 = vld [vmem:[%s3332_s27 + $0x4f8] sm:$0xff]  ;;  %v1001_v26 = vmul.f32 %v701_v11, %v401_v10 }
  0xcf   : > { %v1272_v2 = vadd.f32 %v1271_v55, %v964_v40  ;;  %v685_v14 = vld [vmem:[#allocation5 + $0x470] sm:$0xff]  ;;  %v1291_v15 = vadd.f32 %v1290_v5, %v981_v52  ;;  %v984_v20 = vmul.f32 %v684_v4, %v384_v3  ;;  %v702_v22 = vld [vmem:[#allocation5 + $0x4f8] sm:$0xff]  ;;  %v419_v28 = vld [vmem:[%s3332_s27 + $0x580] sm:$0xff] }
  0xd0   : > { %v418_v23 = vld [vmem:[%s3332_s27 + $0x578] sm:$0xff]  ;;  %v1311_v27 = vadd.f32 %v1310_v17, %v999_v6  ;;  %v719_v30 = vld [vmem:[#allocation5 + $0x580] sm:$0xff]  ;;  %v985_v32 = vmul.f32 %v685_v14, %v385_v13  ;;  %v1002_v38 = vmul.f32 %v702_v22, %v402_v21  ;;  %v420_v40 = vld [vmem:[%s3332_s27 + $0x588] sm:$0xff] }
  0xd1   : > { %v1273_v12 = vadd.f32 %v1272_v2, %v965_v51  ;;  %v1292_v25 = vadd.f32 %v1291_v15, %v982_v63  ;;  %v718_v29 = vld [vmem:[#allocation5 + $0x578] sm:$0xff]  ;;  %v403_v33 = vld [vmem:[%s3332_s27 + $0x500] sm:$0xff]  ;;  %v720_v41 = vld [vmem:[#allocation5 + $0x588] sm:$0xff]  ;;  %v1019_v46 = vmul.f32 %v719_v30, %v419_v28 }
  0xd2   : > { %v686_v31 = vld [vmem:[#allocation5 + $0x478] sm:$0xff]  ;;  %v703_v34 = vld [vmem:[#allocation5 + $0x500] sm:$0xff]  ;;  %v1312_v39 = vadd.f32 %v1311_v27, %v1000_v16  ;;  %v404_v43 = vld [vmem:[%s3332_s27 + $0x508] sm:$0xff]  ;;  %v1018_v45 = vmul.f32 %v718_v29, %v418_v23  ;;  %v1020_v57 = vmul.f32 %v720_v41, %v420_v40 }
  0xd3   : > { %v1274_v24 = vadd.f32 %v1273_v12, %v966_v61  ;;  %v387_v36 = vld [vmem:[%s3332_s27 + $0x480] sm:$0xff]  ;;  %v1293_v37 = vadd.f32 %v1292_v25, %v983_v9  ;;  %v704_v44 = vld [vmem:[#allocation5 + $0x508] sm:$0xff]  ;;  %v986_v48 = vmul.f32 %v686_v31, %v386_v19  ;;  %v1003_v50 = vmul.f32 %v703_v34, %v403_v33  ;;  %v421_v52 = vld [vmem:[%s3332_s27 + $0x590] sm:$0xff] }
  0xd4   : > { %v687_v42 = vld [vmem:[#allocation5 + $0x480] sm:$0xff]  ;;  %v388_v47 = vld [vmem:[%s3332_s27 + $0x488] sm:$0xff]  ;;  %v1313_v51 = vadd.f32 %v1312_v39, %v1001_v26  ;;  %v721_v53 = vld [vmem:[#allocation5 + $0x590] sm:$0xff]  ;;  %v1004_v61 = vmul.f32 %v704_v44, %v404_v43  ;;  %v1333_v6 = vadd.f32 %v1019_v46, %v1018_v45 }
  0xd5   : > { %v1276_v35 = vadd.f32 %v1275_v18, %v1274_v24  ;;  %v1294_v49 = vadd.f32 %v1293_v37, %v984_v20  ;;  %v688_v54 = vld [vmem:[#allocation5 + $0x488] sm:$0xff]  ;;  %v405_v55 = vld [vmem:[%s3332_s27 + $0x510] sm:$0xff]  ;;  %v987_v59 = vmul.f32 %v687_v42, %v387_v36  ;;  %v422_v63 = vld [vmem:[%s3332_s27 + $0x598] sm:$0xff]  ;;  %v1021_v5 = vmul.f32 %v721_v53, %v421_v52 }
  0xd6   : > { %v705_v56 = vld [vmem:[#allocation5 + $0x510] sm:$0xff]  ;;  %v1314_v62 = vadd.f32 %v1313_v51, %v1002_v38  ;;  %v722_v0 = vld [vmem:[#allocation5 + $0x598] sm:$0xff]  ;;  %v392_v7 = vld [vmem:[%s3332_s27 + $0x4a8] sm:$0xff]  ;;  %v988_v9 = vmul.f32 %v688_v54, %v388_v47  ;;  %v1334_v20 = vadd.f32 %v1333_v6, %v1020_v57 }
  0xd7   : > { %1277 = vadd.xlane.f32.xlu0 %v1276_v35  ;;  %v389_v58 = vld [vmem:[%s3332_s27 + $0x490] sm:$0xff]  ;;  %v1295_v60 = vadd.f32 %v1294_v49, %v985_v32  ;;  %v390_v1 = vld [vmem:[%s3332_s27 + $0x498] sm:$0xff]  ;;  %v1005_v11 = vmul.f32 %v705_v56, %v405_v55  ;;  %v423_v13 = vld [vmem:[%s3332_s27 + $0x5a0] sm:$0xff]  ;;  %v1022_v19 = vmul.f32 %v722_v0, %v422_v63 }
  0xd8   : > { %v689_v2 = vld [vmem:[#allocation5 + $0x490] sm:$0xff]  ;;  %v406_v3 = vld [vmem:[%s3332_s27 + $0x518] sm:$0xff]  ;;  %v1315_v12 = vadd.f32 %v1314_v62, %v1003_v50  ;;  %v723_v14 = vld [vmem:[#allocation5 + $0x5a0] sm:$0xff]  ;;  %v1335_v32 = vadd.f32 %v1334_v20, %v1021_v5 }
  0xd9   : > { %v706_v4 = vld [vmem:[#allocation5 + $0x518] sm:$0xff]  ;;  %v1296_v10 = vadd.f32 %v1295_v60, %v986_v48  ;;  %v391_v15 = vld [vmem:[%s3332_s27 + $0x4a0] sm:$0xff]  ;;  %v692_v21 = vld [vmem:[#allocation5 + $0x4a8] sm:$0xff]  ;;  %v989_v22 = vmul.f32 %v689_v2, %v389_v58  ;;  %v1023_v31 = vmul.f32 %v723_v14, %v423_v13 }
  0xda   : > { %v690_v16 = vld [vmem:[#allocation5 + $0x498] sm:$0xff]  ;;  %v407_v17 = vld [vmem:[%s3332_s27 + $0x520] sm:$0xff]  ;;  %v1006_v24 = vmul.f32 %v706_v4, %v406_v3  ;;  %v1316_v25 = vadd.f32 %v1315_v12, %v1004_v61  ;;  %v424_v26 = vld [vmem:[%s3332_s27 + $0x5a8] sm:$0xff]  ;;  %v992_v39 = vmul.f32 %v692_v21, %v392_v7  ;;  %v1336_v43 = vadd.f32 %v1335_v32, %v1022_v19 }
  0xdb   : > { %v707_v18 = vld [vmem:[#allocation5 + $0x520] sm:$0xff]  ;;  %v1297_v23 = vadd.f32 %v1296_v10, %v987_v59  ;;  %v724_v27 = vld [vmem:[#allocation5 + $0x5a8] sm:$0xff]  ;;  %v990_v33 = vmul.f32 %v690_v16, %v390_v1  ;;  %v425_v37 = vld [vmem:[%s3332_s27 + $0x5b0] sm:$0xff] }
  0xdc   : > { %v691_v28 = vld [vmem:[#allocation5 + $0x4a0] sm:$0xff]  ;;  %v408_v29 = vld [vmem:[%s3332_s27 + $0x528] sm:$0xff]  ;;  %v1007_v35 = vmul.f32 %v707_v18, %v407_v17  ;;  %v1317_v36 = vadd.f32 %v1316_v25, %v1005_v11  ;;  %v725_v38 = vld [vmem:[#allocation5 + $0x5b0] sm:$0xff]  ;;  %v1024_v42 = vmul.f32 %v724_v27, %v424_v26  ;;  %v1337_v55 = vadd.f32 %v1336_v43, %v1023_v31 }
  0xdd   : > { %v708_v30 = vld [vmem:[#allocation5 + $0x528] sm:$0xff]  ;;  %v1298_v34 = vadd.f32 %v1297_v23, %v988_v9  ;;  %v409_v40 = vld [vmem:[%s3332_s27 + $0x530] sm:$0xff]  ;;  %v991_v44 = vmul.f32 %v691_v28, %v391_v15  ;;  %v410_v46 = vld [vmem:[%s3332_s27 + $0x538] sm:$0xff]  ;;  %v1025_v54 = vmul.f32 %v725_v38, %v425_v37  ;;  %v1302_v62 = vsel %vm1166_vm0, %v992_v39, 0.0 }
  0xde   : > { %v709_v41 = vld [vmem:[#allocation5 + $0x530] sm:$0xff]  ;;  %v1008_v47 = vmul.f32 %v708_v30, %v408_v29  ;;  %v1318_v48 = vadd.f32 %v1317_v36, %v1006_v24  ;;  %v426_v49 = vld [vmem:[%s3332_s27 + $0x5b8] sm:$0xff]  ;;  %v411_v51 = vld [vmem:[%s3332_s27 + $0x540] sm:$0xff]  ;;  %v1338_v0 = vadd.f32 %v1337_v55, %v1024_v42 }
  0xdf   : > { %v1299_v45 = vadd.f32 %v1298_v34, %v989_v22  ;;  %v726_v50 = vld [vmem:[#allocation5 + $0x5b8] sm:$0xff]  ;;  %v711_v53 = vld [vmem:[#allocation5 + $0x540] sm:$0xff]  ;;  %v1009_v57 = vmul.f32 %v709_v41, %v409_v40  ;;  %v444_v1 = vld [vmem:[%s3332_s27 + $0x648] sm:$0xff] }
  0xe0   : > { %v710_v52 = vld [vmem:[#allocation5 + $0x538] sm:$0xff]  ;;  %v1319_v58 = vadd.f32 %v1318_v48, %v1007_v35  ;;  %v427_v59 = vld [vmem:[%s3332_s27 + $0x5c0] sm:$0xff]  ;;  %v1026_v63 = vmul.f32 %v726_v50, %v426_v49  ;;  %v744_v3 = vld [vmem:[#allocation5 + $0x648] sm:$0xff]  ;;  %v1011_v12 = vmul.f32 %v711_v53, %v411_v51  ;;  %v1339_v14 = vadd.f32 %v1338_v0, %v1025_v54 }
  0xe1   : > { %v1300_v56 = vadd.f32 %v1299_v45, %v990_v33  ;;  %v727_v60 = vld [vmem:[#allocation5 + $0x5c0] sm:$0xff]  ;;  %v412_v5 = vld [vmem:[%s3332_s27 + $0x548] sm:$0xff]  ;;  %v1010_v6 = vmul.f32 %v710_v52, %v410_v46  ;;  %v445_v15 = vld [vmem:[%s3332_s27 + $0x650] sm:$0xff]  ;;  %v1044_v23 = vmul.f32 %v744_v3, %v444_v1 }
  0xe2   : > { %v443_v61 = vld [vmem:[%s3332_s27 + $0x640] sm:$0xff]  ;;  %v1320_v7 = vadd.f32 %v1319_v58, %v1008_v47  ;;  %v428_v9 = vld [vmem:[%s3332_s27 + $0x5c8] sm:$0xff]  ;;  %v1027_v13 = vmul.f32 %v727_v60, %v427_v59  ;;  %v745_v16 = vld [vmem:[#allocation5 + $0x650] sm:$0xff]  ;;  %v1340_v26 = vadd.f32 %v1339_v14, %v1026_v63 }
  0xe3   : > { %v743_v2 = vld [vmem:[#allocation5 + $0x640] sm:$0xff]  ;;  %v1301_v4 = vadd.f32 %v1300_v56, %v991_v44  ;;  %v728_v10 = vld [vmem:[#allocation5 + $0x5c8] sm:$0xff]  ;;  %v413_v18 = vld [vmem:[%s3332_s27 + $0x550] sm:$0xff]  ;;  %v1045_v34 = vmul.f32 %v745_v16, %v445_v15 }
  0xe4   : > { %v712_v11 = vld [vmem:[#allocation5 + $0x548] sm:$0xff]  ;;  %v1321_v19 = vadd.f32 %v1320_v7, %v1009_v57  ;;  %v429_v20 = vld [vmem:[%s3332_s27 + $0x5d0] sm:$0xff]  ;;  %v1043_v22 = vmul.f32 %v743_v2, %v443_v61  ;;  %v1028_v25 = vmul.f32 %v728_v10, %v428_v9  ;;  %v446_v27 = vld [vmem:[%s3332_s27 + $0x658] sm:$0xff]  ;;  %v1341_v38 = vadd.f32 %v1340_v26, %v1027_v13 }
  0xe5   : > { %v1303_v17 = vadd.f32 %v1302_v62, %v1301_v4  ;;  %v729_v21 = vld [vmem:[#allocation5 + $0x5d0] sm:$0xff]  ;;  %v746_v28 = vld [vmem:[#allocation5 + $0x658] sm:$0xff]  ;;  %v1012_v30 = vmul.f32 %v712_v11, %v412_v5  ;;  %v415_v35 = vld [vmem:[%s3332_s27 + $0x560] sm:$0xff] }
  0xe6   : > { %v713_v24 = vld [vmem:[#allocation5 + $0x550] sm:$0xff]  ;;  %v414_v29 = vld [vmem:[%s3332_s27 + $0x558] sm:$0xff]  ;;  %v1322_v31 = vadd.f32 %v1321_v19, %v1010_v6  ;;  %v1029_v37 = vmul.f32 %v729_v21, %v429_v20  ;;  %v447_v39 = vld [vmem:[%s3332_s27 + $0x660] sm:$0xff]  ;;  %v1046_v46 = vmul.f32 %v746_v28, %v446_v27  ;;  %v1360_v47 = vadd.f32 %v1044_v23, %v1043_v22 }
  0xe7   : > { %1304 = vadd.xlane.f32.xlu1 %v1303_v17  ;;  %v430_v32 = vld [vmem:[%s3332_s27 + $0x5d8] sm:$0xff]  ;;  %v747_v40 = vld [vmem:[#allocation5 + $0x660] sm:$0xff]  ;;  %v417_v41 = vld [vmem:[%s3332_s27 + $0x570] sm:$0xff]  ;;  %v1013_v42 = vmul.f32 %v713_v24, %v413_v18  ;;  %v1342_v51 = vadd.f32 %v1341_v38, %v1028_v25 }
  0xe8   : > { %v730_v33 = vld [vmem:[#allocation5 + $0x5d8] sm:$0xff]  ;;  %v1323_v43 = vadd.f32 %v1322_v31, %v1011_v12  ;;  %v431_v44 = vld [vmem:[%s3332_s27 + $0x5e0] sm:$0xff]  ;;  %v416_v48 = vld [vmem:[%s3332_s27 + $0x568] sm:$0xff]  ;;  %v1047_v59 = vmul.f32 %v747_v40, %v447_v39  ;;  %v1361_v60 = vadd.f32 %v1360_v47, %v1045_v34 }
  0xe9   : > { %v714_v36 = vld [vmem:[#allocation5 + $0x558] sm:$0xff]  ;;  %v731_v45 = vld [vmem:[#allocation5 + $0x5e0] sm:$0xff]  ;;  %v1030_v50 = vmul.f32 %v730_v33, %v430_v32  ;;  %v448_v52 = vld [vmem:[%s3332_s27 + $0x668] sm:$0xff]  ;;  %v1343_v63 = vadd.f32 %v1342_v51, %v1029_v37 }
  0xea   : > { %v715_v49 = vld [vmem:[#allocation5 + $0x560] sm:$0xff]  ;;  %v748_v53 = vld [vmem:[#allocation5 + $0x668] sm:$0xff]  ;;  %v717_v54 = vld [vmem:[#allocation5 + $0x570] sm:$0xff]  ;;  %v1014_v55 = vmul.f32 %v714_v36, %v414_v29  ;;  %v1324_v56 = vadd.f32 %v1323_v43, %v1012_v30  ;;  %v1031_v62 = vmul.f32 %v731_v45, %v431_v44  ;;  %v1362_v7 = vadd.f32 %v1361_v60, %v1046_v46 }
  0xeb   : > { %v432_v57 = vld [vmem:[%s3332_s27 + $0x5e8] sm:$0xff]  ;;  %v449_v0 = vld [vmem:[%s3332_s27 + $0x670] sm:$0xff]  ;;  %v1015_v2 = vmul.f32 %v715_v49, %v415_v35  ;;  %v1048_v6 = vmul.f32 %v748_v53, %v448_v52  ;;  %v1017_v9 = vmul.f32 %v717_v54, %v417_v41  ;;  %v1344_v11 = vadd.f32 %v1343_v63, %v1030_v50  ;;  %v450_v12 = vld [vmem:[%s3332_s27 + $0x678] sm:$0xff] }
  0xec   : > { %v732_v58 = vld [vmem:[#allocation5 + $0x5e8] sm:$0xff]  ;;  %v749_v1 = vld [vmem:[#allocation5 + $0x670] sm:$0xff]  ;;  %v1325_v3 = vadd.f32 %v1324_v56, %v1013_v42  ;;  %v750_v13 = vld [vmem:[#allocation5 + $0x678] sm:$0xff]  ;;  %v1363_v20 = vadd.f32 %v1362_v7, %v1047_v59 }
  0xed   : > { %v716_v61 = vld [vmem:[#allocation5 + $0x568] sm:$0xff]  ;;  %v433_v4 = vld [vmem:[%s3332_s27 + $0x5f0] sm:$0xff]  ;;  %v1032_v10 = vmul.f32 %v732_v58, %v432_v57  ;;  %v434_v16 = vld [vmem:[%s3332_s27 + $0x5f8] sm:$0xff]  ;;  %v1049_v19 = vmul.f32 %v749_v1, %v449_v0  ;;  %v1345_v23 = vadd.f32 %v1344_v11, %v1031_v62  ;;  %v1050_v30 = vmul.f32 %v750_v13, %v450_v12 }
  0xee   : > { %v733_v5 = vld [vmem:[#allocation5 + $0x5f0] sm:$0xff]  ;;  %v1016_v14 = vmul.f32 %v716_v61, %v416_v48  ;;  %v1326_v15 = vadd.f32 %v1325_v3, %v1014_v55  ;;  %v435_v17 = vld [vmem:[%s3332_s27 + $0x600] sm:$0xff]  ;;  %v734_v18 = vld [vmem:[#allocation5 + $0x5f8] sm:$0xff]  ;;  %v1364_v31 = vadd.f32 %v1363_v20, %v1048_v6  ;;  %v1329_v33 = vsel %vm1166_vm0, %v1017_v9, 0.0 }
  0xef   : > { %v735_v21 = vld [vmem:[#allocation5 + $0x600] sm:$0xff]  ;;  %v1033_v22 = vmul.f32 %v733_v5, %v433_v4  ;;  %v436_v27 = vld [vmem:[%s3332_s27 + $0x608] sm:$0xff]  ;;  %v1034_v34 = vmul.f32 %v734_v18, %v434_v16  ;;  %v1346_v35 = vadd.f32 %v1345_v23, %v1032_v10  ;;  %v469_v36 = vld [vmem:[%s3332_s27 + $0x710] sm:$0xff] }
  0xf0   : > { %v451_v24 = vld [vmem:[%s3332_s27 + $0x680] sm:$0xff]  ;;  %v1327_v26 = vadd.f32 %v1326_v15, %v1015_v2  ;;  %v452_v28 = vld [vmem:[%s3332_s27 + $0x688] sm:$0xff]  ;;  %v769_v38 = vld [vmem:[#allocation5 + $0x710] sm:$0xff]  ;;  %v1365_v44 = vadd.f32 %v1364_v31, %v1049_v19  ;;  %v1035_v45 = vmul.f32 %v735_v21, %v435_v17 }
  0xf1   : > { %v751_v25 = vld [vmem:[#allocation5 + $0x680] sm:$0xff]  ;;  %v752_v29 = vld [vmem:[#allocation5 + $0x688] sm:$0xff]  ;;  %v437_v40 = vld [vmem:[%s3332_s27 + $0x610] sm:$0xff]  ;;  %v1347_v46 = vadd.f32 %v1346_v35, %v1033_v22  ;;  %v1069_v57 = vmul.f32 %v769_v38, %v469_v36 }
  0xf2   : > { %v468_v32 = vld [vmem:[%s3332_s27 + $0x708] sm:$0xff]  ;;  %v1328_v39 = vadd.f32 %v1327_v26, %v1016_v14  ;;  %v453_v42 = vld [vmem:[%s3332_s27 + $0x690] sm:$0xff]  ;;  %v1051_v43 = vmul.f32 %v751_v25, %v451_v24  ;;  %v1052_v48 = vmul.f32 %v752_v29, %v452_v28  ;;  %v470_v49 = vld [vmem:[%s3332_s27 + $0x718] sm:$0xff]  ;;  %v1366_v55 = vadd.f32 %v1365_v44, %v1050_v30 }
  0xf3   : > { %v768_v37 = vld [vmem:[#allocation5 + $0x708] sm:$0xff]  ;;  %v753_v47 = vld [vmem:[#allocation5 + $0x690] sm:$0xff]  ;;  %v770_v50 = vld [vmem:[#allocation5 + $0x718] sm:$0xff]  ;;  %v1348_v59 = vadd.f32 %v1347_v46, %v1034_v34 }
  0xf4   : > { %v736_v41 = vld [vmem:[#allocation5 + $0x608] sm:$0xff]  ;;  %v1330_v51 = vadd.f32 %v1329_v33, %v1328_v39  ;;  %v438_v52 = vld [vmem:[%s3332_s27 + $0x618] sm:$0xff]  ;;  %v737_v53 = vld [vmem:[#allocation5 + $0x610] sm:$0xff]  ;;  %v1068_v56 = vmul.f32 %v768_v37, %v468_v32  ;;  %v1053_v2 = vmul.f32 %v753_v47, %v453_v42  ;;  %v1367_v3 = vadd.f32 %v1366_v55, %v1051_v43 }
  0xf5   : > { %v454_v54 = vld [vmem:[%s3332_s27 + $0x698] sm:$0xff]  ;;  %v1036_v58 = vmul.f32 %v736_v41, %v436_v27  ;;  %v471_v61 = vld [vmem:[%s3332_s27 + $0x720] sm:$0xff]  ;;  %v1070_v4 = vmul.f32 %v770_v50, %v470_v49  ;;  %v1037_v5 = vmul.f32 %v737_v53, %v437_v40  ;;  %v1349_v6 = vadd.f32 %v1348_v59, %v1035_v45  ;;  %v472_v9 = vld [vmem:[%s3332_s27 + $0x728] sm:$0xff] }
  0xf6   : > { %v754_v60 = vld [vmem:[#allocation5 + $0x698] sm:$0xff]  ;;  %v771_v62 = vld [vmem:[#allocation5 + $0x720] sm:$0xff]  ;;  %1331 = vadd.xlane.f32.xlu0 %v1330_v51  ;;  %v772_v10 = vld [vmem:[#allocation5 + $0x728] sm:$0xff]  ;;  %v1368_v16 = vadd.f32 %v1367_v3, %v1052_v48  ;;  %v1387_v18 = vadd.f32 %v1069_v57, %v1068_v56 }
  0xf7   : > { %v439_v63 = vld [vmem:[%s3332_s27 + $0x620] sm:$0xff]  ;;  %v738_v0 = vld [vmem:[#allocation5 + $0x618] sm:$0xff]  ;;  %v440_v11 = vld [vmem:[%s3332_s27 + $0x628] sm:$0xff]  ;;  %v1054_v15 = vmul.f32 %v754_v60, %v454_v54  ;;  %v1071_v17 = vmul.f32 %v771_v62, %v471_v61  ;;  %v1350_v20 = vadd.f32 %v1349_v6, %v1036_v58  ;;  %v1072_v29 = vmul.f32 %v772_v10, %v472_v9 }
  0xf8   : > { %v455_v1 = vld [vmem:[%s3332_s27 + $0x6a0] sm:$0xff]  ;;  %v442_v12 = vld [vmem:[%s3332_s27 + $0x638] sm:$0xff]  ;;  %v456_v14 = vld [vmem:[%s3332_s27 + $0x6a8] sm:$0xff]  ;;  %v1038_v19 = vmul.f32 %v738_v0, %v438_v52  ;;  %v1369_v28 = vadd.f32 %v1368_v16, %v1053_v2  ;;  %v1388_v30 = vadd.f32 %v1387_v18, %v1070_v4 }
  0xf9   : > { %v755_v7 = vld [vmem:[#allocation5 + $0x6a0] sm:$0xff]  ;;  %v756_v21 = vld [vmem:[#allocation5 + $0x6a8] sm:$0xff]  ;;  %v473_v22 = vld [vmem:[%s3332_s27 + $0x730] sm:$0xff]  ;;  %v1351_v32 = vadd.f32 %v1350_v20, %v1037_v5 }
  0xfa   : > { %v739_v13 = vld [vmem:[#allocation5 + $0x620] sm:$0xff]  ;;  %v773_v23 = vld [vmem:[#allocation5 + $0x730] sm:$0xff]  ;;  %v740_v24 = vld [vmem:[#allocation5 + $0x628] sm:$0xff]  ;;  %v1055_v27 = vmul.f32 %v755_v7, %v455_v1  ;;  %v1056_v39 = vmul.f32 %v756_v21, %v456_v14  ;;  %v1370_v40 = vadd.f32 %v1369_v28, %v1054_v15  ;;  %v1389_v42 = vadd.f32 %v1388_v30, %v1071_v17 }
  0xfb   : > { %v742_v25 = vld [vmem:[#allocation5 + $0x638] sm:$0xff]  ;;  %v457_v26 = vld [vmem:[%s3332_s27 + $0x6b0] sm:$0xff]  ;;  %v1039_v31 = vmul.f32 %v739_v13, %v439_v63  ;;  %v1073_v41 = vmul.f32 %v773_v23, %v473_v22  ;;  %v1040_v43 = vmul.f32 %v740_v24, %v440_v11  ;;  %v1352_v45 = vadd.f32 %v1351_v32, %v1038_v19  ;;  %v475_v47 = vld [vmem:[%s3332_s27 + $0x740] sm:$0xff] }
  0xfc   : > { %v757_v33 = vld [vmem:[#allocation5 + $0x6b0] sm:$0xff]  ;;  %v474_v34 = vld [vmem:[%s3332_s27 + $0x738] sm:$0xff]  ;;  %v1042_v44 = vmul.f32 %v742_v25, %v442_v12  ;;  %v775_v48 = vld [vmem:[#allocation5 + $0x740] sm:$0xff]  ;;  %v1371_v51 = vadd.f32 %v1370_v40, %v1055_v27  ;;  %v1390_v53 = vadd.f32 %v1389_v42, %v1072_v29 }
  0xfd   : > { %v774_v35 = vld [vmem:[#allocation5 + $0x738] sm:$0xff]  ;;  %v441_v36 = vld [vmem:[%s3332_s27 + $0x630] sm:$0xff]  ;;  %v459_v49 = vld [vmem:[%s3332_s27 + $0x6c0] sm:$0xff]  ;;  %v1057_v50 = vmul.f32 %v757_v33, %v457_v26  ;;  %v1353_v55 = vadd.f32 %v1352_v45, %v1039_v31  ;;  %v1075_v63 = vmul.f32 %v775_v48, %v475_v47 }
  0xfe   : > { %v741_v37 = vld [vmem:[#allocation5 + $0x630] sm:$0xff]  ;;  %v458_v38 = vld [vmem:[%s3332_s27 + $0x6b8] sm:$0xff]  ;;  %v1074_v52 = vmul.f32 %v774_v35, %v474_v34  ;;  %v759_v56 = vld [vmem:[#allocation5 + $0x6c0] sm:$0xff]  ;;  %v1372_v62 = vadd.f32 %v1371_v51, %v1056_v39  ;;  %v1391_v0 = vadd.f32 %v1390_v53, %v1073_v41  ;;  %v1356_v2 = vsel %vm1166_vm0, %v1042_v44, 0.0 }
  0xff   : > { %v758_v46 = vld [vmem:[#allocation5 + $0x6b8] sm:$0xff]  ;;  %v1041_v54 = vmul.f32 %v741_v37, %v441_v36  ;;  %v476_v57 = vld [vmem:[%s3332_s27 + $0x748] sm:$0xff]  ;;  %v1354_v1 = vadd.f32 %v1353_v55, %v1040_v43  ;;  %v461_v3 = vld [vmem:[%s3332_s27 + $0x6d0] sm:$0xff]  ;;  %v1059_v7 = vmul.f32 %v759_v56, %v459_v49 }
 0x100   : > { %v776_v58 = vld [vmem:[#allocation5 + $0x748] sm:$0xff]  ;;  %v1058_v61 = vmul.f32 %v758_v46, %v458_v38  ;;  %v477_v4 = vld [vmem:[%s3332_s27 + $0x750] sm:$0xff]  ;;  %v1373_v9 = vadd.f32 %v1372_v62, %v1057_v50  ;;  %v1392_v11 = vadd.f32 %v1391_v0, %v1074_v52  ;;  %v494_v12 = vld [vmem:[%s3332_s27 + $0x7d8] sm:$0xff] }
 0x101   : > { %v460_v59 = vld [vmem:[%s3332_s27 + $0x6c8] sm:$0xff]  ;;  %v777_v5 = vld [vmem:[#allocation5 + $0x750] sm:$0xff]  ;;  %v1076_v10 = vmul.f32 %v776_v58, %v476_v57  ;;  %v794_v14 = vld [vmem:[#allocation5 + $0x7d8] sm:$0xff]  ;;  %v1355_v15 = vadd.f32 %v1354_v1, %v1041_v54 }
 0x102   : > { %v760_v60 = vld [vmem:[#allocation5 + $0x6c8] sm:$0xff]  ;;  %v493_v6 = vld [vmem:[%s3332_s27 + $0x7d0] sm:$0xff]  ;;  %v478_v17 = vld [vmem:[%s3332_s27 + $0x758] sm:$0xff]  ;;  %v1374_v21 = vadd.f32 %v1373_v9, %v1058_v61  ;;  %v1077_v22 = vmul.f32 %v777_v5, %v477_v4  ;;  %v1393_v23 = vadd.f32 %v1392_v11, %v1075_v63  ;;  %v1094_v31 = vmul.f32 %v794_v14, %v494_v12 }
 0x103   : > { %v793_v13 = vld [vmem:[#allocation5 + $0x7d0] sm:$0xff]  ;;  %v778_v18 = vld [vmem:[#allocation5 + $0x758] sm:$0xff]  ;;  %v1060_v20 = vmul.f32 %v760_v60, %v460_v59  ;;  %v495_v24 = vld [vmem:[%s3332_s27 + $0x7e0] sm:$0xff]  ;;  %v1357_v26 = vadd.f32 %v1356_v2, %v1355_v15 }
 0x104   : > { %v761_v16 = vld [vmem:[#allocation5 + $0x6d0] sm:$0xff]  ;;  %v462_v19 = vld [vmem:[%s3332_s27 + $0x6d8] sm:$0xff]  ;;  %v795_v25 = vld [vmem:[#allocation5 + $0x7e0] sm:$0xff]  ;;  %v1093_v30 = vmul.f32 %v793_v13, %v493_v6  ;;  %v1375_v34 = vadd.f32 %v1374_v21, %v1059_v7  ;;  %v1078_v35 = vmul.f32 %v778_v18, %v478_v17  ;;  %v1394_v36 = vadd.f32 %v1393_v23, %v1076_v10 }
 0x105   : > { %v762_v27 = vld [vmem:[#allocation5 + $0x6d8] sm:$0xff]  ;;  %v479_v28 = vld [vmem:[%s3332_s27 + $0x760] sm:$0xff]  ;;  %v1061_v33 = vmul.f32 %v761_v16, %v461_v3  ;;  %v496_v37 = vld [vmem:[%s3332_s27 + $0x7e8] sm:$0xff]  ;;  %1358 = vadd.xlane.f32.xlu1 %v1357_v26  ;;  %v1095_v42 = vmul.f32 %v795_v25, %v495_v24 }
 0x106   : > { %v779_v29 = vld [vmem:[#allocation5 + $0x760] sm:$0xff]  ;;  %v796_v38 = vld [vmem:[#allocation5 + $0x7e8] sm:$0xff]  ;;  %v1062_v44 = vmul.f32 %v762_v27, %v462_v19  ;;  %v1376_v45 = vadd.f32 %v1375_v34, %v1060_v20  ;;  %v1395_v47 = vadd.f32 %v1394_v36, %v1077_v22  ;;  %v497_v48 = vld [vmem:[%s3332_s27 + $0x7f0] sm:$0xff]  ;;  %v1414_v55 = vadd.f32 %v1094_v31, %v1093_v30 }
 0x107   : > { %v463_v32 = vld [vmem:[%s3332_s27 + $0x6e0] sm:$0xff]  ;;  %v480_v40 = vld [vmem:[%s3332_s27 + $0x768] sm:$0xff]  ;;  %v1079_v46 = vmul.f32 %v779_v29, %v479_v28  ;;  %v797_v49 = vld [vmem:[#allocation5 + $0x7f0] sm:$0xff]  ;;  %v1096_v54 = vmul.f32 %v796_v38, %v496_v37 }
 0x108   : > { %v763_v39 = vld [vmem:[#allocation5 + $0x6e0] sm:$0xff]  ;;  %v780_v41 = vld [vmem:[#allocation5 + $0x768] sm:$0xff]  ;;  %v465_v50 = vld [vmem:[%s3332_s27 + $0x6f0] sm:$0xff]  ;;  %v1377_v58 = vadd.f32 %v1376_v45, %v1061_v33  ;;  %v1396_v60 = vadd.f32 %v1395_v47, %v1078_v35  ;;  %v1097_v3 = vmul.f32 %v797_v49, %v497_v48  ;;  %v1415_v4 = vadd.f32 %v1414_v55, %v1095_v42 }
 0x109   : > { %v464_v43 = vld [vmem:[%s3332_s27 + $0x6e8] sm:$0xff]  ;;  %v481_v52 = vld [vmem:[%s3332_s27 + $0x770] sm:$0xff]  ;;  %v467_v56 = vld [vmem:[%s3332_s27 + $0x700] sm:$0xff]  ;;  %v1063_v57 = vmul.f32 %v763_v39, %v463_v32  ;;  %v1080_v59 = vmul.f32 %v780_v41, %v480_v40 }
 0x10a   : > { %v764_v51 = vld [vmem:[#allocation5 + $0x6e8] sm:$0xff]  ;;  %v781_v53 = vld [vmem:[#allocation5 + $0x770] sm:$0xff]  ;;  %v498_v61 = vld [vmem:[%s3332_s27 + $0x7f8] sm:$0xff]  ;;  %v1378_v7 = vadd.f32 %v1377_v58, %v1062_v44  ;;  %v1397_v10 = vadd.f32 %v1396_v60, %v1079_v46  ;;  %v1416_v17 = vadd.f32 %v1415_v4, %v1096_v54 }
 0x10b   : > { %v798_v62 = vld [vmem:[#allocation5 + $0x7f8] sm:$0xff]  ;;  %v765_v0 = vld [vmem:[#allocation5 + $0x6f0] sm:$0xff]  ;;  %v767_v5 = vld [vmem:[#allocation5 + $0x700] sm:$0xff]  ;;  %v1064_v6 = vmul.f32 %v764_v51, %v464_v43  ;;  %v1081_v9 = vmul.f32 %v781_v53, %v481_v52 }
 0x10c   : > { %v466_v63 = vld [vmem:[%s3332_s27 + $0x6f8] sm:$0xff]  ;;  %v499_v11 = vld [vmem:[%s3332_s27 + $0x800] sm:$0xff]  ;;  %v1098_v16 = vmul.f32 %v798_v62, %v498_v61  ;;  %v1065_v18 = vmul.f32 %v765_v0, %v465_v50  ;;  %v1379_v19 = vadd.f32 %v1378_v7, %v1063_v57  ;;  %v1398_v21 = vadd.f32 %v1397_v10, %v1080_v59  ;;  %v500_v22 = vld [vmem:[%s3332_s27 + $0x808] sm:$0xff] }
 0x10d   : > { %v482_v1 = vld [vmem:[%s3332_s27 + $0x778] sm:$0xff]  ;;  %v799_v12 = vld [vmem:[#allocation5 + $0x800] sm:$0xff]  ;;  %v800_v23 = vld [vmem:[#allocation5 + $0x808] sm:$0xff]  ;;  %v1067_v24 = vmul.f32 %v767_v5, %v467_v56  ;;  %v1417_v28 = vadd.f32 %v1416_v17, %v1097_v3 }
 0x10e   : > { %v782_v2 = vld [vmem:[#allocation5 + $0x778] sm:$0xff]  ;;  %v483_v14 = vld [vmem:[%s3332_s27 + $0x780] sm:$0xff]  ;;  %v484_v25 = vld [vmem:[%s3332_s27 + $0x788] sm:$0xff]  ;;  %v1099_v27 = vmul.f32 %v799_v12, %v499_v11  ;;  %v1380_v30 = vadd.f32 %v1379_v19, %v1064_v6  ;;  %v1399_v33 = vadd.f32 %v1398_v21, %v1081_v9  ;;  %v1100_v39 = vmul.f32 %v800_v23, %v500_v22 }
 0x10f   : > { %v766_v13 = vld [vmem:[#allocation5 + $0x6f8] sm:$0xff]  ;;  %v783_v15 = vld [vmem:[#allocation5 + $0x780] sm:$0xff]  ;;  %v1082_v20 = vmul.f32 %v782_v2, %v482_v1  ;;  %v784_v26 = vld [vmem:[#allocation5 + $0x788] sm:$0xff]  ;;  %v1418_v40 = vadd.f32 %v1417_v28, %v1098_v16  ;;  %v1383_v47 = vsel %vm1166_vm0, %v1067_v24, 0.0 }
 0x110   : > { %v1066_v29 = vmul.f32 %v766_v13, %v466_v63  ;;  %v485_v31 = vld [vmem:[%s3332_s27 + $0x790] sm:$0xff]  ;;  %v1083_v32 = vmul.f32 %v783_v15, %v483_v14  ;;  %v486_v36 = vld [vmem:[%s3332_s27 + $0x798] sm:$0xff]  ;;  %v1381_v41 = vadd.f32 %v1380_v30, %v1065_v18  ;;  %v1084_v42 = vmul.f32 %v784_v26, %v484_v25  ;;  %v487_v48 = vld [vmem:[%s3332_s27 + $0x7a0] sm:$0xff] }
 0x111   : > { %v501_v34 = vld [vmem:[%s3332_s27 + $0x810] sm:$0xff]  ;;  %v786_v38 = vld [vmem:[#allocation5 + $0x798] sm:$0xff]  ;;  %v1400_v43 = vadd.f32 %v1399_v33, %v1082_v20  ;;  %v1419_v50 = vadd.f32 %v1418_v40, %v1099_v27  ;;  %v519_v51 = vld [vmem:[%s3332_s27 + $0x8a0] sm:$0xff] }
 0x112   : > { %v801_v35 = vld [vmem:[#allocation5 + $0x810] sm:$0xff]  ;;  %v502_v44 = vld [vmem:[%s3332_s27 + $0x818] sm:$0xff]  ;;  %v819_v53 = vld [vmem:[#allocation5 + $0x8a0] sm:$0xff]  ;;  %v1382_v54 = vadd.f32 %v1381_v41, %v1066_v29  ;;  %v1086_v62 = vmul.f32 %v786_v38, %v486_v36 }
 0x113   : > { %v785_v37 = vld [vmem:[#allocation5 + $0x790] sm:$0xff]  ;;  %v802_v45 = vld [vmem:[#allocation5 + $0x818] sm:$0xff]  ;;  %v1101_v49 = vmul.f32 %v801_v35, %v501_v34  ;;  %v488_v55 = vld [vmem:[%s3332_s27 + $0x7a8] sm:$0xff]  ;;  %v1401_v58 = vadd.f32 %v1400_v43, %v1083_v32  ;;  %v1420_v0 = vadd.f32 %v1419_v50, %v1100_v39  ;;  %v1119_v12 = vmul.f32 %v819_v53, %v519_v51 }
 0x114   : > { %v518_v46 = vld [vmem:[%s3332_s27 + $0x898] sm:$0xff]  ;;  %v787_v56 = vld [vmem:[#allocation5 + $0x7a0] sm:$0xff]  ;;  %v1085_v57 = vmul.f32 %v785_v37, %v485_v31  ;;  %v788_v61 = vld [vmem:[#allocation5 + $0x7a8] sm:$0xff]  ;;  %v1102_v63 = vmul.f32 %v802_v45, %v502_v44  ;;  %v1384_v3 = vadd.f32 %v1383_v47, %v1382_v54 }
 0x115   : > { %v818_v52 = vld [vmem:[#allocation5 + $0x898] sm:$0xff]  ;;  %v503_v59 = vld [vmem:[%s3332_s27 + $0x820] sm:$0xff]  ;;  %v520_v1 = vld [vmem:[%s3332_s27 + $0x8a8] sm:$0xff]  ;;  %v1402_v6 = vadd.f32 %v1401_v58, %v1084_v42  ;;  %v1421_v15 = vadd.f32 %v1420_v0, %v1101_v49  ;;  %v1087_v18 = vmul.f32 %v787_v56, %v487_v48  ;;  %v1088_v26 = vmul.f32 %v788_v61, %v488_v55 }
 0x116   : > { %v803_v60 = vld [vmem:[#allocation5 + $0x820] sm:$0xff]  ;;  %v820_v2 = vld [vmem:[#allocation5 + $0x8a8] sm:$0xff]  ;;  %v489_v4 = vld [vmem:[%s3332_s27 + $0x7b0] sm:$0xff]  ;;  %v1118_v11 = vmul.f32 %v818_v52, %v518_v46  ;;  %1385 = vadd.xlane.f32.xlu0 %v1384_v3 }
 0x117   : > { %v789_v5 = vld [vmem:[#allocation5 + $0x7b0] sm:$0xff]  ;;  %v504_v7 = vld [vmem:[%s3332_s27 + $0x828] sm:$0xff]  ;;  %v1103_v14 = vmul.f32 %v803_v60, %v503_v59  ;;  %v1403_v19 = vadd.f32 %v1402_v6, %v1085_v57  ;;  %v522_v20 = vld [vmem:[%s3332_s27 + $0x8b8] sm:$0xff]  ;;  %v1120_v21 = vmul.f32 %v820_v2, %v520_v1  ;;  %v1422_v28 = vadd.f32 %v1421_v15, %v1102_v63 }
 0x118   : > { %v505_v9 = vld [vmem:[%s3332_s27 + $0x830] sm:$0xff]  ;;  %v804_v10 = vld [vmem:[#allocation5 + $0x828] sm:$0xff]  ;;  %v1468_v22 = vld [vmem:[%s4708_s2] sm:$0xff]  ;;  %v1441_v39 = vadd.f32 %v1119_v12, %v1118_v11  ;;  %v1089_v42 = vmul.f32 %v789_v5, %v489_v4 }
 0x119   : > { %v805_v13 = vld [vmem:[#allocation5 + $0x830] sm:$0xff]  ;;  %v1469_v23 = vld [vmem:[%s4708_s2 + $0x8] sm:$0xff]  ;;  %v490_v24 = vld [vmem:[%s3332_s27 + $0x7b8] sm:$0xff]  ;;  %v1104_v27 = vmul.f32 %v804_v10, %v504_v7  ;;  %v1404_v35 = vadd.f32 %v1403_v19, %v1086_v62  ;;  %v1423_v44 = vadd.f32 %v1422_v28, %v1103_v14 }
 0x11a   : > { %v521_v16 = vld [vmem:[%s3332_s27 + $0x8b0] sm:$0xff]  ;;  %v790_v25 = vld [vmem:[#allocation5 + $0x7b8] sm:$0xff]  ;;  %v491_v32 = vld [vmem:[%s3332_s27 + $0x7c0] sm:$0xff]  ;;  %v2555_v40 = vpack.c.bf16 %v1469_v23, %v1468_v22  ;;  %v1105_v43 = vmul.f32 %v805_v13, %v505_v9  ;;  %v1442_v52 = vadd.f32 %v1441_v39, %v1120_v21 }
 0x11b   : > { %v821_v17 = vld [vmem:[#allocation5 + $0x8b0] sm:$0xff]  ;;  %v822_v29 = vld [vmem:[#allocation5 + $0x8b8] sm:$0xff]  ;;  %v492_v33 = vld [vmem:[%s3332_s27 + $0x7c8] sm:$0xff]  ;;  %v1405_v47 = vadd.f32 %v1404_v35, %v1087_v18  ;;  %v1424_v55 = vadd.f32 %v1423_v44, %v1104_v27  ;;  %v1090_v59 = vmul.f32 %v790_v25, %v490_v24 }
 0x11c   : > { %v1470_v30 = vld [vmem:[%s4708_s2 + $0x10] sm:$0xff]  ;;  %v1471_v31 = vld [vmem:[%s4708_s2 + $0x18] sm:$0xff]  ;;  %v791_v34 = vld [vmem:[#allocation5 + $0x7c0] sm:$0xff]  ;;  %v1121_v38 = vmul.f32 %v821_v17, %v521_v16  ;;  %v1122_v51 = vmul.f32 %v822_v29, %v522_v20  ;;  %2556 = vmatpush3.bf16.msra.mxu0 %v2555_v40 }
 0x11d   : > { %v506_v36 = vld [vmem:[%s3332_s27 + $0x838] sm:$0xff]  ;;  %v792_v41 = vld [vmem:[#allocation5 + $0x7c8] sm:$0xff]  ;;  %v523_v45 = vld [vmem:[%s3332_s27 + $0x8c0] sm:$0xff]  ;;  %v2558_v53 = vpack.c.bf16 %v1471_v31, %v1470_v30  ;;  %2557 = vmatprep.subr.bf16.mxu0 %v3117_v8  ;;  %v1406_v60 = vadd.f32 %v1405_v47, %v1088_v26  ;;  %v1091_v1 = vmul.f32 %v791_v34, %v491_v32  ;;  %v1425_v4 = vadd.f32 %v1424_v55, %v1105_v43 }
 0x11e   : > { %v806_v37 = vld [vmem:[#allocation5 + $0x838] sm:$0xff]  ;;  %v823_v46 = vld [vmem:[#allocation5 + $0x8c0] sm:$0xff]  ;;  %v524_v50 = vld [vmem:[%s3332_s27 + $0x8c8] sm:$0xff]  ;;  %v1443_v0 = vadd.f32 %v1442_v52, %v1121_v38  ;;  %v1092_v2 = vmul.f32 %v792_v41, %v492_v33 }
 0x11f   : > { %v507_v48 = vld [vmem:[%s3332_s27 + $0x840] sm:$0xff]  ;;  %v1106_v54 = vmul.f32 %v806_v37, %v506_v36  ;;  %v824_v56 = vld [vmem:[#allocation5 + $0x8c8] sm:$0xff]  ;;  %v1123_v63 = vmul.f32 %v823_v46, %v523_v45  ;;  %v525_v5 = vld [vmem:[%s3332_s27 + $0x8d0] sm:$0xff]  ;;  %v1407_v7 = vadd.f32 %v1406_v60, %v1089_v42 }
 0x120   : > { %v807_v49 = vld [vmem:[#allocation5 + $0x840] sm:$0xff]  ;;  %v1473_v58 = vld [vmem:[%s4708_s2 + $0x28] sm:$0xff]  ;;  %v825_v6 = vld [vmem:[#allocation5 + $0x8d0] sm:$0xff]  ;;  %v1124_v12 = vmul.f32 %v824_v56, %v524_v50  ;;  %v1444_v13 = vadd.f32 %v1443_v0, %v1122_v51  ;;  %2559 = vmatpush3.bf16.msra.mxu0 %v2558_v53  ;;  %v1410_v25 = vsel %vm1166_vm0, %v1092_v2, 0.0 }
 0x121   : > { %v1472_v57 = vld [vmem:[%s4708_s2 + $0x20] sm:$0xff]  ;;  %v508_v61 = vld [vmem:[%s3332_s27 + $0x848] sm:$0xff]  ;;  %v1107_v3 = vmul.f32 %v807_v49, %v507_v48  ;;  %v509_v9 = vld [vmem:[%s3332_s27 + $0x850] sm:$0xff]  ;;  %v1426_v16 = vadd.f32 %v1425_v4, %v1106_v54  ;;  %2560 = vmatprep.subr.bf16.mxu0 %v3117_v8  ;;  %v1408_v20 = vadd.f32 %v1407_v7, %v1090_v59  ;;  %v1125_v23 = vmul.f32 %v825_v6, %v525_v5 }
 0x122   : > { %v808_v62 = vld [vmem:[#allocation5 + $0x848] sm:$0xff]  ;;  %v809_v10 = vld [vmem:[#allocation5 + $0x850] sm:$0xff]  ;;  %v526_v11 = vld [vmem:[%s3332_s27 + $0x8d8] sm:$0xff]  ;;  %v2561_v14 = vpack.c.bf16 %v1473_v58, %v1472_v57  ;;  %v1445_v24 = vadd.f32 %v1444_v13, %v1123_v63 }
 0x123   : > { %v1108_v15 = vmul.f32 %v808_v62, %v508_v61  ;;  %v826_v17 = vld [vmem:[#allocation5 + $0x8d8] sm:$0xff]  ;;  %v1474_v18 = vld [vmem:[%s4708_s2 + $0x30] sm:$0xff]  ;;  %v1109_v26 = vmul.f32 %v809_v10, %v509_v9  ;;  %v1427_v27 = vadd.f32 %v1426_v16, %v1107_v3  ;;  %v527_v28 = vld [vmem:[%s3332_s27 + $0x8e0] sm:$0xff]  ;;  %v1409_v30 = vadd.f32 %v1408_v20, %v1091_v1 }
 0x124   : > { %v1475_v19 = vld [vmem:[%s4708_s2 + $0x38] sm:$0xff]  ;;  %v827_v29 = vld [vmem:[#allocation5 + $0x8e0] sm:$0xff]  ;;  %v1126_v33 = vmul.f32 %v826_v17, %v526_v11  ;;  %v1446_v34 = vadd.f32 %v1445_v24, %v1124_v12  ;;  %2562 = vmatpush3.bf16.msra.mxu0 %v2561_v14  ;;  %v528_v38 = vld [vmem:[%s3332_s27 + $0x8e8] sm:$0xff] }
 0x125   : > { %v510_v21 = vld [vmem:[%s3332_s27 + $0x858] sm:$0xff]  ;;  %v511_v31 = vld [vmem:[%s3332_s27 + $0x860] sm:$0xff]  ;;  %v2564_v35 = vpack.c.bf16 %v1475_v19, %v1474_v18  ;;  %v1428_v37 = vadd.f32 %v1427_v27, %v1108_v15  ;;  %v828_v39 = vld [vmem:[#allocation5 + $0x8e8] sm:$0xff]  ;;  %2563 = vmatprep.subr.bf16.mxu0 %v3117_v8  ;;  %v1411_v40 = vadd.f32 %v1410_v25, %v1409_v30  ;;  %v1127_v43 = vmul.f32 %v827_v29, %v527_v28 }
 0x126   : > { %v810_v22 = vld [vmem:[#allocation5 + $0x858] sm:$0xff]  ;;  %v811_v32 = vld [vmem:[#allocation5 + $0x860] sm:$0xff]  ;;  %v512_v41 = vld [vmem:[%s3332_s27 + $0x868] sm:$0xff]  ;;  %v1447_v44 = vadd.f32 %v1446_v34, %v1125_v23  ;;  %v1128_v51 = vmul.f32 %v828_v39, %v528_v38 }
 0x127   : > { %v1110_v36 = vmul.f32 %v810_v22, %v510_v21  ;;  %v812_v42 = vld [vmem:[#allocation5 + $0x868] sm:$0xff]  ;;  %v1111_v45 = vmul.f32 %v811_v32, %v511_v31  ;;  %v1429_v46 = vadd.f32 %v1428_v37, %v1109_v26  ;;  %v529_v47 = vld [vmem:[%s3332_s27 + $0x8f0] sm:$0xff]  ;;  %1412 = vadd.xlane.f32.xlu1 %v1411_v40  ;;  %v530_v55 = vld [vmem:[%s3332_s27 + $0x8f8] sm:$0xff] }
 0x128   : > { %v829_v48 = vld [vmem:[#allocation5 + $0x8f0] sm:$0xff]  ;;  %v1448_v52 = vadd.f32 %v1447_v44, %v1126_v33  ;;  %2565 = vmatpush3.bf16.msra.mxu0 %v2564_v35  ;;  %v1112_v53 = vmul.f32 %v812_v42, %v512_v41  ;;  %v830_v56 = vld [vmem:[#allocation5 + $0x8f8] sm:$0xff]  ;;  %v531_v63 = vld [vmem:[%s3332_s27 + $0x900] sm:$0xff] }
 0x129   : > { %v513_v49 = vld [vmem:[%s3332_s27 + $0x870] sm:$0xff]  ;;  %v1430_v54 = vadd.f32 %v1429_v46, %v1110_v36  ;;  %2566 = vmatprep.subr.bf16.mxu0 %v3117_v8  ;;  %v514_v57 = vld [vmem:[%s3332_s27 + $0x878] sm:$0xff]  ;;  %v1129_v59 = vmul.f32 %v829_v48, %v529_v47  ;;  %v831_v0 = vld [vmem:[#allocation5 + $0x900] sm:$0xff]  ;;  %v1130_v4 = vmul.f32 %v830_v56, %v530_v55 }
 0x12a   : > { %v813_v50 = vld [vmem:[#allocation5 + $0x870] sm:$0xff]  ;;  %v814_v58 = vld [vmem:[#allocation5 + $0x878] sm:$0xff]  ;;  %v1449_v60 = vadd.f32 %v1448_v52, %v1127_v43  ;;  %v515_v1 = vld [vmem:[%s3332_s27 + $0x880] sm:$0xff]  ;;  %v1131_v14 = vmul.f32 %v831_v0, %v531_v63 }
 0x12b   : > { %v1113_v61 = vmul.f32 %v813_v50, %v513_v49  ;;  %v1431_v62 = vadd.f32 %v1430_v54, %v1111_v45  ;;  %v517_v2 = vld [vmem:[%s3332_s27 + $0x890] sm:$0xff]  ;;  %v815_v3 = vld [vmem:[#allocation5 + $0x880] sm:$0xff]  ;;  %v1114_v7 = vmul.f32 %v814_v58, %v514_v57  ;;  %v532_v10 = vld [vmem:[%s3332_s27 + $0x908] sm:$0xff] }
 0x12c   : > { %v1450_v5 = vadd.f32 %v1449_v60, %v1128_v51  ;;  %v817_v6 = vld [vmem:[#allocation5 + $0x890] sm:$0xff]  ;;  %v832_v11 = vld [vmem:[#allocation5 + $0x908] sm:$0xff]  ;;  %v1115_v16 = vmul.f32 %v815_v3, %v515_v1  ;;  %v534_v25 = vld [vmem:[%s3332_s27 + $0x918] sm:$0xff] }
 0x12d   : > { %v1432_v9 = vadd.f32 %v1431_v62, %v1112_v53  ;;  %v516_v12 = vld [vmem:[%s3332_s27 + $0x888] sm:$0xff]  ;;  %v533_v18 = vld [vmem:[%s3332_s27 + $0x910] sm:$0xff]  ;;  %v1117_v20 = vmul.f32 %v817_v6, %v517_v2  ;;  %v1132_v21 = vmul.f32 %v832_v11, %v532_v10  ;;  %v834_v26 = vld [vmem:[#allocation5 + $0x918] sm:$0xff] }
 0x12e   : > { %v816_v13 = vld [vmem:[#allocation5 + $0x888] sm:$0xff]  ;;  %v1451_v15 = vadd.f32 %v1450_v5, %v1129_v59  ;;  %v833_v19 = vld [vmem:[#allocation5 + $0x910] sm:$0xff]  ;;  %v535_v30 = vld [vmem:[%s3332_s27 + $0x920] sm:$0xff]  ;;  %v1134_v33 = vmul.f32 %v834_v26, %v534_v25 }
 0x12f   : > { %v1433_v17 = vadd.f32 %v1432_v9, %v1113_v61  ;;  %v1116_v23 = vmul.f32 %v816_v13, %v516_v12  ;;  %v1133_v27 = vmul.f32 %v833_v19, %v533_v18  ;;  %v835_v31 = vld [vmem:[#allocation5 + $0x920] sm:$0xff]  ;;  %v1437_v32 = vsel %vm1166_vm0, %v1117_v20, 0.0  ;;  %v536_v36 = vld [vmem:[%s3332_s27 + $0x928] sm:$0xff]  ;;  %v537_v41 = vld [vmem:[%s3332_s27 + $0x930] sm:$0xff] }
 0x130   : > { %v1452_v22 = vadd.f32 %v1451_v15, %v1130_v4  ;;  %v836_v37 = vld [vmem:[#allocation5 + $0x928] sm:$0xff]  ;;  %v1135_v38 = vmul.f32 %v835_v31, %v535_v30  ;;  %v837_v42 = vld [vmem:[#allocation5 + $0x930] sm:$0xff]  ;;  %v1476_v45 = vld [vmem:[%s4708_s2 + $0x40] sm:$0xff]  ;;  %v3119_v12 = vmov 0.0   ;;  %v1492_v13 = vlaneseq }
 0x131   : > { %v1434_v24 = vadd.f32 %v1433_v17, %v1114_v7  ;;  %v1136_v43 = vmul.f32 %v836_v37, %v536_v36  ;;  %v1477_v46 = vld [vmem:[%s4708_s2 + $0x48] sm:$0xff]  ;;  %v538_v47 = vld [vmem:[%s3332_s27 + $0x938] sm:$0xff]  ;;  %v1137_v50 = vmul.f32 %v837_v42, %v537_v41  ;;  %v539_v52 = vld [vmem:[%s3332_s27 + $0x940] sm:$0xff]  ;;  %2546 = vmatprep.mubr.msk.f32.mxu0 %vm3118_vm1, %v3119_v12  ;;  %2549 = vmatprep.subr.mxu1 %v3119_v12 }
 0x132   : > { %v1453_v28 = vadd.f32 %v1452_v22, %v1131_v14  ;;  %v838_v48 = vld [vmem:[#allocation5 + $0x938] sm:$0xff]  ;;  %v2567_v49 = vpack.c.bf16 %v1477_v46, %v1476_v45  ;;  %v839_v53 = vld [vmem:[#allocation5 + $0x940] sm:$0xff]  ;;  %v540_v56 = vld [vmem:[%s3332_s27 + $0x948] sm:$0xff]  ;;  %2551 = vmatprep.mubr.msk.f32.mxu1 %vm3118_vm1, %v3119_v12  ;;  %v1170_v14 = vpop.xlane.xlu0 %1169  ;;  %v1493_v15 = vand.u32 127, %v1492_v13  ;;  %v3696_v18 = vshrl.u32 %v1492_v13, 7 }
 0x133   : > { %v1435_v29 = vadd.f32 %v1434_v24, %v1115_v16  ;;  %v1138_v54 = vmul.f32 %v838_v48, %v538_v47  ;;  %v840_v57 = vld [vmem:[#allocation5 + $0x948] sm:$0xff]  ;;  %v542_v58 = vld [vmem:[%s3332_s27 + $0x958] sm:$0xff]  ;;  %v1139_v60 = vmul.f32 %v839_v53, %v539_v52  ;;  %v541_v62 = vld [vmem:[%s3332_s27 + $0x950] sm:$0xff]  ;;  %v1224_v17 = vpop.xlane.xlu1 %1223 }
 0x134   : > { %v1454_v34 = vadd.f32 %v1453_v28, %v1132_v21  ;;  %2568 = vmatpush3.bf16.msra.mxu0 %v2567_v49  ;;  %v842_v59 = vld [vmem:[#allocation5 + $0x958] sm:$0xff]  ;;  %v841_v63 = vld [vmem:[#allocation5 + $0x950] sm:$0xff]  ;;  %v1140_v0 = vmul.f32 %v840_v57, %v540_v56  ;;  %v1498_v16 = vadd.s32 4294967288, %v1493_v15  ;;  %v1505_v21 = vadd.s32 4294967280, %v1493_v15 }
 0x135   : > { %v1436_v35 = vadd.f32 %v1435_v29, %v1116_v23  ;;  %2569 = vmatprep.subr.bf16.mxu0 %v3117_v8  ;;  %v1142_v2 = vmul.f32 %v842_v59, %v542_v58  ;;  %v1141_v3 = vmul.f32 %v841_v63, %v541_v62  ;;  %v1478_v8 = vld [vmem:[%s4708_s2 + $0x50] sm:$0xff]  ;;  %v1479_v10 = vld [vmem:[%s4708_s2 + $0x58] sm:$0xff]  ;;  %v1496_v22 = vsub.s32 %v1493_v15, %v3696_v18 }
 0x136   : > { %v1455_v39 = vadd.f32 %v1454_v34, %v1133_v27  ;;  %v2570_v11 = vpack.c.bf16 %v1479_v10, %v1478_v8  ;;  %v1501_v20 = vsub.s32 %v1498_v16, %v3696_v18  ;;  %v1512_v23 = vadd.s32 4294967272, %v1493_v15  ;;  %v1649_v10 = vld [vmem:[#allocation7] sm:$0x3f] }
 0x137   : > { %v1438_v40 = vadd.f32 %v1437_v32, %v1436_v35  ;;  %v1464_v6 = vsel %vm1166_vm0, %v1142_v2, 0.0  ;;  %v1508_v27 = vsub.s32 %v1505_v21, %v3696_v18  ;;  %v1519_v28 = vadd.s32 4294967264, %v1493_v15  ;;  %2550 = vmatpush3.msk.msra.mxu1 %vm1654_vm14, %v1649_v10  ;;  %v2679_v10 = vld [vmem:[%s3332_s27] sm:$0xff] }
 0x138   : > { %v1456_v44 = vadd.f32 %v1455_v39, %v1134_v33  ;;  %2571 = vmatpush3.bf16.msra.mxu0 %v2570_v11  ;;  %v1497_v29 = vrot.slane %v1170_v14, %v1496_v22  ;;  %v1515_v30 = vsub.s32 %v1512_v23, %v3696_v18  ;;  %v1526_v32 = vadd.s32 4294967256, %v1493_v15  ;;  %v2654_v23 = vld [vmem:[%s3332_s27 + $0xc8] sm:$0xff] }
 0x139   : > { %1439 = vadd.xlane.f32.xlu0 %v1438_v40  ;;  %v1509_v33 = vrot.slane %v1224_v17, %v1508_v27  ;;  %v1522_v34 = vsub.s32 %v1519_v28, %v3696_v18  ;;  %v1533_v36 = vadd.s32 4294967248, %v1493_v15  ;;  %v1540_v41 = vadd.s32 4294967240, %v1493_v15  ;;  %v2656_v27 = vld [vmem:[%s3332_s27 + $0xd8] sm:$0xff] }
 0x13a   : > { %v1457_v51 = vadd.f32 %v1456_v44, %v1135_v38  ;;  %v1529_v40 = vsub.s32 %v1526_v32, %v3696_v18  ;;  %v1547_v44 = vadd.s32 4294967232, %v1493_v15  ;;  %v1568_v63 = vadd.s32 4294967208, %v1493_v15 }
 0x13b   : > { %v1543_v48 = vsub.s32 %v1540_v41, %v3696_v18  ;;  %v2663_v41 = vld [vmem:[%s3332_s27 + $0x110] sm:$0xff] }
 0x13c   : > { %v1458_v55 = vadd.f32 %v1457_v51, %v1136_v43  ;;  %v1536_v43 = vsub.s32 %v1533_v36, %v3696_v18  ;;  %v1550_v53 = vsub.s32 %v1547_v44, %v3696_v18 }
 0x13e   : > { %v1459_v61 = vadd.f32 %v1458_v55, %v1137_v50  ;;  %v1554_v50 = vadd.s32 4294967224, %v1493_v15 }
 0x140   : > { %v1460_v1 = vadd.f32 %v1459_v61, %v1138_v54  ;;  %v1561_v54 = vadd.s32 4294967216, %v1493_v15  ;;  %v1557_v57 = vsub.s32 %v1554_v50, %v3696_v18 }
 0x142   : > { %v1461_v4 = vadd.f32 %v1460_v1, %v1139_v60  ;;  %v1564_v61 = vsub.s32 %v1561_v54, %v3696_v18 }
 0x144   : > { %v1462_v5 = vadd.f32 %v1461_v4, %v1140_v0  ;;  %v1571_v4 = vsub.s32 %v1568_v63, %v3696_v18 }
 0x146   : > { %v1463_v7 = vadd.f32 %v1462_v5, %v1141_v3 }
 0x148   : > { %v1465_v9 = vadd.f32 %v1464_v6, %v1463_v7 }
 0x14a   : > { %1466 = vadd.xlane.f32.xlu1 %v1465_v9  ;;  %v1197_v19 = vpop.xlane.xlu0 %1196 }
 0x14b   : > { %v1502_v25 = vrot.slane %v1197_v19, %v1501_v20  ;;  %v1736_v20 = vsub.s32 0, %v3696_v18 }
 0x14d   : > { %v1504_v31 = vsel %vm1503_vm2, %v1502_v25, %v1497_v29  ;;  %v2655_v25 = vld [vmem:[%s3332_s27 + $0xd0] sm:$0xff]  ;;  %v2657_v29 = vld [vmem:[%s3332_s27 + $0xe0] sm:$0xff] }
 0x14e   : > { %v1511_v39 = vsel %vm1510_vm3, %v1509_v33, %v1504_v31  ;;  %v2658_v31 = vld [vmem:[%s3332_s27 + $0xe8] sm:$0xff]  ;;  %v2659_v33 = vld [vmem:[%s3332_s27 + $0xf0] sm:$0xff] }
 0x159   : > { %v1251_v24 = vpop.xlane.xlu1 %1250 }
 0x15a   : > { %v1516_v37 = vrot.slane %v1251_v24, %v1515_v30 }
 0x15c   : > { %v1518_v45 = vsel %vm1517_vm4, %v1516_v37, %v1511_v39  ;;  %v2661_v37 = vld [vmem:[%s3332_s27 + $0x100] sm:$0xff]  ;;  %v2662_v39 = vld [vmem:[%s3332_s27 + $0x108] sm:$0xff] }
 0x164   : > { %v1278_v26 = vpop.xlane.xlu0 %1277 }
 0x165   : > { %v1523_v42 = vrot.slane %v1278_v26, %v1522_v34 }
 0x167   : > { %v1525_v51 = vsel %vm1524_vm5, %v1523_v42, %v1518_v45  ;;  %v2665_v45 = vld [vmem:[%s3332_s27 + $0x120] sm:$0xff] }
 0x174   : > { %v1305_v35 = vpop.xlane.xlu1 %1304 }
 0x175   : > { %v1530_v47 = vrot.slane %v1305_v35, %v1529_v40  ;;  %v2660_v35 = vld [vmem:[%s3332_s27 + $0xf8] sm:$0xff] }
 0x177   : > { %v1532_v55 = vsel %vm1531_vm6, %v1530_v47, %v1525_v51  ;;  %v2666_v47 = vld [vmem:[%s3332_s27 + $0x128] sm:$0xff]  ;;  %v2668_v51 = vld [vmem:[%s3332_s27 + $0x138] sm:$0xff] }
 0x183   : > { %v1332_v38 = vpop.xlane.xlu0 %1331 }
 0x184   : > { %v1537_v52 = vrot.slane %v1332_v38, %v1536_v43  ;;  %v2664_v43 = vld [vmem:[%s3332_s27 + $0x118] sm:$0xff] }
 0x186   : > { %v1539_v58 = vsel %vm1538_vm7, %v1537_v52, %v1532_v55 }
 0x192   : > { %v1359_v46 = vpop.xlane.xlu1 %1358 }
 0x193   : > { %v1544_v56 = vrot.slane %v1359_v46, %v1543_v48 }
 0x195   : > { %v1546_v0 = vsel %vm1545_vm8, %v1544_v56, %v1539_v58  ;;  %v2670_v56 = vld [vmem:[%s3332_s27 + $0x148] sm:$0xff]  ;;  %v2671_v58 = vld [vmem:[%s3332_s27 + $0x150] sm:$0xff] }
 0x1a3   : > { %v1386_v49 = vpop.xlane.xlu0 %1385 }
 0x1a4   : > { %v1551_v59 = vrot.slane %v1386_v49, %v1550_v53  ;;  %v2667_v49 = vld [vmem:[%s3332_s27 + $0x130] sm:$0xff]  ;;  %v2669_v53 = vld [vmem:[%s3332_s27 + $0x140] sm:$0xff] }
 0x1a6   : > { %v1553_v2 = vsel %vm1552_vm9, %v1551_v59, %v1546_v0  ;;  %v2674_v0 = vld [vmem:[%s3332_s27 + $0x168] sm:$0xff] }
 0x1b4   : > { %v1413_v60 = vpop.xlane.xlu1 %1412 }
 0x1b5   : > { %v1558_v1 = vrot.slane %v1413_v60, %v1557_v57  ;;  %v2672_v60 = vld [vmem:[%s3332_s27 + $0x158] sm:$0xff] }
 0x1b7   : > { %v1560_v5 = vsel %vm1559_vm10, %v1558_v1, %v1553_v2  ;;  %v2675_v2 = vld [vmem:[%s3332_s27 + $0x170] sm:$0xff] }
 0x1c6   : > { %v1440_v62 = vpop.xlane.xlu0 %1439 }
 0x1c7   : > { %v1565_v3 = vrot.slane %v1440_v62, %v1564_v61  ;;  %v2673_v62 = vld [vmem:[%s3332_s27 + $0x160] sm:$0xff] }
 0x1c9   : > { %v1567_v6 = vsel %vm1566_vm11, %v1565_v3, %v1560_v5 }
 0x1d7   : > { %v1467_v7 = vpop.xlane.xlu1 %1466 }
 0x1d8   : > { %v1572_v9 = vrot.slane %v1467_v7, %v1571_v4  ;;  %v2676_v4 = vld [vmem:[%s3332_s27 + $0x178] sm:$0xff] }
 0x1da   : > { %v1574_v8 = vsel %vm1573_vm12, %v1572_v9, %v1567_v6  ;;  %v2677_v6 = vld [vmem:[%s3332_s27 + $0x180] sm:$0xff]  ;;  %v2678_v9 = vld [vmem:[%s3332_s27 + $0x188] sm:$0xff] }
 0x1db   : > { %2547 = vmatmul.mubr.msk.f32.vlgmr.msra.gmra.mrb[0].mxu0 %vm1575_vm13, %v1574_v8 }
 0x2ae   : > { %v1644_v11 = vpop.f32.mrb[0].mxu0 }
 0x2af   : > { %v1648_v12 = vmax.f32 %v1644_v11, 0.0  ;;  %v2548_v13 = vpop.f32.mrb[1].mxu0 }
 0x2b1   : > { %2552 = vmatmul.mubr.msk.f32.vlgmr.msra.gmra.mrb[0].mxu1 %vm1650_vm15, %v1648_v12  ;;  %v2680_v12 = vld [vmem:[%s3332_s27 + $0x8] sm:$0xff] }
 0x384   : > { %v1724_v14 = vpop.f32.mrb[0].mxu1 }
 0x385   : > { %v2503_v15 = vmul.f32 -1.442695, %v1724_v14  ;;  %v2553_v16 = vpop.f32.mrb[1].mxu1  ;;  %v2681_v14 = vld [vmem:[%s3332_s27 + $0x10] sm:$0xff] }
 0x386   : > { %v2682_v16 = vld [vmem:[%s3332_s27 + $0x18] sm:$0xff] }
 0x387   : > { %2650 = vpow2.f32 %v2503_v15 }
 0x391   : > { %v2651_v17 = vpop.eup %2650 }
 0x392   : > { %v1731_v19 = vadd.f32 1.0, %v2651_v17 }
 0x394   : > { %2652 = vrcp.f32 %v1731_v19  ;;  %v2683_v19 = vld [vmem:[%s3332_s27 + $0x20] sm:$0xff] }
 0x39e   : > { %v2653_v21 = vpop.eup %2652 }
 0x39f   : > { %v1737_v22 = vrot.slane %v2653_v21, %v1736_v20  ;;  %v2684_v21 = vld [vmem:[%s3332_s27 + $0x28] sm:$0xff] }
 0x3a1   : > { %1743 = vbcast.lane.b32.xlu1 %v1737_v22, 264  ;;  %1739 = vbcast.lane.b32.xlu0 %v1737_v22, 256 }
 0x3a5   : > { %1747 = vbcast.lane.b32.xlu1 %v1737_v22, 272  ;;  %1755 = vbcast.lane.b32.xlu0 %v1737_v22, 288 }
 0x3a9   : > { %1751 = vbcast.lane.b32.xlu1 %v1737_v22, 280  ;;  %1763 = vbcast.lane.b32.xlu0 %v1737_v22, 304 }
 0x3ad   : > { %1759 = vbcast.lane.b32.xlu1 %v1737_v22, 296  ;;  %1771 = vbcast.lane.b32.xlu0 %v1737_v22, 320 }
 0x3b1   : > { %1767 = vbcast.lane.b32.xlu1 %v1737_v22, 312  ;;  %1779 = vbcast.lane.b32.xlu0 %v1737_v22, 336 }
 0x3b5   : > { %1775 = vbcast.lane.b32.xlu1 %v1737_v22, 328 }
 0x3b9   : > { %1783 = vbcast.lane.b32.xlu1 %v1737_v22, 344 }
 0x413   : > { %v3711_v18 = vpop.permute.xlu1 %1743  ;;  %v3757_v55 = vpop.permute.xlu0 %1739 }
 0x414   : > { %v1810_v24 = vmul.f32 %v2654_v23, %v3711_v18  ;;  %v1811_v26 = vmul.f32 %v2655_v25, %v3711_v18  ;;  %v1812_v28 = vmul.f32 %v2656_v27, %v3711_v18  ;;  %v1813_v30 = vmul.f32 %v2657_v29, %v3711_v18 }
 0x415   : > { %v1814_v32 = vmul.f32 %v2658_v31, %v3711_v18  ;;  %v1815_v34 = vmul.f32 %v2659_v33, %v3711_v18  ;;  %v1816_v36 = vmul.f32 %v2660_v35, %v3711_v18  ;;  %v1817_v38 = vmul.f32 %v2661_v37, %v3711_v18 }
 0x416   : > { %v1818_v40 = vmul.f32 %v2662_v39, %v3711_v18  ;;  %v1819_v42 = vmul.f32 %v2663_v41, %v3711_v18  ;;  %v1820_v44 = vmul.f32 %v2664_v43, %v3711_v18  ;;  %v1821_v46 = vmul.f32 %v2665_v45, %v3711_v18  ;;  %2110 = vst [vmem:[%s3739_s24 + $0xc8] sm:$0xff] %v1810_v24  ;;  %v2686_v24 = vld [vmem:[%s3332_s27 + $0x38] sm:$0xff]  ;;  %v2695_v43 = vld [vmem:[%s3332_s27 + $0x80] sm:$0xff]  ;;  %v2696_v45 = vld [vmem:[%s3332_s27 + $0x88] sm:$0xff] }
 0x417   : > { %2111 = vst [vmem:[%s3739_s24 + $0xd0] sm:$0xff] %v1811_v26  ;;  %2112 = vst [vmem:[%s3739_s24 + $0xd8] sm:$0xff] %v1812_v28  ;;  %v1822_v48 = vmul.f32 %v2666_v47, %v3711_v18  ;;  %v1823_v50 = vmul.f32 %v2667_v49, %v3711_v18  ;;  %v1824_v52 = vmul.f32 %v2668_v51, %v3711_v18  ;;  %v2687_v26 = vld [vmem:[%s3332_s27 + $0x40] sm:$0xff]  ;;  %v2688_v28 = vld [vmem:[%s3332_s27 + $0x48] sm:$0xff] }
 0x418   : > { %2113 = vst [vmem:[%s3739_s24 + $0xe0] sm:$0xff] %v1813_v30  ;;  %v1825_v54 = vmul.f32 %v2669_v53, %v3711_v18  ;;  %2114 = vst [vmem:[%s3739_s24 + $0xe8] sm:$0xff] %v1814_v32  ;;  %v1826_v57 = vmul.f32 %v2670_v56, %v3711_v18  ;;  %v1827_v59 = vmul.f32 %v2671_v58, %v3711_v18  ;;  %v2689_v30 = vld [vmem:[%s3332_s27 + $0x50] sm:$0xff]  ;;  %v2690_v32 = vld [vmem:[%s3332_s27 + $0x58] sm:$0xff] }
 0x419   : > { %2115 = vst [vmem:[%s3739_s24 + $0xf0] sm:$0xff] %v1815_v34  ;;  %2116 = vst [vmem:[%s3739_s24 + $0xf8] sm:$0xff] %v1816_v36  ;;  %v1828_v61 = vmul.f32 %v2672_v60, %v3711_v18  ;;  %v1829_v63 = vmul.f32 %v2673_v62, %v3711_v18  ;;  %v1830_v1 = vmul.f32 %v2674_v0, %v3711_v18  ;;  %v2691_v34 = vld [vmem:[%s3332_s27 + $0x60] sm:$0xff]  ;;  %v2692_v36 = vld [vmem:[%s3332_s27 + $0x68] sm:$0xff] }
 0x41a   : > { %2117 = vst [vmem:[%s3739_s24 + $0x100] sm:$0xff] %v1817_v38  ;;  %2118 = vst [vmem:[%s3739_s24 + $0x108] sm:$0xff] %v1818_v40  ;;  %v1831_v3 = vmul.f32 %v2675_v2, %v3711_v18  ;;  %v1832_v5 = vmul.f32 %v2676_v4, %v3711_v18  ;;  %v1833_v7 = vmul.f32 %v2677_v6, %v3711_v18  ;;  %v2693_v38 = vld [vmem:[%s3332_s27 + $0x70] sm:$0xff]  ;;  %v3832_v40 = vpop.permute.xlu1 %1747  ;;  %v2694_v41 = vld [vmem:[%s3332_s27 + $0x78] sm:$0xff] }
 0x41b   : > { %2119 = vst [vmem:[%s3739_s24 + $0x110] sm:$0xff] %v1819_v42  ;;  %2120 = vst [vmem:[%s3739_s24 + $0x118] sm:$0xff] %v1820_v44  ;;  %v1834_v8 = vmul.f32 %v2678_v9, %v3711_v18  ;;  %v1785_v11 = vmul.f32 %v2679_v10, %v3757_v55  ;;  %v1786_v13 = vmul.f32 %v2680_v12, %v3757_v55  ;;  %v2685_v18 = vld [vmem:[%s3332_s27 + $0x30] sm:$0xff]  ;;  %v2698_v49 = vld [vmem:[%s3332_s27 + $0x98] sm:$0xff] }
 0x41c   : > { %2121 = vst [vmem:[%s3739_s24 + $0x120] sm:$0xff] %v1821_v46  ;;  %2122 = vst [vmem:[%s3739_s24 + $0x128] sm:$0xff] %v1822_v48  ;;  %v1787_v15 = vmul.f32 %v2681_v14, %v3757_v55  ;;  %v1788_v17 = vmul.f32 %v2682_v16, %v3757_v55  ;;  %v1789_v20 = vmul.f32 %v2683_v19, %v3757_v55  ;;  %v2697_v47 = vld [vmem:[%s3332_s27 + $0x90] sm:$0xff]  ;;  %v2699_v51 = vld [vmem:[%s3332_s27 + $0xa0] sm:$0xff] }
 0x41d   : > { %2123 = vst [vmem:[%s3739_s24 + $0x130] sm:$0xff] %v1823_v50  ;;  %2124 = vst [vmem:[%s3739_s24 + $0x138] sm:$0xff] %v1824_v52  ;;  %v1790_v22 = vmul.f32 %v2684_v21, %v3757_v55  ;;  %v1791_v23 = vmul.f32 %v2685_v18, %v3757_v55  ;;  %v1792_v25 = vmul.f32 %v2686_v24, %v3757_v55  ;;  %v2700_v53 = vld [vmem:[%s3332_s27 + $0xa8] sm:$0xff]  ;;  %v2701_v56 = vld [vmem:[%s3332_s27 + $0xb0] sm:$0xff] }
 0x41e   : > { %2125 = vst [vmem:[%s3739_s24 + $0x140] sm:$0xff] %v1825_v54  ;;  %2126 = vst [vmem:[%s3739_s24 + $0x148] sm:$0xff] %v1826_v57  ;;  %v1793_v27 = vmul.f32 %v2687_v26, %v3757_v55  ;;  %v1794_v29 = vmul.f32 %v2688_v28, %v3757_v55  ;;  %v1795_v31 = vmul.f32 %v2689_v30, %v3757_v55  ;;  %v2702_v58 = vld [vmem:[%s3332_s27 + $0xb8] sm:$0xff]  ;;  %v2703_v60 = vld [vmem:[%s3332_s27 + $0xc0] sm:$0xff] }
 0x41f   : > { %2127 = vst [vmem:[%s3739_s24 + $0x150] sm:$0xff] %v1827_v59  ;;  %2128 = vst [vmem:[%s3739_s24 + $0x158] sm:$0xff] %v1828_v61  ;;  %v1796_v33 = vmul.f32 %v2690_v32, %v3757_v55  ;;  %v1797_v35 = vmul.f32 %v2691_v34, %v3757_v55  ;;  %v1798_v37 = vmul.f32 %v2692_v36, %v3757_v55  ;;  %v2704_v62 = vld [vmem:[%s3332_s27 + $0x190] sm:$0xff]  ;;  %v2705_v0 = vld [vmem:[%s3332_s27 + $0x198] sm:$0xff] }
 0x420   : > { %2129 = vst [vmem:[%s3739_s24 + $0x160] sm:$0xff] %v1829_v63  ;;  %2130 = vst [vmem:[%s3739_s24 + $0x168] sm:$0xff] %v1830_v1  ;;  %v1799_v39 = vmul.f32 %v2693_v38, %v3757_v55  ;;  %v1800_v42 = vmul.f32 %v2694_v41, %v3757_v55  ;;  %v1801_v44 = vmul.f32 %v2695_v43, %v3757_v55  ;;  %v2718_v26 = vld [vmem:[%s3332_s27 + $0x200] sm:$0xff]  ;;  %v2719_v28 = vld [vmem:[%s3332_s27 + $0x208] sm:$0xff] }
 0x421   : > { %2131 = vst [vmem:[%s3739_s24 + $0x170] sm:$0xff] %v1831_v3  ;;  %2132 = vst [vmem:[%s3739_s24 + $0x178] sm:$0xff] %v1832_v5  ;;  %v1802_v46 = vmul.f32 %v2696_v45, %v3757_v55  ;;  %v1803_v48 = vmul.f32 %v2697_v47, %v3757_v55  ;;  %v1804_v50 = vmul.f32 %v2698_v49, %v3757_v55  ;;  %v2707_v3 = vld [vmem:[%s3332_s27 + $0x1a8] sm:$0xff]  ;;  %v2708_v5 = vld [vmem:[%s3332_s27 + $0x1b0] sm:$0xff] }
 0x422   : > { %2133 = vst [vmem:[%s3739_s24 + $0x180] sm:$0xff] %v1833_v7  ;;  %2134 = vst.msk [vmem:[%s3739_s24 + $0x188] sm:$0xff] %vm1166_vm0, %v1834_v8  ;;  %v1805_v52 = vmul.f32 %v2699_v51, %v3757_v55  ;;  %v1806_v54 = vmul.f32 %v2700_v53, %v3757_v55  ;;  %v1807_v57 = vmul.f32 %v2701_v56, %v3757_v55  ;;  %v2709_v7 = vld [vmem:[%s3332_s27 + $0x1b8] sm:$0xff]  ;;  %v2710_v8 = vld [vmem:[%s3332_s27 + $0x1c0] sm:$0xff] }
 0x423   : > { %2085 = vst [vmem:[%s3739_s24] sm:$0xff] %v1785_v11  ;;  %2086 = vst [vmem:[%s3739_s24 + $0x8] sm:$0xff] %v1786_v13  ;;  %v1808_v59 = vmul.f32 %v2702_v58, %v3757_v55  ;;  %v1809_v61 = vmul.f32 %v2703_v60, %v3757_v55  ;;  %v1835_v63 = vmul.f32 %v2704_v62, %v3832_v40  ;;  %v2706_v55 = vld [vmem:[%s3332_s27 + $0x1a0] sm:$0xff]  ;;  %v2711_v11 = vld [vmem:[%s3332_s27 + $0x1c8] sm:$0xff] }
 0x424   : > { %2087 = vst [vmem:[%s3739_s24 + $0x10] sm:$0xff] %v1787_v15  ;;  %2088 = vst [vmem:[%s3739_s24 + $0x18] sm:$0xff] %v1788_v17  ;;  %v1836_v1 = vmul.f32 %v2705_v0, %v3832_v40  ;;  %v1837_v2 = vmul.f32 %v2706_v55, %v3832_v40  ;;  %v1838_v4 = vmul.f32 %v2707_v3, %v3832_v40  ;;  %v2712_v13 = vld [vmem:[%s3332_s27 + $0x1d0] sm:$0xff]  ;;  %v2713_v15 = vld [vmem:[%s3332_s27 + $0x1d8] sm:$0xff] }
 0x425   : > { %2089 = vst [vmem:[%s3739_s24 + $0x20] sm:$0xff] %v1789_v20  ;;  %2090 = vst [vmem:[%s3739_s24 + $0x28] sm:$0xff] %v1790_v22  ;;  %v1839_v6 = vmul.f32 %v2708_v5, %v3832_v40  ;;  %v1840_v9 = vmul.f32 %v2709_v7, %v3832_v40  ;;  %v1841_v10 = vmul.f32 %v2710_v8, %v3832_v40  ;;  %v2714_v17 = vld [vmem:[%s3332_s27 + $0x1e0] sm:$0xff]  ;;  %v2715_v20 = vld [vmem:[%s3332_s27 + $0x1e8] sm:$0xff] }
 0x426   : > { %2091 = vst [vmem:[%s3739_s24 + $0x30] sm:$0xff] %v1791_v23  ;;  %2092 = vst [vmem:[%s3739_s24 + $0x38] sm:$0xff] %v1792_v25  ;;  %v1842_v12 = vmul.f32 %v2711_v11, %v3832_v40  ;;  %v1843_v14 = vmul.f32 %v2712_v13, %v3832_v40  ;;  %v1844_v16 = vmul.f32 %v2713_v15, %v3832_v40  ;;  %v2716_v22 = vld [vmem:[%s3332_s27 + $0x1f0] sm:$0xff]  ;;  %v2717_v23 = vld [vmem:[%s3332_s27 + $0x1f8] sm:$0xff]  ;;  %v3907_v25 = vpop.permute.xlu0 %1755 }
 0x427   : > { %2093 = vst [vmem:[%s3739_s24 + $0x40] sm:$0xff] %v1793_v27  ;;  %2094 = vst [vmem:[%s3739_s24 + $0x48] sm:$0xff] %v1794_v29  ;;  %v1845_v19 = vmul.f32 %v2714_v17, %v3832_v40  ;;  %v1846_v21 = vmul.f32 %v2715_v20, %v3832_v40  ;;  %v1847_v18 = vmul.f32 %v2716_v22, %v3832_v40  ;;  %v2720_v30 = vld [vmem:[%s3332_s27 + $0x210] sm:$0xff]  ;;  %v2721_v32 = vld [vmem:[%s3332_s27 + $0x218] sm:$0xff] }
 0x428   : > { %2095 = vst [vmem:[%s3739_s24 + $0x50] sm:$0xff] %v1795_v31  ;;  %2096 = vst [vmem:[%s3739_s24 + $0x58] sm:$0xff] %v1796_v33  ;;  %v1848_v24 = vmul.f32 %v2717_v23, %v3832_v40  ;;  %v1849_v27 = vmul.f32 %v2718_v26, %v3832_v40  ;;  %v1850_v29 = vmul.f32 %v2719_v28, %v3832_v40  ;;  %v2722_v34 = vld [vmem:[%s3332_s27 + $0x220] sm:$0xff]  ;;  %v2723_v36 = vld [vmem:[%s3332_s27 + $0x228] sm:$0xff] }
 0x429   : > { %2097 = vst [vmem:[%s3739_s24 + $0x60] sm:$0xff] %v1797_v35  ;;  %2098 = vst [vmem:[%s3739_s24 + $0x68] sm:$0xff] %v1798_v37  ;;  %v1851_v31 = vmul.f32 %v2720_v30, %v3832_v40  ;;  %v1852_v33 = vmul.f32 %v2721_v32, %v3832_v40  ;;  %v1853_v35 = vmul.f32 %v2722_v34, %v3832_v40  ;;  %v2724_v38 = vld [vmem:[%s3332_s27 + $0x230] sm:$0xff]  ;;  %v2725_v41 = vld [vmem:[%s3332_s27 + $0x238] sm:$0xff] }
 0x42a   : > { %2099 = vst [vmem:[%s3739_s24 + $0x70] sm:$0xff] %v1799_v39  ;;  %2100 = vst [vmem:[%s3739_s24 + $0x78] sm:$0xff] %v1800_v42  ;;  %v1854_v37 = vmul.f32 %v2723_v36, %v3832_v40  ;;  %v1855_v39 = vmul.f32 %v2724_v38, %v3832_v40  ;;  %v1856_v42 = vmul.f32 %v2725_v41, %v3832_v40  ;;  %v2726_v43 = vld [vmem:[%s3332_s27 + $0x240] sm:$0xff]  ;;  %v2727_v45 = vld [vmem:[%s3332_s27 + $0x248] sm:$0xff] }
 0x42b   : > { %2101 = vst [vmem:[%s3739_s24 + $0x80] sm:$0xff] %v1801_v44  ;;  %2102 = vst [vmem:[%s3739_s24 + $0x88] sm:$0xff] %v1802_v46  ;;  %v1857_v44 = vmul.f32 %v2726_v43, %v3832_v40  ;;  %v1858_v46 = vmul.f32 %v2727_v45, %v3832_v40  ;;  %v2728_v47 = vld [vmem:[%s3332_s27 + $0x250] sm:$0xff]  ;;  %v2729_v49 = vld [vmem:[%s3332_s27 + $0x320] sm:$0xff] }
 0x42c   : > { %2103 = vst [vmem:[%s3739_s24 + $0x90] sm:$0xff] %v1803_v48  ;;  %2104 = vst [vmem:[%s3739_s24 + $0x98] sm:$0xff] %v1804_v50  ;;  %v1859_v48 = vmul.f32 %v2728_v47, %v3832_v40  ;;  %v1885_v50 = vmul.f32 %v2729_v49, %v3907_v25  ;;  %v2730_v51 = vld [vmem:[%s3332_s27 + $0x328] sm:$0xff]  ;;  %v2747_v22 = vld [vmem:[%s3332_s27 + $0x3b0] sm:$0xff] }
 0x42d   : > { %2105 = vst [vmem:[%s3739_s24 + $0xa0] sm:$0xff] %v1805_v52  ;;  %2106 = vst [vmem:[%s3739_s24 + $0xa8] sm:$0xff] %v1806_v54  ;;  %v1886_v40 = vmul.f32 %v2730_v51, %v3907_v25  ;;  %v2731_v52 = vld [vmem:[%s3332_s27 + $0x330] sm:$0xff]  ;;  %v2732_v54 = vld [vmem:[%s3332_s27 + $0x338] sm:$0xff] }
 0x42e   : > { %2107 = vst [vmem:[%s3739_s24 + $0xb0] sm:$0xff] %v1807_v57  ;;  %2108 = vst [vmem:[%s3739_s24 + $0xb8] sm:$0xff] %v1808_v59  ;;  %v1887_v53 = vmul.f32 %v2731_v52, %v3907_v25  ;;  %v1888_v56 = vmul.f32 %v2732_v54, %v3907_v25  ;;  %v2733_v57 = vld [vmem:[%s3332_s27 + $0x340] sm:$0xff]  ;;  %v2734_v59 = vld [vmem:[%s3332_s27 + $0x348] sm:$0xff] }
 0x42f   : > { %2109 = vst.msk [vmem:[%s3739_s24 + $0xc0] sm:$0xff] %vm1166_vm0, %v1809_v61  ;;  %2135 = vst [vmem:[%s3739_s24 + $0x190] sm:$0xff] %v1835_v63  ;;  %v1889_v58 = vmul.f32 %v2733_v57, %v3907_v25  ;;  %v1890_v60 = vmul.f32 %v2734_v59, %v3907_v25  ;;  %v2735_v61 = vld [vmem:[%s3332_s27 + $0x350] sm:$0xff]  ;;  %v2736_v63 = vld [vmem:[%s3332_s27 + $0x358] sm:$0xff] }
 0x430   : > { %2136 = vst [vmem:[%s3739_s24 + $0x198] sm:$0xff] %v1836_v1  ;;  %2137 = vst [vmem:[%s3739_s24 + $0x1a0] sm:$0xff] %v1837_v2  ;;  %v1891_v62 = vmul.f32 %v2735_v61, %v3907_v25  ;;  %v1892_v0 = vmul.f32 %v2736_v63, %v3907_v25  ;;  %v2737_v1 = vld [vmem:[%s3332_s27 + $0x360] sm:$0xff]  ;;  %v2738_v2 = vld [vmem:[%s3332_s27 + $0x368] sm:$0xff] }
 0x431   : > { %2138 = vst [vmem:[%s3739_s24 + $0x1a8] sm:$0xff] %v1838_v4  ;;  %2139 = vst [vmem:[%s3739_s24 + $0x1b0] sm:$0xff] %v1839_v6  ;;  %v1893_v55 = vmul.f32 %v2737_v1, %v3907_v25  ;;  %v1894_v3 = vmul.f32 %v2738_v2, %v3907_v25  ;;  %v2739_v4 = vld [vmem:[%s3332_s27 + $0x370] sm:$0xff]  ;;  %v2740_v6 = vld [vmem:[%s3332_s27 + $0x378] sm:$0xff] }
 0x432   : > { %2140 = vst [vmem:[%s3739_s24 + $0x1b8] sm:$0xff] %v1840_v9  ;;  %2141 = vst [vmem:[%s3739_s24 + $0x1c0] sm:$0xff] %v1841_v10  ;;  %v1895_v5 = vmul.f32 %v2739_v4, %v3907_v25  ;;  %v1896_v7 = vmul.f32 %v2740_v6, %v3907_v25  ;;  %v2741_v9 = vld [vmem:[%s3332_s27 + $0x380] sm:$0xff]  ;;  %v2742_v10 = vld [vmem:[%s3332_s27 + $0x388] sm:$0xff] }
 0x433   : > { %2142 = vst [vmem:[%s3739_s24 + $0x1c8] sm:$0xff] %v1842_v12  ;;  %2143 = vst [vmem:[%s3739_s24 + $0x1d0] sm:$0xff] %v1843_v14  ;;  %v1897_v8 = vmul.f32 %v2741_v9, %v3907_v25  ;;  %v1898_v11 = vmul.f32 %v2742_v10, %v3907_v25  ;;  %v2743_v12 = vld [vmem:[%s3332_s27 + $0x390] sm:$0xff]  ;;  %v2744_v14 = vld [vmem:[%s3332_s27 + $0x398] sm:$0xff] }
 0x434   : > { %2144 = vst [vmem:[%s3739_s24 + $0x1d8] sm:$0xff] %v1844_v16  ;;  %2145 = vst [vmem:[%s3739_s24 + $0x1e0] sm:$0xff] %v1845_v19  ;;  %v1899_v13 = vmul.f32 %v2743_v12, %v3907_v25  ;;  %v1900_v15 = vmul.f32 %v2744_v14, %v3907_v25  ;;  %v2745_v16 = vld [vmem:[%s3332_s27 + $0x3a0] sm:$0xff]  ;;  %v3994_v19 = vpop.permute.xlu1 %1751  ;;  %v2746_v20 = vld [vmem:[%s3332_s27 + $0x3a8] sm:$0xff] }
 0x435   : > { %2146 = vst [vmem:[%s3739_s24 + $0x1e8] sm:$0xff] %v1846_v21  ;;  %2147 = vst [vmem:[%s3739_s24 + $0x1f0] sm:$0xff] %v1847_v18  ;;  %v1901_v17 = vmul.f32 %v2745_v16, %v3907_v25  ;;  %v1902_v21 = vmul.f32 %v2746_v20, %v3907_v25  ;;  %v1903_v18 = vmul.f32 %v2747_v22, %v3907_v25  ;;  %v2748_v23 = vld [vmem:[%s3332_s27 + $0x3b8] sm:$0xff]  ;;  %v2749_v26 = vld [vmem:[%s3332_s27 + $0x3c0] sm:$0xff] }
 0x436   : > { %2148 = vst [vmem:[%s3739_s24 + $0x1f8] sm:$0xff] %v1848_v24  ;;  %2149 = vst [vmem:[%s3739_s24 + $0x200] sm:$0xff] %v1849_v27  ;;  %v1904_v24 = vmul.f32 %v2748_v23, %v3907_v25  ;;  %v1905_v27 = vmul.f32 %v2749_v26, %v3907_v25  ;;  %v2750_v28 = vld [vmem:[%s3332_s27 + $0x3c8] sm:$0xff]  ;;  %v2751_v30 = vld [vmem:[%s3332_s27 + $0x3d0] sm:$0xff] }
 0x437   : > { %2150 = vst [vmem:[%s3739_s24 + $0x208] sm:$0xff] %v1850_v29  ;;  %2151 = vst [vmem:[%s3739_s24 + $0x210] sm:$0xff] %v1851_v31  ;;  %v1906_v29 = vmul.f32 %v2750_v28, %v3907_v25  ;;  %v1907_v31 = vmul.f32 %v2751_v30, %v3907_v25  ;;  %v2752_v32 = vld [vmem:[%s3332_s27 + $0x3d8] sm:$0xff]  ;;  %v2753_v34 = vld [vmem:[%s3332_s27 + $0x3e0] sm:$0xff] }
 0x438   : > { %2152 = vst [vmem:[%s3739_s24 + $0x218] sm:$0xff] %v1852_v33  ;;  %2153 = vst [vmem:[%s3739_s24 + $0x220] sm:$0xff] %v1853_v35  ;;  %v1908_v33 = vmul.f32 %v2752_v32, %v3907_v25  ;;  %v1909_v35 = vmul.f32 %v2753_v34, %v3907_v25  ;;  %v2754_v36 = vld [vmem:[%s3332_s27 + $0x258] sm:$0xff]  ;;  %v2755_v38 = vld [vmem:[%s3332_s27 + $0x260] sm:$0xff] }
 0x439   : > { %2154 = vst [vmem:[%s3739_s24 + $0x228] sm:$0xff] %v1854_v37  ;;  %2155 = vst [vmem:[%s3739_s24 + $0x230] sm:$0xff] %v1855_v39  ;;  %v1860_v37 = vmul.f32 %v2754_v36, %v3994_v19  ;;  %v1861_v25 = vmul.f32 %v2755_v38, %v3994_v19  ;;  %v2756_v39 = vld [vmem:[%s3332_s27 + $0x268] sm:$0xff]  ;;  %v2770_v4 = vld [vmem:[%s3332_s27 + $0x2d8] sm:$0xff] }
 0x43a   : > { %2156 = vst [vmem:[%s3739_s24 + $0x238] sm:$0xff] %v1856_v42  ;;  %2157 = vst [vmem:[%s3739_s24 + $0x240] sm:$0xff] %v1857_v44  ;;  %v1862_v41 = vmul.f32 %v2756_v39, %v3994_v19  ;;  %v2757_v42 = vld [vmem:[%s3332_s27 + $0x270] sm:$0xff]  ;;  %v2758_v44 = vld [vmem:[%s3332_s27 + $0x278] sm:$0xff] }
 0x43b   : > { %2158 = vst [vmem:[%s3739_s24 + $0x248] sm:$0xff] %v1858_v46  ;;  %2159 = vst.msk [vmem:[%s3739_s24 + $0x250] sm:$0xff] %vm1166_vm0, %v1859_v48  ;;  %v1863_v43 = vmul.f32 %v2757_v42, %v3994_v19  ;;  %v1864_v45 = vmul.f32 %v2758_v44, %v3994_v19  ;;  %v2759_v46 = vld [vmem:[%s3332_s27 + $0x280] sm:$0xff]  ;;  %v2760_v48 = vld [vmem:[%s3332_s27 + $0x288] sm:$0xff] }
 0x43c   : > { %2185 = vst [vmem:[%s3739_s24 + $0x320] sm:$0xff] %v1885_v50  ;;  %2186 = vst [vmem:[%s3739_s24 + $0x328] sm:$0xff] %v1886_v40  ;;  %v1865_v47 = vmul.f32 %v2759_v46, %v3994_v19  ;;  %v1866_v49 = vmul.f32 %v2760_v48, %v3994_v19  ;;  %v2761_v50 = vld [vmem:[%s3332_s27 + $0x290] sm:$0xff]  ;;  %v2762_v40 = vld [vmem:[%s3332_s27 + $0x298] sm:$0xff] }
 0x43d   : > { %2187 = vst [vmem:[%s3739_s24 + $0x330] sm:$0xff] %v1887_v53  ;;  %2188 = vst [vmem:[%s3739_s24 + $0x338] sm:$0xff] %v1888_v56  ;;  %v1867_v51 = vmul.f32 %v2761_v50, %v3994_v19  ;;  %v1868_v52 = vmul.f32 %v2762_v40, %v3994_v19  ;;  %v2763_v53 = vld [vmem:[%s3332_s27 + $0x2a0] sm:$0xff]  ;;  %v2764_v56 = vld [vmem:[%s3332_s27 + $0x2a8] sm:$0xff] }
 0x43e   : > { %2189 = vst [vmem:[%s3739_s24 + $0x340] sm:$0xff] %v1889_v58  ;;  %2190 = vst [vmem:[%s3739_s24 + $0x348] sm:$0xff] %v1890_v60  ;;  %v1869_v54 = vmul.f32 %v2763_v53, %v3994_v19  ;;  %v1870_v57 = vmul.f32 %v2764_v56, %v3994_v19  ;;  %v2765_v58 = vld [vmem:[%s3332_s27 + $0x2b0] sm:$0xff]  ;;  %v2766_v60 = vld [vmem:[%s3332_s27 + $0x2b8] sm:$0xff] }
 0x43f   : > { %2191 = vst [vmem:[%s3739_s24 + $0x350] sm:$0xff] %v1891_v62  ;;  %2192 = vst [vmem:[%s3739_s24 + $0x358] sm:$0xff] %v1892_v0  ;;  %v1871_v59 = vmul.f32 %v2765_v58, %v3994_v19  ;;  %v1872_v61 = vmul.f32 %v2766_v60, %v3994_v19  ;;  %v2767_v62 = vld [vmem:[%s3332_s27 + $0x2c0] sm:$0xff]  ;;  %v2768_v0 = vld [vmem:[%s3332_s27 + $0x2c8] sm:$0xff] }
 0x440   : > { %2193 = vst [vmem:[%s3739_s24 + $0x360] sm:$0xff] %v1893_v55  ;;  %2194 = vst [vmem:[%s3739_s24 + $0x368] sm:$0xff] %v1894_v3  ;;  %v1873_v63 = vmul.f32 %v2767_v62, %v3994_v19  ;;  %v1874_v1 = vmul.f32 %v2768_v0, %v3994_v19  ;;  %v2769_v55 = vld [vmem:[%s3332_s27 + $0x2d0] sm:$0xff]  ;;  %v4069_v3 = vpop.permute.xlu0 %1763  ;;  %v2771_v6 = vld [vmem:[%s3332_s27 + $0x2e0] sm:$0xff] }
 0x441   : > { %2195 = vst [vmem:[%s3739_s24 + $0x370] sm:$0xff] %v1895_v5  ;;  %2196 = vst [vmem:[%s3739_s24 + $0x378] sm:$0xff] %v1896_v7  ;;  %v1875_v2 = vmul.f32 %v2769_v55, %v3994_v19  ;;  %v1876_v5 = vmul.f32 %v2770_v4, %v3994_v19  ;;  %v1877_v7 = vmul.f32 %v2771_v6, %v3994_v19  ;;  %v2772_v9 = vld [vmem:[%s3332_s27 + $0x2e8] sm:$0xff]  ;;  %v2773_v10 = vld [vmem:[%s3332_s27 + $0x2f0] sm:$0xff] }
 0x442   : > { %2197 = vst [vmem:[%s3739_s24 + $0x380] sm:$0xff] %v1897_v8  ;;  %2198 = vst [vmem:[%s3739_s24 + $0x388] sm:$0xff] %v1898_v11  ;;  %v1878_v8 = vmul.f32 %v2772_v9, %v3994_v19  ;;  %v1879_v11 = vmul.f32 %v2773_v10, %v3994_v19  ;;  %v2774_v12 = vld [vmem:[%s3332_s27 + $0x2f8] sm:$0xff]  ;;  %v2775_v14 = vld [vmem:[%s3332_s27 + $0x300] sm:$0xff] }
 0x443   : > { %2199 = vst [vmem:[%s3739_s24 + $0x390] sm:$0xff] %v1899_v13  ;;  %2200 = vst [vmem:[%s3739_s24 + $0x398] sm:$0xff] %v1900_v15  ;;  %v1880_v13 = vmul.f32 %v2774_v12, %v3994_v19  ;;  %v1881_v15 = vmul.f32 %v2775_v14, %v3994_v19  ;;  %v2776_v16 = vld [vmem:[%s3332_s27 + $0x308] sm:$0xff]  ;;  %v2777_v20 = vld [vmem:[%s3332_s27 + $0x310] sm:$0xff] }
 0x444   : > { %2201 = vst [vmem:[%s3739_s24 + $0x3a0] sm:$0xff] %v1901_v17  ;;  %2202 = vst [vmem:[%s3739_s24 + $0x3a8] sm:$0xff] %v1902_v21  ;;  %v1882_v17 = vmul.f32 %v2776_v16, %v3994_v19  ;;  %v1883_v21 = vmul.f32 %v2777_v20, %v3994_v19  ;;  %v2778_v22 = vld [vmem:[%s3332_s27 + $0x318] sm:$0xff]  ;;  %v2779_v23 = vld [vmem:[%s3332_s27 + $0x4b0] sm:$0xff] }
 0x445   : > { %2203 = vst [vmem:[%s3739_s24 + $0x3b0] sm:$0xff] %v1903_v18  ;;  %2204 = vst [vmem:[%s3739_s24 + $0x3b8] sm:$0xff] %v1904_v24  ;;  %v1884_v18 = vmul.f32 %v2778_v22, %v3994_v19  ;;  %v1935_v24 = vmul.f32 %v2779_v23, %v4069_v3  ;;  %v2780_v26 = vld [vmem:[%s3332_s27 + $0x4b8] sm:$0xff]  ;;  %v2781_v28 = vld [vmem:[%s3332_s27 + $0x4c0] sm:$0xff] }
 0x446   : > { %2205 = vst [vmem:[%s3739_s24 + $0x3c0] sm:$0xff] %v1905_v27  ;;  %2206 = vst [vmem:[%s3739_s24 + $0x3c8] sm:$0xff] %v1906_v29  ;;  %v1936_v27 = vmul.f32 %v2780_v26, %v4069_v3  ;;  %v1937_v29 = vmul.f32 %v2781_v28, %v4069_v3  ;;  %v2782_v19 = vld [vmem:[%s3332_s27 + $0x4c8] sm:$0xff]  ;;  %v2795_v56 = vld [vmem:[%s3332_s27 + $0x530] sm:$0xff] }
 0x447   : > { %2207 = vst [vmem:[%s3739_s24 + $0x3d0] sm:$0xff] %v1907_v31  ;;  %2208 = vst [vmem:[%s3739_s24 + $0x3d8] sm:$0xff] %v1908_v33  ;;  %v1938_v30 = vmul.f32 %v2782_v19, %v4069_v3  ;;  %v2783_v31 = vld [vmem:[%s3332_s27 + $0x4d0] sm:$0xff]  ;;  %v2784_v33 = vld [vmem:[%s3332_s27 + $0x4d8] sm:$0xff] }
 0x448   : > { %2209 = vst.msk [vmem:[%s3739_s24 + $0x3e0] sm:$0xff] %vm1166_vm0, %v1909_v35  ;;  %2160 = vst [vmem:[%s3739_s24 + $0x258] sm:$0xff] %v1860_v37  ;;  %v1939_v32 = vmul.f32 %v2783_v31, %v4069_v3  ;;  %v1940_v34 = vmul.f32 %v2784_v33, %v4069_v3  ;;  %v2785_v35 = vld [vmem:[%s3332_s27 + $0x4e0] sm:$0xff]  ;;  %v2786_v37 = vld [vmem:[%s3332_s27 + $0x4e8] sm:$0xff] }
 0x449   : > { %2161 = vst [vmem:[%s3739_s24 + $0x260] sm:$0xff] %v1861_v25  ;;  %2162 = vst [vmem:[%s3739_s24 + $0x268] sm:$0xff] %v1862_v41  ;;  %v1941_v36 = vmul.f32 %v2785_v35, %v4069_v3  ;;  %v1942_v38 = vmul.f32 %v2786_v37, %v4069_v3  ;;  %v2787_v25 = vld [vmem:[%s3332_s27 + $0x4f0] sm:$0xff]  ;;  %v2788_v41 = vld [vmem:[%s3332_s27 + $0x4f8] sm:$0xff] }
 0x44a   : > { %2163 = vst [vmem:[%s3739_s24 + $0x270] sm:$0xff] %v1863_v43  ;;  %2164 = vst [vmem:[%s3739_s24 + $0x278] sm:$0xff] %v1864_v45  ;;  %v1943_v39 = vmul.f32 %v2787_v25, %v4069_v3  ;;  %v1944_v42 = vmul.f32 %v2788_v41, %v4069_v3  ;;  %v2789_v43 = vld [vmem:[%s3332_s27 + $0x500] sm:$0xff]  ;;  %v2790_v45 = vld [vmem:[%s3332_s27 + $0x508] sm:$0xff] }
 0x44b   : > { %2165 = vst [vmem:[%s3739_s24 + $0x280] sm:$0xff] %v1865_v47  ;;  %2166 = vst [vmem:[%s3739_s24 + $0x288] sm:$0xff] %v1866_v49  ;;  %v1945_v44 = vmul.f32 %v2789_v43, %v4069_v3  ;;  %v1946_v46 = vmul.f32 %v2790_v45, %v4069_v3  ;;  %v2791_v47 = vld [vmem:[%s3332_s27 + $0x510] sm:$0xff]  ;;  %v2792_v49 = vld [vmem:[%s3332_s27 + $0x518] sm:$0xff] }
 0x44c   : > { %2167 = vst [vmem:[%s3739_s24 + $0x290] sm:$0xff] %v1867_v51  ;;  %2168 = vst [vmem:[%s3739_s24 + $0x298] sm:$0xff] %v1868_v52  ;;  %v1947_v48 = vmul.f32 %v2791_v47, %v4069_v3  ;;  %v1948_v50 = vmul.f32 %v2792_v49, %v4069_v3  ;;  %v2793_v51 = vld [vmem:[%s3332_s27 + $0x520] sm:$0xff]  ;;  %v4144_v52 = vpop.permute.xlu1 %1759  ;;  %v2794_v53 = vld [vmem:[%s3332_s27 + $0x528] sm:$0xff] }
 0x44d   : > { %2169 = vst [vmem:[%s3739_s24 + $0x2a0] sm:$0xff] %v1869_v54  ;;  %2170 = vst [vmem:[%s3739_s24 + $0x2a8] sm:$0xff] %v1870_v57  ;;  %v1949_v40 = vmul.f32 %v2793_v51, %v4069_v3  ;;  %v1950_v54 = vmul.f32 %v2794_v53, %v4069_v3  ;;  %v1951_v57 = vmul.f32 %v2795_v56, %v4069_v3  ;;  %v2796_v58 = vld [vmem:[%s3332_s27 + $0x538] sm:$0xff]  ;;  %v2797_v60 = vld [vmem:[%s3332_s27 + $0x540] sm:$0xff] }
 0x44e   : > { %2171 = vst [vmem:[%s3739_s24 + $0x2b0] sm:$0xff] %v1871_v59  ;;  %2172 = vst [vmem:[%s3739_s24 + $0x2b8] sm:$0xff] %v1872_v61  ;;  %v1952_v59 = vmul.f32 %v2796_v58, %v4069_v3  ;;  %v1953_v61 = vmul.f32 %v2797_v60, %v4069_v3  ;;  %v2798_v62 = vld [vmem:[%s3332_s27 + $0x548] sm:$0xff]  ;;  %v2799_v0 = vld [vmem:[%s3332_s27 + $0x550] sm:$0xff] }
 0x44f   : > { %2173 = vst [vmem:[%s3739_s24 + $0x2c0] sm:$0xff] %v1873_v63  ;;  %2174 = vst [vmem:[%s3739_s24 + $0x2c8] sm:$0xff] %v1874_v1  ;;  %v1954_v63 = vmul.f32 %v2798_v62, %v4069_v3  ;;  %v1955_v1 = vmul.f32 %v2799_v0, %v4069_v3  ;;  %v2800_v55 = vld [vmem:[%s3332_s27 + $0x558] sm:$0xff]  ;;  %v2801_v4 = vld [vmem:[%s3332_s27 + $0x560] sm:$0xff] }
 0x450   : > { %2175 = vst [vmem:[%s3739_s24 + $0x2d0] sm:$0xff] %v1875_v2  ;;  %2176 = vst [vmem:[%s3739_s24 + $0x2d8] sm:$0xff] %v1876_v5  ;;  %v1956_v2 = vmul.f32 %v2800_v55, %v4069_v3  ;;  %v1957_v5 = vmul.f32 %v2801_v4, %v4069_v3  ;;  %v2802_v6 = vld [vmem:[%s3332_s27 + $0x568] sm:$0xff]  ;;  %v2803_v9 = vld [vmem:[%s3332_s27 + $0x570] sm:$0xff] }
 0x451   : > { %2177 = vst [vmem:[%s3739_s24 + $0x2e0] sm:$0xff] %v1877_v7  ;;  %2178 = vst [vmem:[%s3739_s24 + $0x2e8] sm:$0xff] %v1878_v8  ;;  %v1958_v7 = vmul.f32 %v2802_v6, %v4069_v3  ;;  %v1959_v8 = vmul.f32 %v2803_v9, %v4069_v3  ;;  %v2804_v10 = vld [vmem:[%s3332_s27 + $0x3e8] sm:$0xff]  ;;  %v2805_v12 = vld [vmem:[%s3332_s27 + $0x3f0] sm:$0xff] }
 0x452   : > { %2179 = vst [vmem:[%s3739_s24 + $0x2f0] sm:$0xff] %v1879_v11  ;;  %2180 = vst [vmem:[%s3739_s24 + $0x2f8] sm:$0xff] %v1880_v13  ;;  %v1910_v11 = vmul.f32 %v2804_v10, %v4144_v52  ;;  %v1911_v13 = vmul.f32 %v2805_v12, %v4144_v52  ;;  %v2806_v3 = vld [vmem:[%s3332_s27 + $0x3f8] sm:$0xff]  ;;  %v2819_v41 = vld [vmem:[%s3332_s27 + $0x460] sm:$0xff] }
 0x453   : > { %2181 = vst [vmem:[%s3739_s24 + $0x300] sm:$0xff] %v1881_v15  ;;  %2182 = vst [vmem:[%s3739_s24 + $0x308] sm:$0xff] %v1882_v17  ;;  %v1912_v14 = vmul.f32 %v2806_v3, %v4144_v52  ;;  %v2807_v15 = vld [vmem:[%s3332_s27 + $0x400] sm:$0xff]  ;;  %v2808_v17 = vld [vmem:[%s3332_s27 + $0x408] sm:$0xff] }
 0x454   : > { %2183 = vst [vmem:[%s3739_s24 + $0x310] sm:$0xff] %v1883_v21  ;;  %2184 = vst.msk [vmem:[%s3739_s24 + $0x318] sm:$0xff] %vm1166_vm0, %v1884_v18  ;;  %v1913_v16 = vmul.f32 %v2807_v15, %v4144_v52  ;;  %v1914_v20 = vmul.f32 %v2808_v17, %v4144_v52  ;;  %v2809_v21 = vld [vmem:[%s3332_s27 + $0x410] sm:$0xff]  ;;  %v2810_v18 = vld [vmem:[%s3332_s27 + $0x418] sm:$0xff] }
 0x455   : > { %2235 = vst [vmem:[%s3739_s24 + $0x4b0] sm:$0xff] %v1935_v24  ;;  %2236 = vst [vmem:[%s3739_s24 + $0x4b8] sm:$0xff] %v1936_v27  ;;  %v1915_v22 = vmul.f32 %v2809_v21, %v4144_v52  ;;  %v1916_v23 = vmul.f32 %v2810_v18, %v4144_v52  ;;  %v2811_v24 = vld [vmem:[%s3332_s27 + $0x420] sm:$0xff]  ;;  %v2812_v27 = vld [vmem:[%s3332_s27 + $0x428] sm:$0xff] }
 0x456   : > { %2237 = vst [vmem:[%s3739_s24 + $0x4c0] sm:$0xff] %v1937_v29  ;;  %2238 = vst [vmem:[%s3739_s24 + $0x4c8] sm:$0xff] %v1938_v30  ;;  %v1917_v26 = vmul.f32 %v2811_v24, %v4144_v52  ;;  %v1918_v28 = vmul.f32 %v2812_v27, %v4144_v52  ;;  %v2813_v29 = vld [vmem:[%s3332_s27 + $0x430] sm:$0xff]  ;;  %v2814_v30 = vld [vmem:[%s3332_s27 + $0x438] sm:$0xff] }
 0x457   : > { %2239 = vst [vmem:[%s3739_s24 + $0x4d0] sm:$0xff] %v1939_v32  ;;  %2240 = vst [vmem:[%s3739_s24 + $0x4d8] sm:$0xff] %v1940_v34  ;;  %v1919_v19 = vmul.f32 %v2813_v29, %v4144_v52  ;;  %v1920_v31 = vmul.f32 %v2814_v30, %v4144_v52  ;;  %v2815_v32 = vld [vmem:[%s3332_s27 + $0x440] sm:$0xff]  ;;  %v2816_v34 = vld [vmem:[%s3332_s27 + $0x448] sm:$0xff] }
 0x458   : > { %2241 = vst [vmem:[%s3739_s24 + $0x4e0] sm:$0xff] %v1941_v36  ;;  %2242 = vst [vmem:[%s3739_s24 + $0x4e8] sm:$0xff] %v1942_v38  ;;  %v1921_v33 = vmul.f32 %v2815_v32, %v4144_v52  ;;  %v1922_v35 = vmul.f32 %v2816_v34, %v4144_v52  ;;  %v2817_v36 = vld [vmem:[%s3332_s27 + $0x450] sm:$0xff]  ;;  %v4219_v38 = vpop.permute.xlu0 %1771  ;;  %v2818_v25 = vld [vmem:[%s3332_s27 + $0x458] sm:$0xff] }
 0x459   : > { %2243 = vst [vmem:[%s3739_s24 + $0x4f0] sm:$0xff] %v1943_v39  ;;  %2244 = vst [vmem:[%s3739_s24 + $0x4f8] sm:$0xff] %v1944_v42  ;;  %v1923_v37 = vmul.f32 %v2817_v36, %v4144_v52  ;;  %v1924_v39 = vmul.f32 %v2818_v25, %v4144_v52  ;;  %v1925_v42 = vmul.f32 %v2819_v41, %v4144_v52  ;;  %v2820_v43 = vld [vmem:[%s3332_s27 + $0x468] sm:$0xff]  ;;  %v2821_v45 = vld [vmem:[%s3332_s27 + $0x470] sm:$0xff] }
 0x45a   : > { %2245 = vst [vmem:[%s3739_s24 + $0x500] sm:$0xff] %v1945_v44  ;;  %2246 = vst [vmem:[%s3739_s24 + $0x508] sm:$0xff] %v1946_v46  ;;  %v1926_v44 = vmul.f32 %v2820_v43, %v4144_v52  ;;  %v1927_v46 = vmul.f32 %v2821_v45, %v4144_v52  ;;  %v2822_v47 = vld [vmem:[%s3332_s27 + $0x478] sm:$0xff]  ;;  %v2823_v49 = vld [vmem:[%s3332_s27 + $0x480] sm:$0xff] }
 0x45b   : > { %2247 = vst [vmem:[%s3739_s24 + $0x510] sm:$0xff] %v1947_v48  ;;  %2248 = vst [vmem:[%s3739_s24 + $0x518] sm:$0xff] %v1948_v50  ;;  %v1928_v48 = vmul.f32 %v2822_v47, %v4144_v52  ;;  %v1929_v50 = vmul.f32 %v2823_v49, %v4144_v52  ;;  %v2824_v51 = vld [vmem:[%s3332_s27 + $0x488] sm:$0xff]  ;;  %v2825_v53 = vld [vmem:[%s3332_s27 + $0x490] sm:$0xff] }
 0x45c   : > { %2249 = vst [vmem:[%s3739_s24 + $0x520] sm:$0xff] %v1949_v40  ;;  %2250 = vst [vmem:[%s3739_s24 + $0x528] sm:$0xff] %v1950_v54  ;;  %v1930_v40 = vmul.f32 %v2824_v51, %v4144_v52  ;;  %v1931_v54 = vmul.f32 %v2825_v53, %v4144_v52  ;;  %v2826_v56 = vld [vmem:[%s3332_s27 + $0x498] sm:$0xff]  ;;  %v2827_v58 = vld [vmem:[%s3332_s27 + $0x4a0] sm:$0xff] }
 0x45d   : > { %2251 = vst [vmem:[%s3739_s24 + $0x530] sm:$0xff] %v1951_v57  ;;  %2252 = vst [vmem:[%s3739_s24 + $0x538] sm:$0xff] %v1952_v59  ;;  %v1932_v57 = vmul.f32 %v2826_v56, %v4144_v52  ;;  %v1933_v59 = vmul.f32 %v2827_v58, %v4144_v52  ;;  %v2828_v60 = vld [vmem:[%s3332_s27 + $0x4a8] sm:$0xff]  ;;  %v2829_v62 = vld [vmem:[%s3332_s27 + $0x640] sm:$0xff] }
 0x45e   : > { %2253 = vst [vmem:[%s3739_s24 + $0x540] sm:$0xff] %v1953_v61  ;;  %2254 = vst [vmem:[%s3739_s24 + $0x548] sm:$0xff] %v1954_v63  ;;  %v1934_v61 = vmul.f32 %v2828_v60, %v4144_v52  ;;  %v1985_v63 = vmul.f32 %v2829_v62, %v4219_v38  ;;  %v2830_v0 = vld [vmem:[%s3332_s27 + $0x648] sm:$0xff]  ;;  %v2847_v34 = vld [vmem:[%s3332_s27 + $0x6d0] sm:$0xff] }
 0x45f   : > { %2255 = vst [vmem:[%s3739_s24 + $0x550] sm:$0xff] %v1955_v1  ;;  %2256 = vst [vmem:[%s3739_s24 + $0x558] sm:$0xff] %v1956_v2  ;;  %v1986_v52 = vmul.f32 %v2830_v0, %v4219_v38  ;;  %v2831_v1 = vld [vmem:[%s3332_s27 + $0x650] sm:$0xff]  ;;  %v2832_v2 = vld [vmem:[%s3332_s27 + $0x658] sm:$0xff] }
 0x460   : > { %2257 = vst [vmem:[%s3739_s24 + $0x560] sm:$0xff] %v1957_v5  ;;  %2258 = vst [vmem:[%s3739_s24 + $0x568] sm:$0xff] %v1958_v7  ;;  %v1987_v55 = vmul.f32 %v2831_v1, %v4219_v38  ;;  %v1988_v4 = vmul.f32 %v2832_v2, %v4219_v38  ;;  %v2833_v5 = vld [vmem:[%s3332_s27 + $0x660] sm:$0xff]  ;;  %v2834_v7 = vld [vmem:[%s3332_s27 + $0x668] sm:$0xff] }
 0x461   : > { %2259 = vst.msk [vmem:[%s3739_s24 + $0x570] sm:$0xff] %vm1166_vm0, %v1959_v8  ;;  %2210 = vst [vmem:[%s3739_s24 + $0x3e8] sm:$0xff] %v1910_v11  ;;  %v1989_v6 = vmul.f32 %v2833_v5, %v4219_v38  ;;  %v1990_v9 = vmul.f32 %v2834_v7, %v4219_v38  ;;  %v2835_v8 = vld [vmem:[%s3332_s27 + $0x670] sm:$0xff]  ;;  %v2836_v11 = vld [vmem:[%s3332_s27 + $0x678] sm:$0xff] }
 0x462   : > { %2211 = vst [vmem:[%s3739_s24 + $0x3f0] sm:$0xff] %v1911_v13  ;;  %2212 = vst [vmem:[%s3739_s24 + $0x3f8] sm:$0xff] %v1912_v14  ;;  %v1991_v10 = vmul.f32 %v2835_v8, %v4219_v38  ;;  %v1992_v12 = vmul.f32 %v2836_v11, %v4219_v38  ;;  %v2837_v13 = vld [vmem:[%s3332_s27 + $0x680] sm:$0xff]  ;;  %v2838_v14 = vld [vmem:[%s3332_s27 + $0x688] sm:$0xff] }
 0x463   : > { %2213 = vst [vmem:[%s3739_s24 + $0x400] sm:$0xff] %v1913_v16  ;;  %2214 = vst [vmem:[%s3739_s24 + $0x408] sm:$0xff] %v1914_v20  ;;  %v1993_v3 = vmul.f32 %v2837_v13, %v4219_v38  ;;  %v1994_v15 = vmul.f32 %v2838_v14, %v4219_v38  ;;  %v2839_v16 = vld [vmem:[%s3332_s27 + $0x690] sm:$0xff]  ;;  %v2840_v20 = vld [vmem:[%s3332_s27 + $0x698] sm:$0xff] }
 0x464   : > { %2215 = vst [vmem:[%s3739_s24 + $0x410] sm:$0xff] %v1915_v22  ;;  %2216 = vst [vmem:[%s3739_s24 + $0x418] sm:$0xff] %v1916_v23  ;;  %v1995_v17 = vmul.f32 %v2839_v16, %v4219_v38  ;;  %v1996_v21 = vmul.f32 %v2840_v20, %v4219_v38  ;;  %v2841_v22 = vld [vmem:[%s3332_s27 + $0x6a0] sm:$0xff]  ;;  %v2842_v23 = vld [vmem:[%s3332_s27 + $0x6a8] sm:$0xff] }
 0x465   : > { %2217 = vst [vmem:[%s3739_s24 + $0x420] sm:$0xff] %v1917_v26  ;;  %2218 = vst [vmem:[%s3739_s24 + $0x428] sm:$0xff] %v1918_v28  ;;  %v1997_v18 = vmul.f32 %v2841_v22, %v4219_v38  ;;  %v1998_v24 = vmul.f32 %v2842_v23, %v4219_v38  ;;  %v2843_v26 = vld [vmem:[%s3332_s27 + $0x6b0] sm:$0xff]  ;;  %v2844_v28 = vld [vmem:[%s3332_s27 + $0x6b8] sm:$0xff] }
 0x466   : > { %2219 = vst [vmem:[%s3739_s24 + $0x430] sm:$0xff] %v1919_v19  ;;  %2220 = vst [vmem:[%s3739_s24 + $0x438] sm:$0xff] %v1920_v31  ;;  %v1999_v27 = vmul.f32 %v2843_v26, %v4219_v38  ;;  %v2000_v29 = vmul.f32 %v2844_v28, %v4219_v38  ;;  %v2845_v19 = vld [vmem:[%s3332_s27 + $0x6c0] sm:$0xff]  ;;  %v4306_v31 = vpop.permute.xlu1 %1767  ;;  %v2846_v32 = vld [vmem:[%s3332_s27 + $0x6c8] sm:$0xff] }
 0x467   : > { %2221 = vst [vmem:[%s3739_s24 + $0x440] sm:$0xff] %v1921_v33  ;;  %2222 = vst [vmem:[%s3739_s24 + $0x448] sm:$0xff] %v1922_v35  ;;  %v2001_v30 = vmul.f32 %v2845_v19, %v4219_v38  ;;  %v2002_v33 = vmul.f32 %v2846_v32, %v4219_v38  ;;  %v2003_v35 = vmul.f32 %v2847_v34, %v4219_v38  ;;  %v2848_v36 = vld [vmem:[%s3332_s27 + $0x6d8] sm:$0xff]  ;;  %v2849_v25 = vld [vmem:[%s3332_s27 + $0x6e0] sm:$0xff] }
 0x468   : > { %2223 = vst [vmem:[%s3739_s24 + $0x450] sm:$0xff] %v1923_v37  ;;  %2224 = vst [vmem:[%s3739_s24 + $0x458] sm:$0xff] %v1924_v39  ;;  %v2004_v37 = vmul.f32 %v2848_v36, %v4219_v38  ;;  %v2005_v39 = vmul.f32 %v2849_v25, %v4219_v38  ;;  %v2850_v41 = vld [vmem:[%s3332_s27 + $0x6e8] sm:$0xff]  ;;  %v2851_v43 = vld [vmem:[%s3332_s27 + $0x6f0] sm:$0xff] }
 0x469   : > { %2225 = vst [vmem:[%s3739_s24 + $0x460] sm:$0xff] %v1925_v42  ;;  %2226 = vst [vmem:[%s3739_s24 + $0x468] sm:$0xff] %v1926_v44  ;;  %v2006_v42 = vmul.f32 %v2850_v41, %v4219_v38  ;;  %v2007_v44 = vmul.f32 %v2851_v43, %v4219_v38  ;;  %v2852_v45 = vld [vmem:[%s3332_s27 + $0x6f8] sm:$0xff]  ;;  %v2853_v47 = vld [vmem:[%s3332_s27 + $0x700] sm:$0xff] }
 0x46a   : > { %2227 = vst [vmem:[%s3739_s24 + $0x470] sm:$0xff] %v1927_v46  ;;  %2228 = vst [vmem:[%s3739_s24 + $0x478] sm:$0xff] %v1928_v48  ;;  %v2008_v46 = vmul.f32 %v2852_v45, %v4219_v38  ;;  %v2009_v48 = vmul.f32 %v2853_v47, %v4219_v38  ;;  %v2854_v49 = vld [vmem:[%s3332_s27 + $0x578] sm:$0xff]  ;;  %v2855_v51 = vld [vmem:[%s3332_s27 + $0x580] sm:$0xff] }
 0x46b   : > { %2229 = vst [vmem:[%s3739_s24 + $0x480] sm:$0xff] %v1929_v50  ;;  %2230 = vst [vmem:[%s3739_s24 + $0x488] sm:$0xff] %v1930_v40  ;;  %v1960_v50 = vmul.f32 %v2854_v49, %v4306_v31  ;;  %v1961_v38 = vmul.f32 %v2855_v51, %v4306_v31  ;;  %v2856_v40 = vld [vmem:[%s3332_s27 + $0x588] sm:$0xff]  ;;  %v2870_v16 = vld [vmem:[%s3332_s27 + $0x5f8] sm:$0xff] }
 0x46c   : > { %2231 = vst [vmem:[%s3739_s24 + $0x490] sm:$0xff] %v1931_v54  ;;  %2232 = vst [vmem:[%s3739_s24 + $0x498] sm:$0xff] %v1932_v57  ;;  %v1962_v53 = vmul.f32 %v2856_v40, %v4306_v31  ;;  %v2857_v54 = vld [vmem:[%s3332_s27 + $0x590] sm:$0xff]  ;;  %v2858_v57 = vld [vmem:[%s3332_s27 + $0x598] sm:$0xff] }
 0x46d   : > { %2233 = vst [vmem:[%s3739_s24 + $0x4a0] sm:$0xff] %v1933_v59  ;;  %2234 = vst.msk [vmem:[%s3739_s24 + $0x4a8] sm:$0xff] %vm1166_vm0, %v1934_v61  ;;  %v1963_v56 = vmul.f32 %v2857_v54, %v4306_v31  ;;  %v1964_v58 = vmul.f32 %v2858_v57, %v4306_v31  ;;  %v2859_v59 = vld [vmem:[%s3332_s27 + $0x5a0] sm:$0xff]  ;;  %v2860_v61 = vld [vmem:[%s3332_s27 + $0x5a8] sm:$0xff] }
 0x46e   : > { %2285 = vst [vmem:[%s3739_s24 + $0x640] sm:$0xff] %v1985_v63  ;;  %2286 = vst [vmem:[%s3739_s24 + $0x648] sm:$0xff] %v1986_v52  ;;  %v1965_v60 = vmul.f32 %v2859_v59, %v4306_v31  ;;  %v1966_v62 = vmul.f32 %v2860_v61, %v4306_v31  ;;  %v2861_v63 = vld [vmem:[%s3332_s27 + $0x5b0] sm:$0xff]  ;;  %v2862_v52 = vld [vmem:[%s3332_s27 + $0x5b8] sm:$0xff] }
 0x46f   : > { %2287 = vst [vmem:[%s3739_s24 + $0x650] sm:$0xff] %v1987_v55  ;;  %2288 = vst [vmem:[%s3739_s24 + $0x658] sm:$0xff] %v1988_v4  ;;  %v1967_v0 = vmul.f32 %v2861_v63, %v4306_v31  ;;  %v1968_v1 = vmul.f32 %v2862_v52, %v4306_v31  ;;  %v2863_v55 = vld [vmem:[%s3332_s27 + $0x5c0] sm:$0xff]  ;;  %v2864_v4 = vld [vmem:[%s3332_s27 + $0x5c8] sm:$0xff] }
 0x470   : > { %2289 = vst [vmem:[%s3739_s24 + $0x660] sm:$0xff] %v1989_v6  ;;  %2290 = vst [vmem:[%s3739_s24 + $0x668] sm:$0xff] %v1990_v9  ;;  %v1969_v2 = vmul.f32 %v2863_v55, %v4306_v31  ;;  %v1970_v5 = vmul.f32 %v2864_v4, %v4306_v31  ;;  %v2865_v6 = vld [vmem:[%s3332_s27 + $0x5d0] sm:$0xff]  ;;  %v2866_v9 = vld [vmem:[%s3332_s27 + $0x5d8] sm:$0xff] }
 0x471   : > { %2291 = vst [vmem:[%s3739_s24 + $0x670] sm:$0xff] %v1991_v10  ;;  %2292 = vst [vmem:[%s3739_s24 + $0x678] sm:$0xff] %v1992_v12  ;;  %v1971_v7 = vmul.f32 %v2865_v6, %v4306_v31  ;;  %v1972_v8 = vmul.f32 %v2866_v9, %v4306_v31  ;;  %v2867_v10 = vld [vmem:[%s3332_s27 + $0x5e0] sm:$0xff]  ;;  %v2868_v12 = vld [vmem:[%s3332_s27 + $0x5e8] sm:$0xff] }
 0x472   : > { %2293 = vst [vmem:[%s3739_s24 + $0x680] sm:$0xff] %v1993_v3  ;;  %2294 = vst [vmem:[%s3739_s24 + $0x688] sm:$0xff] %v1994_v15  ;;  %v1973_v11 = vmul.f32 %v2867_v10, %v4306_v31  ;;  %v1974_v13 = vmul.f32 %v2868_v12, %v4306_v31  ;;  %v2869_v3 = vld [vmem:[%s3332_s27 + $0x5f0] sm:$0xff]  ;;  %v4381_v15 = vpop.permute.xlu0 %1779  ;;  %v2871_v20 = vld [vmem:[%s3332_s27 + $0x600] sm:$0xff] }
 0x473   : > { %2295 = vst [vmem:[%s3739_s24 + $0x690] sm:$0xff] %v1995_v17  ;;  %2296 = vst [vmem:[%s3739_s24 + $0x698] sm:$0xff] %v1996_v21  ;;  %v1975_v14 = vmul.f32 %v2869_v3, %v4306_v31  ;;  %v1976_v17 = vmul.f32 %v2870_v16, %v4306_v31  ;;  %v1977_v21 = vmul.f32 %v2871_v20, %v4306_v31  ;;  %v2872_v22 = vld [vmem:[%s3332_s27 + $0x608] sm:$0xff]  ;;  %v2873_v23 = vld [vmem:[%s3332_s27 + $0x610] sm:$0xff] }
 0x474   : > { %2297 = vst [vmem:[%s3739_s24 + $0x6a0] sm:$0xff] %v1997_v18  ;;  %2298 = vst [vmem:[%s3739_s24 + $0x6a8] sm:$0xff] %v1998_v24  ;;  %v1978_v18 = vmul.f32 %v2872_v22, %v4306_v31  ;;  %v1979_v24 = vmul.f32 %v2873_v23, %v4306_v31  ;;  %v2874_v26 = vld [vmem:[%s3332_s27 + $0x618] sm:$0xff]  ;;  %v2875_v28 = vld [vmem:[%s3332_s27 + $0x620] sm:$0xff] }
 0x475   : > { %2299 = vst [vmem:[%s3739_s24 + $0x6b0] sm:$0xff] %v1999_v27  ;;  %2300 = vst [vmem:[%s3739_s24 + $0x6b8] sm:$0xff] %v2000_v29  ;;  %v1980_v27 = vmul.f32 %v2874_v26, %v4306_v31  ;;  %v1981_v29 = vmul.f32 %v2875_v28, %v4306_v31  ;;  %v2876_v19 = vld [vmem:[%s3332_s27 + $0x628] sm:$0xff]  ;;  %v2877_v32 = vld [vmem:[%s3332_s27 + $0x630] sm:$0xff] }
 0x476   : > { %2301 = vst [vmem:[%s3739_s24 + $0x6c0] sm:$0xff] %v2001_v30  ;;  %2302 = vst [vmem:[%s3739_s24 + $0x6c8] sm:$0xff] %v2002_v33  ;;  %v1982_v30 = vmul.f32 %v2876_v19, %v4306_v31  ;;  %v1983_v33 = vmul.f32 %v2877_v32, %v4306_v31  ;;  %v2878_v34 = vld [vmem:[%s3332_s27 + $0x638] sm:$0xff]  ;;  %v2879_v36 = vld [vmem:[%s3332_s27 + $0x7d0] sm:$0xff] }
 0x477   : > { %2303 = vst [vmem:[%s3739_s24 + $0x6d0] sm:$0xff] %v2003_v35  ;;  %2304 = vst [vmem:[%s3739_s24 + $0x6d8] sm:$0xff] %v2004_v37  ;;  %v1984_v35 = vmul.f32 %v2878_v34, %v4306_v31  ;;  %v2035_v37 = vmul.f32 %v2879_v36, %v4381_v15  ;;  %v2880_v25 = vld [vmem:[%s3332_s27 + $0x7d8] sm:$0xff]  ;;  %v2881_v41 = vld [vmem:[%s3332_s27 + $0x7e0] sm:$0xff] }
 0x478   : > { %2305 = vst [vmem:[%s3739_s24 + $0x6e0] sm:$0xff] %v2005_v39  ;;  %2306 = vst [vmem:[%s3739_s24 + $0x6e8] sm:$0xff] %v2006_v42  ;;  %v2036_v39 = vmul.f32 %v2880_v25, %v4381_v15  ;;  %v2037_v42 = vmul.f32 %v2881_v41, %v4381_v15  ;;  %v2882_v31 = vld [vmem:[%s3332_s27 + $0x7e8] sm:$0xff]  ;;  %v2895_v4 = vld [vmem:[%s3332_s27 + $0x850] sm:$0xff] }
 0x479   : > { %2307 = vst [vmem:[%s3739_s24 + $0x6f0] sm:$0xff] %v2007_v44  ;;  %2308 = vst [vmem:[%s3739_s24 + $0x6f8] sm:$0xff] %v2008_v46  ;;  %v2038_v43 = vmul.f32 %v2882_v31, %v4381_v15  ;;  %v2883_v44 = vld [vmem:[%s3332_s27 + $0x7f0] sm:$0xff]  ;;  %v2884_v46 = vld [vmem:[%s3332_s27 + $0x7f8] sm:$0xff] }
 0x47a   : > { %2309 = vst.msk [vmem:[%s3739_s24 + $0x700] sm:$0xff] %vm1166_vm0, %v2009_v48  ;;  %2260 = vst [vmem:[%s3739_s24 + $0x578] sm:$0xff] %v1960_v50  ;;  %v2039_v45 = vmul.f32 %v2883_v44, %v4381_v15  ;;  %v2040_v47 = vmul.f32 %v2884_v46, %v4381_v15  ;;  %v2885_v48 = vld [vmem:[%s3332_s27 + $0x800] sm:$0xff]  ;;  %v2886_v50 = vld [vmem:[%s3332_s27 + $0x808] sm:$0xff] }
 0x47b   : > { %2261 = vst [vmem:[%s3739_s24 + $0x580] sm:$0xff] %v1961_v38  ;;  %2262 = vst [vmem:[%s3739_s24 + $0x588] sm:$0xff] %v1962_v53  ;;  %v2041_v49 = vmul.f32 %v2885_v48, %v4381_v15  ;;  %v2042_v51 = vmul.f32 %v2886_v50, %v4381_v15  ;;  %v2887_v38 = vld [vmem:[%s3332_s27 + $0x810] sm:$0xff]  ;;  %v2888_v53 = vld [vmem:[%s3332_s27 + $0x818] sm:$0xff] }
 0x47c   : > { %2263 = vst [vmem:[%s3739_s24 + $0x590] sm:$0xff] %v1963_v56  ;;  %2264 = vst [vmem:[%s3739_s24 + $0x598] sm:$0xff] %v1964_v58  ;;  %v2043_v40 = vmul.f32 %v2887_v38, %v4381_v15  ;;  %v2044_v54 = vmul.f32 %v2888_v53, %v4381_v15  ;;  %v2889_v56 = vld [vmem:[%s3332_s27 + $0x820] sm:$0xff]  ;;  %v2890_v58 = vld [vmem:[%s3332_s27 + $0x828] sm:$0xff] }
 0x47d   : > { %2265 = vst [vmem:[%s3739_s24 + $0x5a0] sm:$0xff] %v1965_v60  ;;  %2266 = vst [vmem:[%s3739_s24 + $0x5a8] sm:$0xff] %v1966_v62  ;;  %v2045_v57 = vmul.f32 %v2889_v56, %v4381_v15  ;;  %v2046_v59 = vmul.f32 %v2890_v58, %v4381_v15  ;;  %v2891_v60 = vld [vmem:[%s3332_s27 + $0x830] sm:$0xff]  ;;  %v2892_v62 = vld [vmem:[%s3332_s27 + $0x838] sm:$0xff] }
 0x47e   : > { %2267 = vst [vmem:[%s3739_s24 + $0x5b0] sm:$0xff] %v1967_v0  ;;  %2268 = vst [vmem:[%s3739_s24 + $0x5b8] sm:$0xff] %v1968_v1  ;;  %v2047_v61 = vmul.f32 %v2891_v60, %v4381_v15  ;;  %v2048_v63 = vmul.f32 %v2892_v62, %v4381_v15  ;;  %v2893_v0 = vld [vmem:[%s3332_s27 + $0x840] sm:$0xff]  ;;  %v4456_v1 = vpop.permute.xlu1 %1775  ;;  %v2894_v55 = vld [vmem:[%s3332_s27 + $0x848] sm:$0xff] }
 0x47f   : > { %2269 = vst [vmem:[%s3739_s24 + $0x5c0] sm:$0xff] %v1969_v2  ;;  %2270 = vst [vmem:[%s3739_s24 + $0x5c8] sm:$0xff] %v1970_v5  ;;  %v2049_v52 = vmul.f32 %v2893_v0, %v4381_v15  ;;  %v2050_v2 = vmul.f32 %v2894_v55, %v4381_v15  ;;  %v2051_v5 = vmul.f32 %v2895_v4, %v4381_v15  ;;  %v2896_v6 = vld [vmem:[%s3332_s27 + $0x858] sm:$0xff]  ;;  %v2897_v9 = vld [vmem:[%s3332_s27 + $0x860] sm:$0xff] }
 0x480   : > { %2271 = vst [vmem:[%s3739_s24 + $0x5d0] sm:$0xff] %v1971_v7  ;;  %2272 = vst [vmem:[%s3739_s24 + $0x5d8] sm:$0xff] %v1972_v8  ;;  %v2052_v7 = vmul.f32 %v2896_v6, %v4381_v15  ;;  %v2053_v8 = vmul.f32 %v2897_v9, %v4381_v15  ;;  %v2898_v10 = vld [vmem:[%s3332_s27 + $0x868] sm:$0xff]  ;;  %v2899_v12 = vld [vmem:[%s3332_s27 + $0x870] sm:$0xff] }
 0x481   : > { %2273 = vst [vmem:[%s3739_s24 + $0x5e0] sm:$0xff] %v1973_v11  ;;  %2274 = vst [vmem:[%s3739_s24 + $0x5e8] sm:$0xff] %v1974_v13  ;;  %v2054_v11 = vmul.f32 %v2898_v10, %v4381_v15  ;;  %v2055_v13 = vmul.f32 %v2899_v12, %v4381_v15  ;;  %v2900_v3 = vld [vmem:[%s3332_s27 + $0x878] sm:$0xff]  ;;  %v2901_v16 = vld [vmem:[%s3332_s27 + $0x880] sm:$0xff] }
 0x482   : > { %2275 = vst [vmem:[%s3739_s24 + $0x5f0] sm:$0xff] %v1975_v14  ;;  %2276 = vst [vmem:[%s3739_s24 + $0x5f8] sm:$0xff] %v1976_v17  ;;  %v2056_v14 = vmul.f32 %v2900_v3, %v4381_v15  ;;  %v2057_v17 = vmul.f32 %v2901_v16, %v4381_v15  ;;  %v2902_v20 = vld [vmem:[%s3332_s27 + $0x888] sm:$0xff]  ;;  %v2903_v22 = vld [vmem:[%s3332_s27 + $0x890] sm:$0xff] }
 0x483   : > { %2277 = vst [vmem:[%s3739_s24 + $0x600] sm:$0xff] %v1977_v21  ;;  %2278 = vst [vmem:[%s3739_s24 + $0x608] sm:$0xff] %v1978_v18  ;;  %v2058_v21 = vmul.f32 %v2902_v20, %v4381_v15  ;;  %v2059_v18 = vmul.f32 %v2903_v22, %v4381_v15  ;;  %v2904_v23 = vld [vmem:[%s3332_s27 + $0x708] sm:$0xff]  ;;  %v2905_v26 = vld [vmem:[%s3332_s27 + $0x710] sm:$0xff] }
 0x484   : > { %2279 = vst [vmem:[%s3739_s24 + $0x610] sm:$0xff] %v1979_v24  ;;  %2280 = vst [vmem:[%s3739_s24 + $0x618] sm:$0xff] %v1980_v27  ;;  %v2010_v24 = vmul.f32 %v2904_v23, %v4456_v1  ;;  %v2011_v27 = vmul.f32 %v2905_v26, %v4456_v1  ;;  %v2906_v15 = vld [vmem:[%s3332_s27 + $0x718] sm:$0xff]  ;;  %v2919_v53 = vld [vmem:[%s3332_s27 + $0x780] sm:$0xff] }
 0x485   : > { %2281 = vst [vmem:[%s3739_s24 + $0x620] sm:$0xff] %v1981_v29  ;;  %2282 = vst [vmem:[%s3739_s24 + $0x628] sm:$0xff] %v1982_v30  ;;  %v2012_v28 = vmul.f32 %v2906_v15, %v4456_v1  ;;  %v2907_v29 = vld [vmem:[%s3332_s27 + $0x720] sm:$0xff]  ;;  %v2908_v30 = vld [vmem:[%s3332_s27 + $0x728] sm:$0xff] }
 0x486   : > { %2283 = vst [vmem:[%s3739_s24 + $0x630] sm:$0xff] %v1983_v33  ;;  %2284 = vst.msk [vmem:[%s3739_s24 + $0x638] sm:$0xff] %vm1166_vm0, %v1984_v35  ;;  %v2013_v19 = vmul.f32 %v2907_v29, %v4456_v1  ;;  %v2014_v32 = vmul.f32 %v2908_v30, %v4456_v1  ;;  %v2909_v33 = vld [vmem:[%s3332_s27 + $0x730] sm:$0xff]  ;;  %v2910_v35 = vld [vmem:[%s3332_s27 + $0x738] sm:$0xff] }
 0x487   : > { %2335 = vst [vmem:[%s3739_s24 + $0x7d0] sm:$0xff] %v2035_v37  ;;  %2336 = vst [vmem:[%s3739_s24 + $0x7d8] sm:$0xff] %v2036_v39  ;;  %v2015_v34 = vmul.f32 %v2909_v33, %v4456_v1  ;;  %v2016_v36 = vmul.f32 %v2910_v35, %v4456_v1  ;;  %v2911_v37 = vld [vmem:[%s3332_s27 + $0x740] sm:$0xff]  ;;  %v2912_v39 = vld [vmem:[%s3332_s27 + $0x748] sm:$0xff] }
 0x488   : > { %2337 = vst [vmem:[%s3739_s24 + $0x7e0] sm:$0xff] %v2037_v42  ;;  %2338 = vst [vmem:[%s3739_s24 + $0x7e8] sm:$0xff] %v2038_v43  ;;  %v2017_v25 = vmul.f32 %v2911_v37, %v4456_v1  ;;  %v2018_v41 = vmul.f32 %v2912_v39, %v4456_v1  ;;  %v2913_v42 = vld [vmem:[%s3332_s27 + $0x750] sm:$0xff]  ;;  %v2914_v43 = vld [vmem:[%s3332_s27 + $0x758] sm:$0xff] }
 0x489   : > { %2339 = vst [vmem:[%s3739_s24 + $0x7f0] sm:$0xff] %v2039_v45  ;;  %2340 = vst [vmem:[%s3739_s24 + $0x7f8] sm:$0xff] %v2040_v47  ;;  %v2019_v31 = vmul.f32 %v2913_v42, %v4456_v1  ;;  %v2020_v44 = vmul.f32 %v2914_v43, %v4456_v1  ;;  %v2915_v45 = vld [vmem:[%s3332_s27 + $0x760] sm:$0xff]  ;;  %v2916_v47 = vld [vmem:[%s3332_s27 + $0x768] sm:$0xff] }
 0x48a   : > { %2341 = vst [vmem:[%s3739_s24 + $0x800] sm:$0xff] %v2041_v49  ;;  %2342 = vst [vmem:[%s3739_s24 + $0x808] sm:$0xff] %v2042_v51  ;;  %v2021_v46 = vmul.f32 %v2915_v45, %v4456_v1  ;;  %v2022_v48 = vmul.f32 %v2916_v47, %v4456_v1  ;;  %v2917_v49 = vld [vmem:[%s3332_s27 + $0x770] sm:$0xff]  ;;  %v4531_v51 = vpop.permute.xlu1 %1783  ;;  %v2918_v38 = vld [vmem:[%s3332_s27 + $0x778] sm:$0xff] }
 0x48b   : > { %2343 = vst [vmem:[%s3739_s24 + $0x810] sm:$0xff] %v2043_v40  ;;  %2344 = vst [vmem:[%s3739_s24 + $0x818] sm:$0xff] %v2044_v54  ;;  %v2023_v50 = vmul.f32 %v2917_v49, %v4456_v1  ;;  %v2024_v40 = vmul.f32 %v2918_v38, %v4456_v1  ;;  %v2025_v54 = vmul.f32 %v2919_v53, %v4456_v1  ;;  %v2920_v56 = vld [vmem:[%s3332_s27 + $0x788] sm:$0xff]  ;;  %v2921_v58 = vld [vmem:[%s3332_s27 + $0x790] sm:$0xff] }
 0x48c   : > { %2345 = vst [vmem:[%s3739_s24 + $0x820] sm:$0xff] %v2045_v57  ;;  %2346 = vst [vmem:[%s3739_s24 + $0x828] sm:$0xff] %v2046_v59  ;;  %v2026_v57 = vmul.f32 %v2920_v56, %v4456_v1  ;;  %v2027_v59 = vmul.f32 %v2921_v58, %v4456_v1  ;;  %v2922_v60 = vld [vmem:[%s3332_s27 + $0x798] sm:$0xff]  ;;  %v2923_v62 = vld [vmem:[%s3332_s27 + $0x7a0] sm:$0xff] }
 0x48d   : > { %2347 = vst [vmem:[%s3739_s24 + $0x830] sm:$0xff] %v2047_v61  ;;  %2348 = vst [vmem:[%s3739_s24 + $0x838] sm:$0xff] %v2048_v63  ;;  %v2028_v61 = vmul.f32 %v2922_v60, %v4456_v1  ;;  %v2029_v63 = vmul.f32 %v2923_v62, %v4456_v1  ;;  %v2924_v0 = vld [vmem:[%s3332_s27 + $0x7a8] sm:$0xff]  ;;  %v2925_v55 = vld [vmem:[%s3332_s27 + $0x7b0] sm:$0xff] }
 0x48e   : > { %2349 = vst [vmem:[%s3739_s24 + $0x840] sm:$0xff] %v2049_v52  ;;  %2350 = vst [vmem:[%s3739_s24 + $0x848] sm:$0xff] %v2050_v2  ;;  %v2030_v52 = vmul.f32 %v2924_v0, %v4456_v1  ;;  %v2031_v2 = vmul.f32 %v2925_v55, %v4456_v1  ;;  %v2926_v4 = vld [vmem:[%s3332_s27 + $0x7b8] sm:$0xff]  ;;  %v2927_v6 = vld [vmem:[%s3332_s27 + $0x7c0] sm:$0xff] }
 0x48f   : > { %2351 = vst [vmem:[%s3739_s24 + $0x850] sm:$0xff] %v2051_v5  ;;  %2352 = vst [vmem:[%s3739_s24 + $0x858] sm:$0xff] %v2052_v7  ;;  %v2032_v5 = vmul.f32 %v2926_v4, %v4456_v1  ;;  %v2033_v7 = vmul.f32 %v2927_v6, %v4456_v1  ;;  %v2928_v9 = vld [vmem:[%s3332_s27 + $0x7c8] sm:$0xff]  ;;  %v2929_v10 = vld [vmem:[%s3332_s27 + $0x898] sm:$0xff] }
 0x490   : > { %2353 = vst [vmem:[%s3739_s24 + $0x860] sm:$0xff] %v2053_v8  ;;  %2354 = vst [vmem:[%s3739_s24 + $0x868] sm:$0xff] %v2054_v11  ;;  %v2034_v8 = vmul.f32 %v2928_v9, %v4456_v1  ;;  %v2060_v11 = vmul.f32 %v2929_v10, %v4531_v51  ;;  %v2930_v12 = vld [vmem:[%s3332_s27 + $0x8a0] sm:$0xff] }
 0x491   : > { %2355 = vst [vmem:[%s3739_s24 + $0x870] sm:$0xff] %v2055_v13  ;;  %2356 = vst [vmem:[%s3739_s24 + $0x878] sm:$0xff] %v2056_v14  ;;  %v2061_v1 = vmul.f32 %v2930_v12, %v4531_v51  ;;  %v2931_v13 = vld [vmem:[%s3332_s27 + $0x8a8] sm:$0xff]  ;;  %v2932_v14 = vld [vmem:[%s3332_s27 + $0x8b0] sm:$0xff] }
 0x492   : > { %2357 = vst [vmem:[%s3739_s24 + $0x880] sm:$0xff] %v2057_v17  ;;  %2358 = vst [vmem:[%s3739_s24 + $0x888] sm:$0xff] %v2058_v21  ;;  %v2062_v3 = vmul.f32 %v2931_v13, %v4531_v51  ;;  %v2063_v16 = vmul.f32 %v2932_v14, %v4531_v51  ;;  %v2933_v17 = vld [vmem:[%s3332_s27 + $0x8b8] sm:$0xff]  ;;  %v2934_v21 = vld [vmem:[%s3332_s27 + $0x8c0] sm:$0xff] }
 0x493   : > { %2359 = vst.msk [vmem:[%s3739_s24 + $0x890] sm:$0xff] %vm1166_vm0, %v2059_v18  ;;  %2310 = vst [vmem:[%s3739_s24 + $0x708] sm:$0xff] %v2010_v24  ;;  %v2064_v20 = vmul.f32 %v2933_v17, %v4531_v51  ;;  %v2065_v22 = vmul.f32 %v2934_v21, %v4531_v51  ;;  %v2935_v18 = vld [vmem:[%s3332_s27 + $0x8c8] sm:$0xff]  ;;  %v2936_v24 = vld [vmem:[%s3332_s27 + $0x8d0] sm:$0xff] }
 0x494   : > { %2311 = vst [vmem:[%s3739_s24 + $0x710] sm:$0xff] %v2011_v27  ;;  %2312 = vst [vmem:[%s3739_s24 + $0x718] sm:$0xff] %v2012_v28  ;;  %v2066_v23 = vmul.f32 %v2935_v18, %v4531_v51  ;;  %v2067_v26 = vmul.f32 %v2936_v24, %v4531_v51  ;;  %v2937_v27 = vld [vmem:[%s3332_s27 + $0x8d8] sm:$0xff]  ;;  %v2938_v28 = vld [vmem:[%s3332_s27 + $0x8e0] sm:$0xff] }
 0x495   : > { %2313 = vst [vmem:[%s3739_s24 + $0x720] sm:$0xff] %v2013_v19  ;;  %2314 = vst [vmem:[%s3739_s24 + $0x728] sm:$0xff] %v2014_v32  ;;  %v2068_v15 = vmul.f32 %v2937_v27, %v4531_v51  ;;  %v2069_v29 = vmul.f32 %v2938_v28, %v4531_v51  ;;  %v2939_v19 = vld [vmem:[%s3332_s27 + $0x8e8] sm:$0xff]  ;;  %v2940_v32 = vld [vmem:[%s3332_s27 + $0x8f0] sm:$0xff] }
 0x496   : > { %2315 = vst [vmem:[%s3739_s24 + $0x730] sm:$0xff] %v2015_v34  ;;  %2316 = vst [vmem:[%s3739_s24 + $0x738] sm:$0xff] %v2016_v36  ;;  %v2070_v30 = vmul.f32 %v2939_v19, %v4531_v51  ;;  %v2071_v33 = vmul.f32 %v2940_v32, %v4531_v51  ;;  %v2941_v34 = vld [vmem:[%s3332_s27 + $0x8f8] sm:$0xff]  ;;  %v2942_v36 = vld [vmem:[%s3332_s27 + $0x900] sm:$0xff] }
 0x497   : > { %2317 = vst [vmem:[%s3739_s24 + $0x740] sm:$0xff] %v2017_v25  ;;  %2318 = vst [vmem:[%s3739_s24 + $0x748] sm:$0xff] %v2018_v41  ;;  %v2072_v35 = vmul.f32 %v2941_v34, %v4531_v51  ;;  %v2073_v37 = vmul.f32 %v2942_v36, %v4531_v51  ;;  %v2943_v25 = vld [vmem:[%s3332_s27 + $0x908] sm:$0xff]  ;;  %v2944_v41 = vld [vmem:[%s3332_s27 + $0x910] sm:$0xff] }
 0x498   : > { %2319 = vst [vmem:[%s3739_s24 + $0x750] sm:$0xff] %v2019_v31  ;;  %2320 = vst [vmem:[%s3739_s24 + $0x758] sm:$0xff] %v2020_v44  ;;  %v2074_v39 = vmul.f32 %v2943_v25, %v4531_v51  ;;  %v2075_v42 = vmul.f32 %v2944_v41, %v4531_v51  ;;  %v2945_v31 = vld [vmem:[%s3332_s27 + $0x918] sm:$0xff]  ;;  %v2946_v44 = vld [vmem:[%s3332_s27 + $0x920] sm:$0xff] }
 0x499   : > { %2321 = vst [vmem:[%s3739_s24 + $0x760] sm:$0xff] %v2021_v46  ;;  %2322 = vst [vmem:[%s3739_s24 + $0x768] sm:$0xff] %v2022_v48  ;;  %v2076_v43 = vmul.f32 %v2945_v31, %v4531_v51  ;;  %v2077_v45 = vmul.f32 %v2946_v44, %v4531_v51  ;;  %v2947_v46 = vld [vmem:[%s3332_s27 + $0x928] sm:$0xff]  ;;  %v2948_v48 = vld [vmem:[%s3332_s27 + $0x930] sm:$0xff] }
 0x49a   : > { %2323 = vst [vmem:[%s3739_s24 + $0x770] sm:$0xff] %v2023_v50  ;;  %2324 = vst [vmem:[%s3739_s24 + $0x778] sm:$0xff] %v2024_v40  ;;  %v2078_v47 = vmul.f32 %v2947_v46, %v4531_v51  ;;  %v2079_v49 = vmul.f32 %v2948_v48, %v4531_v51  ;;  %v2949_v50 = vld [vmem:[%s3332_s27 + $0x938] sm:$0xff]  ;;  %v2950_v40 = vld [vmem:[%s3332_s27 + $0x940] sm:$0xff] }
 0x49b   : > { %2325 = vst [vmem:[%s3739_s24 + $0x780] sm:$0xff] %v2025_v54  ;;  %2326 = vst [vmem:[%s3739_s24 + $0x788] sm:$0xff] %v2026_v57  ;;  %v2080_v38 = vmul.f32 %v2949_v50, %v4531_v51  ;;  %v2081_v53 = vmul.f32 %v2950_v40, %v4531_v51  ;;  %v2951_v54 = vld [vmem:[%s3332_s27 + $0x948] sm:$0xff]  ;;  %v2952_v57 = vld [vmem:[%s3332_s27 + $0x950] sm:$0xff] }
 0x49c   : > { %2327 = vst [vmem:[%s3739_s24 + $0x790] sm:$0xff] %v2027_v59  ;;  %2328 = vst [vmem:[%s3739_s24 + $0x798] sm:$0xff] %v2028_v61  ;;  %v2082_v56 = vmul.f32 %v2951_v54, %v4531_v51  ;;  %v2083_v58 = vmul.f32 %v2952_v57, %v4531_v51  ;;  %v2953_v59 = vld [vmem:[%s3332_s27 + $0x958] sm:$0xff]  ;;  %s3040_s27 = scalar_lea.vmem %s4641_s6, 38400 }
 0x49d   : > { %2329 = vst [vmem:[%s3739_s24 + $0x7a0] sm:$0xff] %v2029_v63  ;;  %2330 = vst [vmem:[%s3739_s24 + $0x7a8] sm:$0xff] %v2030_v52  ;;  %v2084_v60 = vmul.f32 %v2953_v59, %v4531_v51  ;;  %p3041_p11 = scmp.ne.s32.totalorder %s4641_s6, %s3040_s27  ;;  %p3048_p9 = scmp.lt.s32.totalorder %s3046_s12, %s3040_s27 }
 0x49e   : > { %2331 = vst [vmem:[%s3739_s24 + $0x7b0] sm:$0xff] %v2031_v2  ;;  %2332 = vst [vmem:[%s3739_s24 + $0x7b8] sm:$0xff] %v2032_v5 }
 0x49f   : > { %2333 = vst [vmem:[%s3739_s24 + $0x7c0] sm:$0xff] %v2033_v7  ;;  %2334 = vst.msk [vmem:[%s3739_s24 + $0x7c8] sm:$0xff] %vm1166_vm0, %v2034_v8  ;;  %p3042_p2 = pnand %p3041_p11, %p4724_p0  ;;  %p3049_p12 = por %p3048_p9, %p3047_p7 }
 0x4a0   : > { %2360 = vst [vmem:[%s3739_s24 + $0x898] sm:$0xff] %v2060_v11  ;;  %2361 = vst [vmem:[%s3739_s24 + $0x8a0] sm:$0xff] %v2061_v1 }
 0x4a1   : > { %2362 = vst [vmem:[%s3739_s24 + $0x8a8] sm:$0xff] %v2062_v3  ;;  %2363 = vst [vmem:[%s3739_s24 + $0x8b0] sm:$0xff] %v2063_v16  ;;  %p3043_p3 = pneg %p3042_p2 }
 0x4a2   : > { %2364 = vst [vmem:[%s3739_s24 + $0x8b8] sm:$0xff] %v2064_v20  ;;  %2365 = vst [vmem:[%s3739_s24 + $0x8c0] sm:$0xff] %v2065_v22 }
 0x4a3   : > { %2366 = vst [vmem:[%s3739_s24 + $0x8c8] sm:$0xff] %v2066_v23  ;;  %2367 = vst [vmem:[%s3739_s24 + $0x8d0] sm:$0xff] %v2067_v26  ;;  %p3050_p1 = pnand %p3049_p12, %p3043_p3 }
 0x4a4   : > { %2368 = vst [vmem:[%s3739_s24 + $0x8d8] sm:$0xff] %v2068_v15  ;;  %2369 = vst [vmem:[%s3739_s24 + $0x8e0] sm:$0xff] %v2069_v29 }
 0x4a5   : > { %2370 = vst [vmem:[%s3739_s24 + $0x8e8] sm:$0xff] %v2070_v30  ;;  %2371 = vst [vmem:[%s3739_s24 + $0x8f0] sm:$0xff] %v2071_v33 }
 0x4a6   : > { %2372 = vst [vmem:[%s3739_s24 + $0x8f8] sm:$0xff] %v2072_v35  ;;  %2373 = vst [vmem:[%s3739_s24 + $0x900] sm:$0xff] %v2073_v37 }
 0x4a7   : > { %2374 = vst [vmem:[%s3739_s24 + $0x908] sm:$0xff] %v2074_v39  ;;  %2375 = vst [vmem:[%s3739_s24 + $0x910] sm:$0xff] %v2075_v42 }
 0x4a8   : > { %2376 = vst [vmem:[%s3739_s24 + $0x918] sm:$0xff] %v2076_v43  ;;  %2377 = vst [vmem:[%s3739_s24 + $0x920] sm:$0xff] %v2077_v45 }
 0x4a9   : > { %2378 = vst [vmem:[%s3739_s24 + $0x928] sm:$0xff] %v2078_v47  ;;  %2379 = vst [vmem:[%s3739_s24 + $0x930] sm:$0xff] %v2079_v49 }
 0x4aa   : > { %2380 = vst [vmem:[%s3739_s24 + $0x938] sm:$0xff] %v2080_v38  ;;  %2381 = vst [vmem:[%s3739_s24 + $0x940] sm:$0xff] %v2081_v53 }
 0x4ab   : > { %2382 = vst [vmem:[%s3739_s24 + $0x948] sm:$0xff] %v2082_v56  ;;  %2383 = vst [vmem:[%s3739_s24 + $0x950] sm:$0xff] %v2083_v58 }
 0x4ac   : > { %2384 = vst.msk [vmem:[%s3739_s24 + $0x958] sm:$0xff] %vm1166_vm0, %v2084_v60 }
 0x4ad   : > { %3053 = shalt.err (!%p3050_p1)
}
 0x4ae   : > { %s3054_s5 = scalar_lea.hbm %s4637_s21, 38400  ;;  %s3058_s29 = scalar_lea.hbm %s4710_s4, 76800 }
 0x4af   : > { %p3055_p13 = scmp.ne.s32.totalorder %s4637_s21, %s3054_s5  ;;  %p3059_p4 = scmp.lt.u32.totalorder %s4637_s21, %s4710_s4 }
 0x4b0   : > { %p3060_p5 = scmp.lt.u32.totalorder %s3058_s29, %s3054_s5  ;;  %p3062_p11 = scmp.lt.u32.totalorder %s3054_s5, %s4637_s21 }
 0x4b1   : > { %p3056_p6 = pnand %p3055_p13, %p4724_p0 }
 0x4b2   : > { %p3061_p8 = por %p3060_p5, %p3059_p4 }
 0x4b3   : > { %p3057_p10 = pneg %p3056_p6 }
 0x4b4   : > { %p3063_p2 = por %p3062_p11, %p3061_p8 }
 0x4b6   : > { %p3064_p3 = pnand %p3063_p2, %p3057_p10 }
 0x4b8   : > { %3067 = shalt.err (!%p3064_p3)
}
 0x4b9   : > { %s3121_s24 = smov 3200   ;;  %s3122_s10 = smov 200  }
 0x4ba   : > { %2586 = dma.vmem_to_hbm [thread:$0]  (%p4724_p0), %s4641_s6, 38400, %s4637_s21, %s2386_s19, %s3121_s24, %s3121_s24, %s3122_s10  }
 0x4bb PF: > { %s2414_s26 = sand.u32 1, %s3098_s15   ;;  %p4725_p7 = scmp.ne.s32.totalorder %s4715_s22, 0 }
 0x4bc   : > { %p4726_p9 = scmp.ge.s32.totalorder %s3110_s18, 2  ;;  %s2415_s28 = scalar_lea.sflag [#allocation4], %s2414_s26 }
 0x4be   : > { %p2600_p12 = pnand %p4726_p9, %p4725_p7 }
 0x4c0   : > { %3093 = dma.done.wait (!%p2600_p12), %s2415_s28, 38400  }
 0x4c1   : > { %3095 = vsyncadd (!%p2600_p12), %s2415_s28, 4294928896  ;;  %p18_p1 = scmp.ge.s32.totalorder %s3261_s9, 4   ;;  %s4727_s15 = smov %s3102_s16 }
 0x4c2   : > { %s4728_s16 = smov %s3106_s17  ;;  %s4729_s17 = smov %s3277_s14 }
 0x4c3   : > { %s4730_s18 = smov %s3261_s9  ;;  %20 = sbr.rel (!%p18_p1) target bundleno = 6 (0x6), region = 89 }
 0x4ca   :  { %2420 = vsyncpa [#allocation3], 1 }
 0x4cb   :  { %2422 = vsyncpa [#allocation3 + $0x1], 1 }
 0x4cc   :  { %2423 = vsyncpa [#allocation6], 1 }
 0x4cd   :  { %2424 = vsyncpa [#allocation4], 1 }
 0x4ce   :  { %2426 = vsyncpa [#allocation4 + $0x1], 1 }

</bundles_post_ra>
